<compile_context>
chip_gen: v7x
topology: tpu7x:2x2x1
jax: 0.10.0
libtpu: 0.0.40
codegen_flags: <defaults>
</compile_context>

<pallas_src>
import jax
import jax.numpy as jnp
from jax import lax
from jax.experimental import pallas as pl
from jax.experimental.pallas import tpu as pltpu


# ---------------------------------------------------------------------------
# Fused kernel factory (one grid step == TH output rows of one image)
# ---------------------------------------------------------------------------
def _make_bottleneck_kernel(H, W, TH, OFF, Pp, Cout_p):
    HWt = TH * W                # output rows per tile (flattened)
    HWh = (TH + 2) * W          # conv1 window rows (1-row halo each side)
    WS = OFF + W + 1            # scratch width; valid y1 lives at columns [OFF, OFF+W)

    def kernel(x_ref, w1_ref, b1_ref, w2_ref, b2_ref, w3_ref, b3_ref,
               o_ref, yp_ref):
        t = pl.program_id(1)

        # ---- conv1 (1x1) + folded BN1 + ReLU over TH+2 rows (halo recompute) ----
        x_start = pl.multiple_of(t * HWt, HWt)
        x_win = x_ref[0, pl.ds(x_start, HWh), :]             # bf16 (HWh, Cin_p)
        y1 = jnp.dot(x_win, w1_ref[...], preferred_element_type=jnp.float32)
        y1 = jnp.maximum(y1 + b1_ref[...], 0.0)
        # single f32->bf16 cast + one sublane-aligned (offset 16) interior store
        yp_ref[:, OFF:OFF + W, :] = y1.astype(jnp.bfloat16).reshape(TH + 2, W, Pp)

        # ---- 1-column halos: never written above, re-zeroed each step so the ----
        # ---- kernel needs no cross-step scratch state (megacore/parallel-safe) --
        zcol = jnp.zeros((TH + 2, 1, Pp), jnp.bfloat16)
        yp_ref[:, OFF - 1:OFF, :] = zcol
        yp_ref[:, OFF + W:OFF + W + 1, :] = zcol

        # ---- 1-row halo at the image boundary (conv2 zero-padding semantics) ----
        zrow = jnp.zeros((1, WS, Pp), jnp.bfloat16)

        @pl.when(t == 0)
        def _():
            yp_ref[0:1, :, :] = zrow

        @pl.when(t == pl.num_programs(1) - 1)
        def _():
            yp_ref[TH + 1:TH + 2, :, :] = zrow

        # ---- conv2 (3x3, pad 1) as 3 accumulated K=3*Pp MXU matmuls + BN2+ReLU --
        # TODO(synk): if the bundle dump shows XLU repack cost on the odd-offset
        # bf16 left/right tap reads, fall back to an f32 scratch + one hoisted cast.
        acc = jnp.zeros((HWt, Pp), jnp.float32)
        for dy in range(3):
            left = yp_ref[dy:dy + TH, OFF - 1:OFF - 1 + W, :]
            mid = yp_ref[dy:dy + TH, OFF:OFF + W, :]
            right = yp_ref[dy:dy + TH, OFF + 1:OFF + 1 + W, :]
            k_in = jnp.concatenate([left, mid, right], axis=-1).reshape(HWt, 3 * Pp)
            acc = acc + jnp.dot(k_in, w2_ref[dy],
                                preferred_element_type=jnp.float32)
        y2 = jnp.maximum(acc + b2_ref[...], 0.0)

        # ---- conv3 (1x1) + folded BN3 + identity residual + final ReLU ----------
        z = jnp.dot(y2.astype(jnp.bfloat16), w3_ref[...],
                    preferred_element_type=jnp.float32)
        r_start = pl.multiple_of(t * HWt + W, W)              # skip the pad row
        resid = x_ref[0, pl.ds(r_start, HWt), :]              # bf16 (HWt, Cin_p)
        z = z + b3_ref[...] + resid.astype(jnp.float32)
        o_ref[0] = jnp.maximum(z, 0.0).astype(o_ref.dtype)

    return kernel


# ---------------------------------------------------------------------------
# Wrapper (layout plumbing only)
# ---------------------------------------------------------------------------
def bottleneck_forward(x_nchw, params, stride=1):
    # TODO(synk): stride > 1 and the `downsample` branch are not implemented
    # (module defaults: stride=1, downsample=None; se/srm/csrm/IN = Identity).
    assert stride == 1
    N, Cin, H, W = x_nchw.shape
    Cin_p, Pp = params['w1k'].shape
    _, K2, _ = params['w2k'].shape
    Cout_p = params['w3k'].shape[1]
    Cout = params['cout']
    assert K2 == 3 * Pp
    assert Cout == Cin, "identity shortcut needs inplanes == 4*planes"
    assert Cin_p == Cout_p

    TH = 8 if (H % 8 == 0 and H >= 8) else H      # rows per grid step (tunable)
    n_tiles = H // TH
    OFF = 16                                       # bf16 sublane-tile aligned window
    WS = OFF + W + 1

    # TODO(synk): in a full network keep activations NHWC + channel-padded across
    # layers; the transpose / pad / un-pad below then disappears at network level.
    x_nhwc = jnp.transpose(x_nchw, (0, 2, 3, 1))
    x_pad = jnp.pad(x_nhwc, ((0, 0), (1, 1), (0, 0), (0, Cin_p - Cin)))
    x2d = x_pad.reshape(N, (H + 2) * W, Cin_p).astype(jnp.bfloat16)

    kernel = _make_bottleneck_kernel(H, W, TH, OFF, Pp, Cout_p)

    # --- generation-aware VMEM budget ---------------------------------------
    bytes_needed = (
        2 * (H + 2) * W * Cin_p * 2                       # x block (bf16, 2 bufs)
        + 2 * TH * W * Cout_p * 4                         # out block (f32, 2 bufs)
        + 2 * ((Cin_p * Pp + 9 * Pp * Pp + Pp * Cout_p) * 2
               + (2 * Pp + Cout_p) * 4)                   # weights + biases
        + (TH + 2) * WS * Pp * 2                          # padded y1 scratch (bf16)
        + (TH + 2) * W * Pp * 6                           # y1 f32 + bf16 temps
        + TH * W * (3 * Pp * 2 + Pp * 8 + Cout_p * 8))    # concat / acc / epilogue
    try:
        vmem_cap = pltpu.get_tpu_info().vmem_capacity_bytes
    except Exception:
        vmem_cap = 64 << 20
    vmem_limit = int(min(max(2 * bytes_needed + (8 << 20), 32 << 20),
                         (3 * vmem_cap) // 4))

    # TODO(synk): pipeline_mode=pl.Buffered(1) on the constant-index weight/bias
    # specs would drop their second pipeline buffer (worthwhile once planes>=256).
    out = pl.pallas_call(
        kernel,
        out_shape=jax.ShapeDtypeStruct((N, H * W, Cout_p), jnp.float32),
        grid=(N, n_tiles),
        in_specs=[
            pl.BlockSpec((1, (H + 2) * W, Cin_p), lambda n, t: (n, 0, 0)),  # x
            pl.BlockSpec((Cin_p, Pp), lambda n, t: (0, 0)),                 # w1
            pl.BlockSpec((1, Pp), lambda n, t: (0, 0)),                     # b1
            pl.BlockSpec((3, 3 * Pp, Pp), lambda n, t: (0, 0, 0)),          # w2
            pl.BlockSpec((1, Pp), lambda n, t: (0, 0)),                     # b2
            pl.BlockSpec((Pp, Cout_p), lambda n, t: (0, 0)),                # w3
            pl.BlockSpec((1, Cout_p), lambda n, t: (0, 0)),                 # b3
        ],
        out_specs=pl.BlockSpec((1, TH * W, Cout_p), lambda n, t: (n, t, 0)),
        scratch_shapes=[pltpu.VMEM((TH + 2, WS, Pp), jnp.bfloat16)],
        compiler_params=pltpu.CompilerParams(
            dimension_semantics=("parallel", "parallel"),
            vmem_limit_bytes=vmem_limit),
    )(x2d, params['w1k'], params['b1k'], params['w2k'], params['b2k'],
      params['w3k'], params['b3k'])

    out = out[:, :, :Cout].reshape(N, H, W, Cout)
    return jnp.transpose(out, (0, 3, 1, 2))                  # back to NCHW


# ---------------------------------------------------------------------------
# Deterministic parameter init (shapes from Bottleneck.__init__)
# ---------------------------------------------------------------------------
def init_params(key, inplanes, planes):
    exp = 4
    cout = planes * exp
    ks = jax.random.split(key, 15)
    eps = 1e-5

    def bn_fold(kg, kb, km, kv, c):
        gamma = 1.0 + 0.1 * jax.random.normal(kg, (c,), jnp.float32)
        beta = 0.1 * jax.random.normal(kb, (c,), jnp.float32)
        mean = 0.1 * jax.random.normal(km, (c,), jnp.float32)
        var = 1.0 + 0.1 * jnp.abs(jax.random.normal(kv, (c,), jnp.float32))
        scale = gamma / jnp.sqrt(var + eps)
        bias = beta - mean * scale
        return (gamma, beta, mean, var), scale, bias

    # conv weights, channel-last matmul layouts
    w1 = 0.1 * jax.random.normal(ks[0], (inplanes, planes), jnp.float32)      # (Cin, P)
    w2 = 0.1 * jax.random.normal(ks[1], (3, 3, planes, planes), jnp.float32)  # (kh,kw,Ci,Co)
    w3 = 0.1 * jax.random.normal(ks[2], (planes, cout), jnp.float32)          # (P, 4P)

    bn1_raw, s1, b1 = bn_fold(ks[3], ks[4], ks[5], ks[6], planes)
    bn2_raw, s2, b2 = bn_fold(ks[7], ks[8], ks[9], ks[10], planes)
    bn3_raw, s3, b3 = bn_fold(ks[11], ks[12], ks[13], ks[14], cout)

    def rup(c):
        return ((c + 127) // 128) * 128

    cin_p, p_p, cout_p = rup(inplanes), rup(planes), rup(cout)

    # fold BN scales into weights, pad channels to 128-lane multiples, bf16 for MXU
    w1f = jnp.zeros((cin_p, p_p), jnp.float32).at[:inplanes, :planes].set(
        w1 * s1[None, :])
    w2f = jnp.zeros((3, 3, p_p, p_p), jnp.float32).at[:, :, :planes, :planes].set(
        w2 * s2[None, None, None, :])
    w3f = jnp.zeros((p_p, cout_p), jnp.float32).at[:planes, :cout].set(
        w3 * s3[None, :])

    def pad_bias(b, cp):
        return jnp.zeros((1, cp), jnp.float32).at[0, :b.shape[0]].set(b)

    return {
        'cout': cout,
        # kernel-side (folded, padded, bf16 matmul operands; f32 biases)
        'w1k': w1f.astype(jnp.bfloat16),
        # (3, 3*Pp, Pp): dy-major, dx taps stacked along K to match the in-kernel
        # concat([left(dx=0), mid(dx=1), right(dx=2)], axis=-1)
        'w2k': w2f.reshape(3, 3 * p_p, p_p).astype(jnp.bfloat16),
        'w3k': w3f.astype(jnp.bfloat16),
        'b1k': pad_bias(b1, p_p),
        'b2k': pad_bias(b2, p_p),
        'b3k': pad_bias(b3, cout_p),
        # reference-side (PyTorch OIHW layouts + raw BN stats, exact f32)
        'w1_oihw': jnp.transpose(w1)[:, :, None, None],
        'w2_oihw': jnp.transpose(w2, (3, 2, 0, 1)),
        'w3_oihw': jnp.transpose(w3)[:, :, None, None],
        'bn1': bn1_raw, 'bn2': bn2_raw, 'bn3': bn3_raw,
    }


# ---------------------------------------------------------------------------
# Pure-JAX f32 reference (mirrors the PyTorch forward, NCHW)
# ---------------------------------------------------------------------------
def ref_forward(x_nchw, params):
    eps = 1e-5
    dn = ('NCHW', 'OIHW', 'NCHW')

    def bn(x, p):
        g, b, m, v = p
        return ((x - m[None, :, None, None]) / jnp.sqrt(v[None, :, None, None] + eps)
                * g[None, :, None, None] + b[None, :, None, None])

    o = lax.conv_general_dilated(x_nchw, params['w1_oihw'], (1, 1), 'VALID',
                                 dimension_numbers=dn)
    o = jax.nn.relu(bn(o, params['bn1']))
    o = lax.conv_general_dilated(o, params['w2_oihw'], (1, 1), ((1, 1), (1, 1)),
                                 dimension_numbers=dn)
    o = jax.nn.relu(bn(o, params['bn2']))
    o = lax.conv_general_dilated(o, params['w3_oihw'], (1, 1), 'VALID',
                                 dimension_numbers=dn)
    o = bn(o, params['bn3'])
    return jax.nn.relu(o + x_nchw)


if __name__ == "__main__":
    key = jax.random.PRNGKey(0)
    kx, kp = jax.random.split(key)

    # inplanes must equal planes * expansion (4) when downsample is None.
    N, inplanes, H, W = 2, 32, 16, 16
    planes = 8

    x = jax.random.normal(kx, (N, inplanes, H, W), jnp.float32)
    params = init_params(kp, inplanes, planes)

    out = bottleneck_forward(x, params)
    out = jax.block_until_ready(out)

    ref = ref_forward(x, params)
    assert out.shape == ref.shape == (N, planes * 4, H, W)
    max_err = float(jnp.max(jnp.abs(out - ref)))
    if not (max_err < 5e-2):
        raise SystemExit(f"mismatch vs reference: max abs err = {max_err}")

    print("KERNEL_OK")
</pallas_src>

<mosaic_0001>
module attributes {stable_mosaic.version = 11 : i64} {
  func.func @kernel(%arg0: i32, %arg1: i32, %arg2: memref<1x288x128xbf16, #tpu.memory_space<vmem>>, %arg3: memref<128x128xbf16, #tpu.memory_space<vmem>>, %arg4: memref<1x128xf32, #tpu.memory_space<vmem>>, %arg5: memref<3x384x128xbf16, #tpu.memory_space<vmem>>, %arg6: memref<1x128xf32, #tpu.memory_space<vmem>>, %arg7: memref<128x128xbf16, #tpu.memory_space<vmem>>, %arg8: memref<1x128xf32, #tpu.memory_space<vmem>>, %arg9: memref<1x128x128xf32, #tpu.memory_space<vmem>>, %arg10: memref<10x33x128xbf16, #tpu.memory_space<vmem>>) attributes {dimension_semantics = [#tpu.dimension_semantics<parallel>, #tpu.dimension_semantics<parallel>], iteration_bounds = array<i64: 2, 2>, scalar_prefetch = 0 : i64, scratch_operands = 1 : i64, tpu.core_type = #tpu.core_type<tc>, window_params = [{transform_indices = @transform_0, window_bounds = array<i64: 1, 288, 128>}, {pipeline_mode = #tpu.pipeline_mode<synchronous>, transform_indices = @transform_1, window_bounds = array<i64: 128, 128>}, {pipeline_mode = #tpu.pipeline_mode<synchronous>, transform_indices = @transform_2, window_bounds = array<i64: 1, 128>}, {pipeline_mode = #tpu.pipeline_mode<synchronous>, transform_indices = @transform_3, window_bounds = array<i64: 3, 384, 128>}, {pipeline_mode = #tpu.pipeline_mode<synchronous>, transform_indices = @transform_4, window_bounds = array<i64: 1, 128>}, {pipeline_mode = #tpu.pipeline_mode<synchronous>, transform_indices = @transform_5, window_bounds = array<i64: 128, 128>}, {pipeline_mode = #tpu.pipeline_mode<synchronous>, transform_indices = @transform_6, window_bounds = array<i64: 1, 128>}, {transform_indices = @transform_7, window_bounds = array<i64: 1, 128, 128>}]} {
    %c128_i32 = arith.constant 128 : i32
    %0 = arith.muli %arg1, %c128_i32 : i32
    %1 = tpu.assume_multiple %0, 128 : i32
    %c0 = arith.constant 0 : index
    %2 = arith.index_cast %1 : i32 to index
    %c0_0 = arith.constant 0 : index
    %3 = vector.load %arg2[%c0, %2, %c0_0] : memref<1x288x128xbf16, #tpu.memory_space<vmem>>, vector<1x160x128xbf16>
    %4 = vector.shape_cast %3 : vector<1x160x128xbf16> to vector<160x128xbf16>
    %c0_1 = arith.constant 0 : index
    %c0_2 = arith.constant 0 : index
    %5 = vector.load %arg3[%c0_1, %c0_2] : memref<128x128xbf16, #tpu.memory_space<vmem>>, vector<128x128xbf16>
    %cst = arith.constant dense<0.000000e+00> : vector<160x128xf32>
    %6 = tpu.matmul %4, %5, %cst {dimension_numbers = #tpu.dot_dimension_numbers<[1], [0], [0], [1], [0, 0, 1, 1], [], []>} : vector<160x128xbf16>, vector<128x128xbf16>, vector<160x128xf32> -> vector<160x128xf32>
    %c0_3 = arith.constant 0 : index
    %c0_4 = arith.constant 0 : index
    %7 = vector.load %arg4[%c0_3, %c0_4] : memref<1x128xf32, #tpu.memory_space<vmem>>, vector<1x128xf32>
    %8 = vector.broadcast %7 : vector<1x128xf32> to vector<160x128xf32>
    %9 = arith.addf %6, %8 : vector<160x128xf32>
    %cst_5 = arith.constant 0.000000e+00 : f32
    %10 = vector.broadcast %cst_5 : f32 to vector<160x128xf32>
    %11 = arith.maximumf %9, %10 : vector<160x128xf32>
    %12 = arith.truncf %11 : vector<160x128xf32> to vector<160x128xbf16>
    %13 = vector.shape_cast %12 : vector<160x128xbf16> to vector<10x16x128xbf16>
    %c0_6 = arith.constant 0 : index
    %c16 = arith.constant 16 : index
    %c0_7 = arith.constant 0 : index
    %14 = vector.load %arg10[%c0_6, %c16, %c0_7] : memref<10x33x128xbf16, #tpu.memory_space<vmem>>, vector<10x16x128xbf16>
    tpu.vector_store %arg10[%c0_6, %c16, %c0_7], %13 {strides = array<i32>} : memref<10x33x128xbf16, #tpu.memory_space<vmem>>, vector<10x16x128xbf16>,
    %cst_8 = arith.constant 0.000000e+00 : bf16
    %15 = vector.broadcast %cst_8 : bf16 to vector<10x1x128xbf16>
    %c0_9 = arith.constant 0 : index
    %c15 = arith.constant 15 : index
    %c0_10 = arith.constant 0 : index
    %16 = vector.load %arg10[%c0_9, %c15, %c0_10] : memref<10x33x128xbf16, #tpu.memory_space<vmem>>, vector<10x1x128xbf16>
    tpu.vector_store %arg10[%c0_9, %c15, %c0_10], %15 {strides = array<i32>} : memref<10x33x128xbf16, #tpu.memory_space<vmem>>, vector<10x1x128xbf16>,
    %c0_11 = arith.constant 0 : index
    %c32 = arith.constant 32 : index
    %c0_12 = arith.constant 0 : index
    %17 = vector.load %arg10[%c0_11, %c32, %c0_12] : memref<10x33x128xbf16, #tpu.memory_space<vmem>>, vector<10x1x128xbf16>
    tpu.vector_store %arg10[%c0_11, %c32, %c0_12], %15 {strides = array<i32>} : memref<10x33x128xbf16, #tpu.memory_space<vmem>>, vector<10x1x128xbf16>,
    %cst_13 = arith.constant 0.000000e+00 : bf16
    %18 = vector.broadcast %cst_13 : bf16 to vector<1x33x128xbf16>
    %c0_i32 = arith.constant 0 : i32
    %19 = arith.cmpi eq, %arg1, %c0_i32 : i32
    %20 = arith.extui %19 : i1 to i32
    %c0_i32_14 = arith.constant 0 : i32
    %21 = arith.cmpi ne, %20, %c0_i32_14 : i32
    scf.if %21 {
      %c0_68 = arith.constant 0 : index
      %c0_69 = arith.constant 0 : index
      %c0_70 = arith.constant 0 : index
      %77 = vector.load %arg10[%c0_68, %c0_69, %c0_70] : memref<10x33x128xbf16, #tpu.memory_space<vmem>>, vector<1x33x128xbf16>
      tpu.vector_store %arg10[%c0_68, %c0_69, %c0_70], %18 {strides = array<i32>} : memref<10x33x128xbf16, #tpu.memory_space<vmem>>, vector<1x33x128xbf16>,
    } else {
    }
    %c1_i32 = arith.constant 1 : i32
    %22 = arith.cmpi eq, %arg1, %c1_i32 : i32
    %23 = arith.extui %22 : i1 to i32
    %c0_i32_15 = arith.constant 0 : i32
    %24 = arith.cmpi ne, %23, %c0_i32_15 : i32
    scf.if %24 {
      %c9 = arith.constant 9 : index
      %c0_68 = arith.constant 0 : index
      %c0_69 = arith.constant 0 : index
      %77 = vector.load %arg10[%c9, %c0_68, %c0_69] : memref<10x33x128xbf16, #tpu.memory_space<vmem>>, vector<1x33x128xbf16>
      tpu.vector_store %arg10[%c9, %c0_68, %c0_69], %18 {strides = array<i32>} : memref<10x33x128xbf16, #tpu.memory_space<vmem>>, vector<1x33x128xbf16>,
    } else {
    }
    %cst_16 = arith.constant 0.000000e+00 : f32
    %25 = vector.broadcast %cst_16 : f32 to vector<128x128xf32>
    %c0_17 = arith.constant 0 : index
    %c15_18 = arith.constant 15 : index
    %c0_19 = arith.constant 0 : index
    %26 = vector.load %arg10[%c0_17, %c15_18, %c0_19] : memref<10x33x128xbf16, #tpu.memory_space<vmem>>, vector<8x16x128xbf16>
    %c0_20 = arith.constant 0 : index
    %c16_21 = arith.constant 16 : index
    %c0_22 = arith.constant 0 : index
    %27 = vector.load %arg10[%c0_20, %c16_21, %c0_22] : memref<10x33x128xbf16, #tpu.memory_space<vmem>>, vector<8x16x128xbf16>
    %c0_23 = arith.constant 0 : index
    %c17 = arith.constant 17 : index
    %c0_24 = arith.constant 0 : index
    %28 = vector.load %arg10[%c0_23, %c17, %c0_24] : memref<10x33x128xbf16, #tpu.memory_space<vmem>>, vector<8x16x128xbf16>
    %29 = tpu.concatenate %26, %27, %28 in 2 : vector<8x16x128xbf16>, vector<8x16x128xbf16>, vector<8x16x128xbf16> -> vector<8x16x384xbf16>
    %30 = vector.shape_cast %29 : vector<8x16x384xbf16> to vector<128x384xbf16>
    %c0_25 = arith.constant 0 : index
    %c0_26 = arith.constant 0 : index
    %c0_27 = arith.constant 0 : index
    %31 = vector.load %arg5[%c0_25, %c0_26, %c0_27] : memref<3x384x128xbf16, #tpu.memory_space<vmem>>, vector<1x384x128xbf16>
    %32 = vector.shape_cast %31 : vector<1x384x128xbf16> to vector<384x128xbf16>
    %cst_28 = arith.constant dense<0.000000e+00> : vector<128x128xf32>
    %33 = tpu.matmul %30, %32, %cst_28 {dimension_numbers = #tpu.dot_dimension_numbers<[1], [0], [0], [1], [0, 0, 1, 1], [], []>} : vector<128x384xbf16>, vector<384x128xbf16>, vector<128x128xf32> -> vector<128x128xf32>
    %34 = arith.addf %25, %33 : vector<128x128xf32>
    %c1 = arith.constant 1 : index
    %c15_29 = arith.constant 15 : index
    %c0_30 = arith.constant 0 : index
    %35 = vector.load %arg10[%c1, %c15_29, %c0_30] : memref<10x33x128xbf16, #tpu.memory_space<vmem>>, vector<8x16x128xbf16>
    %c1_31 = arith.constant 1 : index
    %c16_32 = arith.constant 16 : index
    %c0_33 = arith.constant 0 : index
    %36 = vector.load %arg10[%c1_31, %c16_32, %c0_33] : memref<10x33x128xbf16, #tpu.memory_space<vmem>>, vector<8x16x128xbf16>
    %c1_34 = arith.constant 1 : index
    %c17_35 = arith.constant 17 : index
    %c0_36 = arith.constant 0 : index
    %37 = vector.load %arg10[%c1_34, %c17_35, %c0_36] : memref<10x33x128xbf16, #tpu.memory_space<vmem>>, vector<8x16x128xbf16>
    %38 = tpu.concatenate %35, %36, %37 in 2 : vector<8x16x128xbf16>, vector<8x16x128xbf16>, vector<8x16x128xbf16> -> vector<8x16x384xbf16>
    %39 = vector.shape_cast %38 : vector<8x16x384xbf16> to vector<128x384xbf16>
    %c1_37 = arith.constant 1 : index
    %c0_38 = arith.constant 0 : index
    %c0_39 = arith.constant 0 : index
    %40 = vector.load %arg5[%c1_37, %c0_38, %c0_39] : memref<3x384x128xbf16, #tpu.memory_space<vmem>>, vector<1x384x128xbf16>
    %41 = vector.shape_cast %40 : vector<1x384x128xbf16> to vector<384x128xbf16>
    %cst_40 = arith.constant dense<0.000000e+00> : vector<128x128xf32>
    %42 = tpu.matmul %39, %41, %cst_40 {dimension_numbers = #tpu.dot_dimension_numbers<[1], [0], [0], [1], [0, 0, 1, 1], [], []>} : vector<128x384xbf16>, vector<384x128xbf16>, vector<128x128xf32> -> vector<128x128xf32>
    %43 = arith.addf %34, %42 : vector<128x128xf32>
    %c2 = arith.constant 2 : index
    %c15_41 = arith.constant 15 : index
    %c0_42 = arith.constant 0 : index
    %44 = vector.load %arg10[%c2, %c15_41, %c0_42] : memref<10x33x128xbf16, #tpu.memory_space<vmem>>, vector<8x16x128xbf16>
    %c2_43 = arith.constant 2 : index
    %c16_44 = arith.constant 16 : index
    %c0_45 = arith.constant 0 : index
    %45 = vector.load %arg10[%c2_43, %c16_44, %c0_45] : memref<10x33x128xbf16, #tpu.memory_space<vmem>>, vector<8x16x128xbf16>
    %c2_46 = arith.constant 2 : index
    %c17_47 = arith.constant 17 : index
    %c0_48 = arith.constant 0 : index
    %46 = vector.load %arg10[%c2_46, %c17_47, %c0_48] : memref<10x33x128xbf16, #tpu.memory_space<vmem>>, vector<8x16x128xbf16>
    %47 = tpu.concatenate %44, %45, %46 in 2 : vector<8x16x128xbf16>, vector<8x16x128xbf16>, vector<8x16x128xbf16> -> vector<8x16x384xbf16>
    %48 = vector.shape_cast %47 : vector<8x16x384xbf16> to vector<128x384xbf16>
    %c2_49 = arith.constant 2 : index
    %c0_50 = arith.constant 0 : index
    %c0_51 = arith.constant 0 : index
    %49 = vector.load %arg5[%c2_49, %c0_50, %c0_51] : memref<3x384x128xbf16, #tpu.memory_space<vmem>>, vector<1x384x128xbf16>
    %50 = vector.shape_cast %49 : vector<1x384x128xbf16> to vector<384x128xbf16>
    %cst_52 = arith.constant dense<0.000000e+00> : vector<128x128xf32>
    %51 = tpu.matmul %48, %50, %cst_52 {dimension_numbers = #tpu.dot_dimension_numbers<[1], [0], [0], [1], [0, 0, 1, 1], [], []>} : vector<128x384xbf16>, vector<384x128xbf16>, vector<128x128xf32> -> vector<128x128xf32>
    %52 = arith.addf %43, %51 : vector<128x128xf32>
    %c0_53 = arith.constant 0 : index
    %c0_54 = arith.constant 0 : index
    %53 = vector.load %arg6[%c0_53, %c0_54] : memref<1x128xf32, #tpu.memory_space<vmem>>, vector<1x128xf32>
    %54 = vector.broadcast %53 : vector<1x128xf32> to vector<128x128xf32>
    %55 = arith.addf %52, %54 : vector<128x128xf32>
    %cst_55 = arith.constant 0.000000e+00 : f32
    %56 = vector.broadcast %cst_55 : f32 to vector<128x128xf32>
    %57 = arith.maximumf %55, %56 : vector<128x128xf32>
    %58 = arith.truncf %57 : vector<128x128xf32> to vector<128x128xbf16>
    %c0_56 = arith.constant 0 : index
    %c0_57 = arith.constant 0 : index
    %59 = vector.load %arg7[%c0_56, %c0_57] : memref<128x128xbf16, #tpu.memory_space<vmem>>, vector<128x128xbf16>
    %cst_58 = arith.constant dense<0.000000e+00> : vector<128x128xf32>
    %60 = tpu.matmul %58, %59, %cst_58 {dimension_numbers = #tpu.dot_dimension_numbers<[1], [0], [0], [1], [0, 0, 1, 1], [], []>} : vector<128x128xbf16>, vector<128x128xbf16>, vector<128x128xf32> -> vector<128x128xf32>
    %c128_i32_59 = arith.constant 128 : i32
    %61 = arith.muli %arg1, %c128_i32_59 : i32
    %c16_i32 = arith.constant 16 : i32
    %62 = arith.addi %61, %c16_i32 : i32
    %63 = tpu.assume_multiple %62, 16 : i32
    %c0_60 = arith.constant 0 : index
    %64 = arith.index_cast %63 : i32 to index
    %c0_61 = arith.constant 0 : index
    %65 = vector.load %arg2[%c0_60, %64, %c0_61] : memref<1x288x128xbf16, #tpu.memory_space<vmem>>, vector<1x128x128xbf16>
    %66 = vector.shape_cast %65 : vector<1x128x128xbf16> to vector<128x128xbf16>
    %c0_62 = arith.constant 0 : index
    %c0_63 = arith.constant 0 : index
    %67 = vector.load %arg8[%c0_62, %c0_63] : memref<1x128xf32, #tpu.memory_space<vmem>>, vector<1x128xf32>
    %68 = vector.broadcast %67 : vector<1x128xf32> to vector<128x128xf32>
    %69 = arith.addf %60, %68 : vector<128x128xf32>
    %70 = arith.extf %66 : vector<128x128xbf16> to vector<128x128xf32>
    %71 = arith.addf %69, %70 : vector<128x128xf32>
    %cst_64 = arith.constant 0.000000e+00 : f32
    %72 = vector.broadcast %cst_64 : f32 to vector<128x128xf32>
    %73 = arith.maximumf %71, %72 : vector<128x128xf32>
    %c0_65 = arith.constant 0 : index
    %c0_66 = arith.constant 0 : index
    %c0_67 = arith.constant 0 : index
    %74 = vector.load %arg9[%c0_65, %c0_66, %c0_67] : memref<1x128x128xf32, #tpu.memory_space<vmem>>, vector<1x128x128xf32>
    %75 = vector.shape_cast %74 : vector<1x128x128xf32> to vector<128x128xf32>
    %76 = vector.shape_cast %73 : vector<128x128xf32> to vector<1x128x128xf32>
    tpu.vector_store %arg9[%c0_65, %c0_66, %c0_67], %76 {strides = array<i32>} : memref<1x128x128xf32, #tpu.memory_space<vmem>>, vector<1x128x128xf32>,
    return
  }
  func.func @transform_0(%arg0: i32, %arg1: i32) -> (i32, i32, i32) {
    %c0_i32 = arith.constant 0 : i32
    %c0_i32_0 = arith.constant 0 : i32
    %c0_i32_1 = arith.constant 0 : i32
    return %arg0, %c0_i32, %c0_i32_0 : i32, i32, i32
  }
  func.func @transform_1(%arg0: i32, %arg1: i32) -> (i32, i32) {
    %c0_i32 = arith.constant 0 : i32
    %c0_i32_0 = arith.constant 0 : i32
    %c0_i32_1 = arith.constant 0 : i32
    return %c0_i32, %c0_i32_0 : i32, i32
  }
  func.func @transform_2(%arg0: i32, %arg1: i32) -> (i32, i32) {
    %c0_i32 = arith.constant 0 : i32
    %c0_i32_0 = arith.constant 0 : i32
    %c0_i32_1 = arith.constant 0 : i32
    return %c0_i32, %c0_i32_0 : i32, i32
  }
  func.func @transform_3(%arg0: i32, %arg1: i32) -> (i32, i32, i32) {
    %c0_i32 = arith.constant 0 : i32
    %c0_i32_0 = arith.constant 0 : i32
    %c0_i32_1 = arith.constant 0 : i32
    %c0_i32_2 = arith.constant 0 : i32
    return %c0_i32, %c0_i32_0, %c0_i32_1 : i32, i32, i32
  }
  func.func @transform_4(%arg0: i32, %arg1: i32) -> (i32, i32) {
    %c0_i32 = arith.constant 0 : i32
    %c0_i32_0 = arith.constant 0 : i32
    %c0_i32_1 = arith.constant 0 : i32
    return %c0_i32, %c0_i32_0 : i32, i32
  }
  func.func @transform_5(%arg0: i32, %arg1: i32) -> (i32, i32) {
    %c0_i32 = arith.constant 0 : i32
    %c0_i32_0 = arith.constant 0 : i32
    %c0_i32_1 = arith.constant 0 : i32
    return %c0_i32, %c0_i32_0 : i32, i32
  }
  func.func @transform_6(%arg0: i32, %arg1: i32) -> (i32, i32) {
    %c0_i32 = arith.constant 0 : i32
    %c0_i32_0 = arith.constant 0 : i32
    %c0_i32_1 = arith.constant 0 : i32
    return %c0_i32, %c0_i32_0 : i32, i32
  }
  func.func @transform_7(%arg0: i32, %arg1: i32) -> (i32, i32, i32) {
    %c0_i32 = arith.constant 0 : i32
    %c0_i32_0 = arith.constant 0 : i32
    return %arg0, %arg1, %c0_i32 : i32, i32, i32
  }
}

</mosaic_0001>

<bundles_post_ra>
// kernel: tpu_custom_call.1
= control target key start
LH: loop header
LB: loop body
LE: loop exit
PB: predicated region body
PF: predicated region fallthrough
CT: control target
= control target key end

     0   :  { %s6682_s0 = inlined_call_operand.hbm [shape: bf16[2,288,128], index: 0, kind: input, shape index: {}]   ;;  %s6683_s1 = inlined_call_operand.hbm [shape: bf16[128,128], index: 1, kind: input, shape index: {}]   ;;  %s6684_s2 = inlined_call_operand.vmem [shape: f32[1,128], index: 2, kind: input, shape index: {}]   ;;  %s6685_s3 = inlined_call_operand.hbm [shape: bf16[3,384,128], index: 3, kind: input, shape index: {}]   ;;  %s6686_s4 = inlined_call_operand.vmem [shape: f32[1,128], index: 4, kind: input, shape index: {}]   ;;  %s6687_s5 = inlined_call_operand.hbm [shape: bf16[128,128], index: 5, kind: input, shape index: {}]   ;;  %s6688_s6 = inlined_call_operand.vmem [shape: f32[1,128], index: 6, kind: input, shape index: {}]   ;;  %s6689_s7 = inlined_call_operand.hbm [shape: f32[2,256,128], index: 7, kind: output, shape index: {}]  }
   0x1   :  { %6702 = sst [smem:[#allocation20_spill]] %s6683_s1 }
   0x2   :  { %6703 = sst [smem:[#allocation21_spill]] %s6684_s2 }
   0x3   :  { %6704 = sst [smem:[#allocation22_spill]] %s6685_s3 }
   0x4   :  { %6705 = sst [smem:[#allocation23_spill]] %s6686_s4 }
   0x5   :  { %6706 = sst [smem:[#allocation24_spill]] %s6688_s6 }
   0x6   :  { %6707 = sst [smem:[#allocation25_spill]] %s6689_s7 }
   0x7   :  { %12 = vsyncpa [#allocation4], 0 }
   0x8   :  { %14 = vsyncpa [#allocation4 + $0x1], 0 }
   0x9   :  { %15 = vsyncpa [#allocation7], 0 }
   0xa   :  { %16 = vsyncpa [#allocation10], 0 }
   0xb   :  { %17 = vsyncpa [#allocation5], 0 }
   0xc   :  { %19 = vsyncpa [#allocation5 + $0x1], 0  ;;  %s5701_s24 = smov 0   ;;  %s5703_s25 = smov 0  }
   0xd   :  { %s5705_s26 = smov 0   ;;  %s5707_s27 = smov 0  }
   0xe   :  { %s5709_s28 = smov 0   ;;  %s5711_s29 = smov 0  }
   0xf   :  { %s5713_s30 = smov 0   ;;  %s5715_s8 = smov 0  }
  0x10   :  { %s5717_s9 = smov 0   ;;  %s5719_s10 = smov 0  }
  0x11   :  { %s5721_s11 = smov 0  }
  0x12 LB: > { %6708 = sst [smem:[#allocation16_spill]] %s5608_s24  ;;  %s4203_s12 = sadd.s32 4294967295, %s5648_s11   ;;  %s5648_s11 = sphi %s5721_s11, %s25_s11   ;;  %s5644_s10 = sphi %s5719_s10, %s6752_s10   ;;  %s5640_s9 = sphi %s5717_s9, %s6751_s9   ;;  %s5636_s8 = sphi %s5715_s8, %s6750_s8   ;;  %s5632_s30 = sphi %s5713_s30, %s6749_s30   ;;  %s5628_s29 = sphi %s5711_s29, %s6748_s29   ;;  %s5624_s28 = sphi %s5709_s28, %s6747_s28   ;;  %s5620_s27 = sphi %s5707_s27, %s6746_s27   ;;  %s5616_s26 = sphi %s5705_s26, %s6745_s26   ;;  %s5612_s25 = sphi %s5703_s25, %s6744_s25   ;;  %s5608_s24 = sphi %s5701_s24, %s6743_s24  }
  0x13   : > { %6709 = sst [smem:[#allocation17_spill]] %s5636_s8  ;;  %s4204_s13 = sadd.s32 4294967294, %s5648_s11  }
  0x14   : > { %p57_p0 = scmp.ne.s32.totalorder %s5624_s28, %s5620_s27  ;;  %p5757_p1 = scmp.eq.s32.totalorder %s4203_s12, 0 }
  0x15   : > { %p208_p2 = scmp.ne.s32.totalorder %s5616_s26, %s5612_s25  ;;  %p209_p4 = scmp.eq.s32.totalorder %s4203_s12, 3 }
  0x16   : > { %s6710_s14 = scalar_select %p5757_p1, 1, 0 }
  0x17   : > { %p5766_p3 = por %p5757_p1, %p57_p0  ;;  %p214_p5 = scmp.ne.s32.totalorder %s5612_s25, %s5608_s24 }
  0x18   : > { %p215_p6 = scmp.eq.s32.totalorder %s4204_s13, 3  ;;  %p5772_p7 = por %p209_p4, %p208_p2 }
  0x19   : > { %s6711_s16 = scalar_select %p5766_p3, 1, 0 }
  0x1a   : > { %s6712_s17 = scalar_select %p5772_p7, 1, 0 }
  0x1b   : > { %p4205_p8 = scmp.ge.s32.totalorder %s5648_s11, 1  ;;  %p5777_p9 = por %p215_p6, %p214_p5 }
  0x1c   : > { %6713 = sst [smem:[#allocation18_spill]] %s6712_s17  ;;  %p222_p10 = scmp.lt.s32.totalorder %s5648_s11, 5 }
  0x1d   : > { %s6714_s18 = scalar_select %p5777_p9, 1, 0 }
  0x1e   : > { %p5782_p11 = pnand %p4205_p8, %p222_p10  ;;  %s5650_s20 = smov [#allocation6]  }
  0x1f   : > { %6715 = sst [smem:[#allocation19_spill]] %s6714_s18  ;;  %s234_s21 = sshll.u32 %s5650_s20, 4  ;;  %s5786_s21 = int_to_ptr.vmem [resolvable:$true] %s234_s21 }
  0x20   : > { %s6716_s19 = scalar_select %p5782_p11, 1, 0 }
  0x21   : > { %p5086_p12 = pneg %p5782_p11  ;;  %s5651_s23 = smov [#allocation8]  }
  0x22   : > { %s250_s27 = sshll.u32 %s5651_s23, 4  ;;  %s5652_s12 = smov [#allocation9]   ;;  %s5796_s27 = int_to_ptr.vmem [resolvable:$true] %s250_s27 }
  0x23   : > { %p5792_p13 = pnand %p5086_p12, %p5757_p1  ;;  %s5798_s13 = sshll.u32 %s5652_s12, 4  ;;  %s267_s13 = int_to_ptr.vmem [resolvable:$true] %s5798_s13 }
  0x24   : > { %s6718_s1 = sld [smem:[#allocation20_spill]] }
  0x25   : > { %p5808_p2 = pneg %p5792_p13 }
  0x2a   : > { %s5404_s20 = scalar_lea.hbm %s6718_s1, 1024 }
  0x2b   : > { %p5405_p0 = scmp.ne.s32.totalorder %s6718_s1, %s5404_s20  ;;  %p5411_p6 = scmp.lt.u32.totalorder %s5404_s20, %s6718_s1 }
  0x2d   : > { %p5407_p4 = pnand %p5808_p2, %p5405_p0 }
  0x2f   : > { %p5408_p5 = pneg %p5407_p4 }
  0x31   : > { %p5413_p8 = pnand %p5411_p6, %p5408_p5 }
  0x33   : > { %5416 = shalt.err (!%p5413_p8)
}
  0x34   : > { %s5417_s7 = scalar_lea.vmem %s5786_s21, 1024  ;;  %p5425_p7 = scmp.lt.s32.totalorder %s5786_s21, %s5786_s21 }
  0x35   : > { %p5418_p10 = scmp.ne.s32.totalorder %s5786_s21, %s5417_s7  ;;  %p5426_p1 = scmp.lt.s32.totalorder %s5417_s7, %s5417_s7 }
  0x37   : > { %p5420_p12 = pnand %p5418_p10, %p5808_p2  ;;  %p5427_p0 = por %p5426_p1, %p5425_p7 }
  0x39   : > { %p5421_p9 = pneg %p5420_p12 }
  0x3b   : > { %p5428_p4 = pnand %p5427_p0, %p5421_p9 }
  0x3d   : > { %5431 = shalt.err (!%p5428_p4)
}
  0x3e   : > { %s6700_s24 = smov 64   ;;  %s6701_s15 = smov 4  }
  0x3f   : > { %5089 = dma.hbm_to_vmem [thread:$0]  (!%p5792_p13), %s6718_s1, 1024, %s5786_s21, [#allocation7], %s6700_s24, %s6700_s24, %s6701_s15  }
  0x40   : > { %s6720_s3 = sld [smem:[#allocation22_spill]] }
  0x46   : > { %s5432_s7 = scalar_lea.hbm %s6720_s3, 9216 }
  0x47   : > { %p5433_p1 = scmp.ne.s32.totalorder %s6720_s3, %s5432_s7  ;;  %p5439_p5 = scmp.lt.u32.totalorder %s5432_s7, %s6720_s3 }
  0x49   : > { %p5435_p7 = pnand %p5433_p1, %p5808_p2 }
  0x4b   : > { %p5436_p9 = pneg %p5435_p7 }
  0x4d   : > { %p5441_p6 = pnand %p5439_p5, %p5436_p9 }
  0x4f   : > { %5444 = shalt.err (!%p5441_p6)
}
  0x50   : > { %s5445_s21 = scalar_lea.vmem %s5796_s27, 9216  ;;  %p5453_p0 = scmp.lt.s32.totalorder %s5796_s27, %s5796_s27 }
  0x51   : > { %p5446_p8 = scmp.ne.s32.totalorder %s5796_s27, %s5445_s21  ;;  %p5454_p4 = scmp.lt.s32.totalorder %s5445_s21, %s5445_s21 }
  0x53   : > { %p5448_p10 = pnand %p5446_p8, %p5808_p2  ;;  %p5455_p1 = por %p5454_p4, %p5453_p0 }
  0x55   : > { %p5449_p12 = pneg %p5448_p10 }
  0x57   : > { %p5456_p7 = pnand %p5455_p1, %p5449_p12 }
  0x59   : > { %5459 = shalt.err (!%p5456_p7)
}
  0x5a   : > { %5092 = dma.hbm_to_vmem [thread:$0]  (!%p5792_p13), %s6720_s3, 9216, %s5796_s27, [#allocation7], %s6700_s24, %s6700_s24, %s6701_s15  }
  0x5b   : > { %s5460_s18 = scalar_lea.hbm %s6687_s5, 1024 }
  0x5c   : > { %p5461_p9 = scmp.ne.s32.totalorder %s6687_s5, %s5460_s18  ;;  %p5467_p8 = scmp.lt.u32.totalorder %s5460_s18, %s6687_s5 }
  0x5e   : > { %p5463_p5 = pnand %p5461_p9, %p5808_p2 }
  0x60   : > { %p5464_p6 = pneg %p5463_p5 }
  0x62   : > { %p5469_p10 = pnand %p5467_p8, %p5464_p6 }
  0x64   : > { %5472 = shalt.err (!%p5469_p10)
}
  0x65   : > { %s5473_s21 = scalar_lea.vmem %s267_s13, 1024  ;;  %p5481_p1 = scmp.lt.s32.totalorder %s267_s13, %s267_s13 }
  0x66   : > { %p5474_p12 = scmp.ne.s32.totalorder %s267_s13, %s5473_s21  ;;  %p5482_p7 = scmp.lt.s32.totalorder %s5473_s21, %s5473_s21 }
  0x68   : > { %p5476_p0 = pnand %p5474_p12, %p5808_p2  ;;  %p5483_p3 = por %p5482_p7, %p5481_p1 }
  0x6a   : > { %p5477_p4 = pneg %p5476_p0 }
  0x6c   : > { %p5484_p11 = pnand %p5483_p3, %p5477_p4 }
  0x6e   : > { %5487 = shalt.err (!%p5484_p11)
}
  0x6f   : > { %5095 = dma.hbm_to_vmem [thread:$0]  (!%p5792_p13), %s6687_s5, 1024, %s267_s13, [#allocation10], %s6700_s24, %s6700_s24, %s6701_s15  }
  0x70   : > { %s34_s17 = sadd.s32 1, %s5640_s9  ;;  %s37_s22 = sadd.s32 1, %s5644_s10 }
  0x71   : > { %p35_p3 = scmp.ge.s32.totalorder %s34_s17, 2  ;;  %s44_s4 = sadd.s32 1, %s5628_s29 }
  0x72   : > { %p51_p11 = scmp.ne.s32.totalorder %s5628_s29, %s5624_s28  ;;  %p52_p2 = scmp.eq.s32.totalorder %s5648_s11, 0 }
  0x73   : > { %s6754_s17 = smov (%p35_p3, %s34_s17), 0  ;;  %s6756_s22 = smov (!%p35_p3, %s37_s22), %s5644_s10 }
  0x74   : > { %s194_s6 = ssub.s32 %s5640_s9, %s6754_s17  ;;  %p39_p9 = scmp.ge.s32.totalorder %s6756_s22, 2 }
  0x75   : > { %p5107_p5 = scmp.lt.s32.totalorder %s5648_s11, 4  ;;  %p5892_p13 = por %p52_p2, %p51_p11 }
  0x76   : > { %s283_s8 = sand.u32 1, %s5628_s29   ;;  %s6758_s22 = smov (%p39_p9, %s6756_s22), 0 }
  0x77   : > { %s5067_s18 = smul.u32 144, %s283_s8  ;;  %s41_s20 = ssub.s32 %s5644_s10, %s6758_s22 }
  0x78   : > { %s5068_s23 = smul.u32 2304, %s5644_s10  ;;  %p42_p6 = scmp.eq.s32.totalorder %s41_s20, 0 }
  0x79   : > { %s195_s12 = sor.u32 %s194_s6, %s41_s20  ;;  %s6722_s21 = sadd.s32 1, %s5616_s26 }
  0x7a   : > { %p196_p8 = scmp.eq.s32.totalorder %s195_s12, 0  ;;  %s5913_s15 = scalar_lea.hbm %s6682_s0, %s5068_s23 }
  0x7b   : > { %s5903_s7 = scalar_select %p42_p6, %s5628_s29, %s44_s4  }
  0x7c   : > { %s5908_s27 = scalar_select %p196_p8, %s5616_s26, %s6722_s21  }
  0x7d   : > { %s287_s1 = scalar_lea.vmem [#allocation3], %s5067_s18  ;;  %p5921_p10 = pnand %p5107_p5, %p5892_p13 }
  0x7e   : > { %s294_s3 = sshll.u32 %s287_s1, 4  ;;  %s5925_s6 = scalar_lea.sflag [#allocation4], %s283_s8  ;;  %s5915_s3 = int_to_ptr.vmem [resolvable:$true] %s294_s3 }
  0x7f   : > { %s5488_s24 = scalar_lea.hbm %s5913_s15, 2304  ;;  %p5490_p0 = pneg %p5921_p10 }
  0x80   : > { %p5489_p12 = scmp.ne.s32.totalorder %s5913_s15, %s5488_s24  ;;  %s5493_s13 = scalar_lea.hbm %s6682_s0, 4608 }
  0x81   : > { %p5494_p7 = scmp.lt.u32.totalorder %s5913_s15, %s6682_s0  ;;  %p5495_p3 = scmp.lt.u32.totalorder %s5493_s13, %s5488_s24 }
  0x82   : > { %p5491_p4 = pnand %p5490_p0, %p5489_p12  ;;  %p5497_p2 = scmp.lt.u32.totalorder %s5488_s24, %s5913_s15 }
  0x83   : > { %p5496_p11 = por %p5495_p3, %p5494_p7 }
  0x84   : > { %p5492_p1 = pneg %p5491_p4 }
  0x85   : > { %p5498_p9 = por %p5497_p2, %p5496_p11 }
  0x87   : > { %p5499_p5 = pnand %p5498_p9, %p5492_p1 }
  0x89   : > { %5502 = shalt.err (!%p5499_p5)
}
  0x8a   : > { %s5503_s8 = scalar_lea.vmem %s5915_s3, 2304  ;;  %s5655_s12 = smov [#allocation3]  }
  0x8b   : > { %p5504_p13 = scmp.ne.s32.totalorder %s5915_s3, %s5503_s8  ;;  %s5508_s21 = sshll.u32 %s5655_s12, 4  ;;  %s5509_s21 = int_to_ptr.vmem [resolvable:$false] %s5508_s21 }
  0x8c   : > { %s5510_s2 = scalar_lea.vmem %s5509_s21, 4608  ;;  %p5511_p12 = scmp.lt.s32.totalorder %s5915_s3, %s5509_s21 }
  0x8d   : > { %p5506_p6 = pnand %p5504_p13, %p5490_p0  ;;  %p5512_p4 = scmp.lt.s32.totalorder %s5510_s2, %s5503_s8 }
  0x8f   : > { %p5507_p8 = pneg %p5506_p6  ;;  %p5513_p7 = por %p5512_p4, %p5511_p12 }
  0x91   : > { %p5514_p3 = pnand %p5513_p7, %p5507_p8 }
  0x93   : > { %5517 = shalt.err (!%p5514_p3)
}
  0x94   : > { %s6724_s24 = smov 4   ;;  %s6725_s1 = smov 64  }
  0x95   : > { %5099 = dma.hbm_to_vmem [thread:$0]  (!%p5921_p10), %s5913_s15, 2304, %s5915_s3, %s5925_s6, %s6725_s1, %s6725_s1, %s6724_s24  }
  0x96   : > { %p6726_p0 = scmp.ne.s32.totalorder %s6716_s19, 0 }
  0x97   : > { %s308_s18 = sand.u32 (!%p6726_p0), 1, %s5624_s28   ;;  %p6727_p1 = scmp.ne.s32.totalorder (!%p6726_p0), %s6711_s16, 0 }
  0x98   : > { %306 = sbr.rel (%p6726_p0) target bundleno = 1170 (0x492), region = 48  ;;  %s309_s20 = scalar_lea.sflag (!%p6726_p0), [#allocation4], %s308_s18 }
  0x99   : > { %s5959_s13 = smul.u32 (!%p6726_p0), 144, %s308_s18 }
  0x9b   : > { %s312_s23 = scalar_lea.vmem (!%p6726_p0), [#allocation3], %s5959_s13 }
  0x9f   : > { %5591 = dma.done.wait (%p6727_p1), %s309_s20, 2304  }
  0xa0   : > { %5593 = vsyncadd (%p6727_p1), %s309_s20, 4294964992  ;;  %p6728_p11 = scmp.ne.s32.totalorder %s6710_s14, 0 }
  0xa2   : > { %5595 = dma.done.wait (%p6728_p11), [#allocation7], 10240  }
  0xa3   : > { %5597 = vsyncadd (%p6728_p11), [#allocation7], 4294957056 }
  0xa4   : > { %5599 = dma.done.wait (%p6728_p11), [#allocation10], 1024  }
  0xa5   : > { %5601 = vsyncadd (%p6728_p11), [#allocation10], 4294966272  ;;  %s352_s3 = sand.u32 1, %s5612_s25   ;;  %vm746_vm0 = vcmask 1043459   ;;  %vm747_vm1 = vsmask.f32 7950 }
  0xa6   : > { %s5977_s16 = sshll.u32 %s352_s3, 7  ;;  %s4216_s19 = sshll.u32 %s5632_s30, 7  ;;  %vm5980_vm2 = vmand %vm746_vm0, %vm747_vm1  ;;  %vm779_vm3 = vcmask 1040384   ;;  %vm780_vm4 = vsmask.f32 256  ;;  %v5209_v8 = vld [vmem:[#allocation6] sm:$0xff]  }
  0xa7   : > { %s5986_s14 = sshra.s32 %s4216_s19, 3  ;;  %v749_v1 = vld [vmem:[#allocation2 + $0x4] sm:$0x8]  ;;  %v752_v2 = vld [vmem:[#allocation2 + $0x18] sm:$0x8]  ;;  %v5210_v12 = vld [vmem:[#allocation6 + $0x8] sm:$0xff]   ;;  %4807 = vmatprep.subr.bf16.mxu0 %v5209_v8  ;;  %4971 = vmatprep.subr.bf16.mxu1 %v5209_v8 }
  0xa8   : > { %v755_v3 = vld [vmem:[#allocation2 + $0x2c] sm:$0x8]  ;;  %v750_v4 = vsel %vm5980_vm2, 0, %v749_v1  ;;  %v753_v5 = vsel %vm5980_vm2, 0, %v752_v2  ;;  %v758_v7 = vld [vmem:[#allocation2 + $0x40] sm:$0x8]  ;;  %vm6002_vm5 = vmand %vm779_vm3, %vm780_vm4  ;;  %4808 = vmatpush3.bf16.msra.mxu0 %v5209_v8  ;;  %4979 = vmatpush3.bf16.msra.mxu1 %v5209_v8 }
  0xa9   : > { %v756_v6 = vsel %vm5980_vm2, 0, %v755_v3  ;;  %751 = vst [vmem:[#allocation2 + $0x4] sm:$0x8] %v750_v4  ;;  %754 = vst [vmem:[#allocation2 + $0x18] sm:$0x8] %v753_v5  ;;  %v759_v9 = vsel %vm5980_vm2, 0, %v758_v7  ;;  %4809 = vmatprep.subr.bf16.mxu0 %v5210_v12  ;;  %4972 = vmatprep.subr.bf16.mxu1 %v5210_v12 }
  0xaa   : > { %757 = vst [vmem:[#allocation2 + $0x2c] sm:$0x8] %v756_v6  ;;  %v761_v10 = vld [vmem:[#allocation2 + $0x54] sm:$0x8]  ;;  %v764_v11 = vld [vmem:[#allocation2 + $0x68] sm:$0x8] }
  0xab   : > { %760 = vst [vmem:[#allocation2 + $0x40] sm:$0x8] %v759_v9  ;;  %v762_v13 = vsel %vm5980_vm2, 0, %v761_v10  ;;  %v765_v14 = vsel %vm5980_vm2, 0, %v764_v11  ;;  %v767_v15 = vld [vmem:[#allocation2 + $0x7c] sm:$0x8] }
  0xac   : > { %v770_v16 = vld [vmem:[#allocation2 + $0x90] sm:$0x8]  ;;  %763 = vst [vmem:[#allocation2 + $0x54] sm:$0x8] %v762_v13  ;;  %766 = vst [vmem:[#allocation2 + $0x68] sm:$0x8] %v765_v14  ;;  %4810 = vmatpush3.bf16.msra.mxu0 %v5210_v12  ;;  %4980 = vmatpush3.bf16.msra.mxu1 %v5210_v12 }
  0xad   : > { %v768_v18 = vsel %vm5980_vm2, 0, %v767_v15  ;;  %v771_v19 = vsel %vm5980_vm2, 0, %v770_v16  ;;  %v773_v20 = vld [vmem:[#allocation2 + $0xa4] sm:$0x8]  ;;  %v776_v21 = vld [vmem:[#allocation2 + $0xb8] sm:$0x8] }
  0xae   : > { %769 = vst [vmem:[#allocation2 + $0x7c] sm:$0x8] %v768_v18  ;;  %772 = vst [vmem:[#allocation2 + $0x90] sm:$0x8] %v771_v19  ;;  %v774_v22 = vsel %vm5980_vm2, 0, %v773_v20  ;;  %v777_v23 = vsel %vm5980_vm2, 0, %v776_v21 }
  0xaf   : > { %v782_v24 = vld [vmem:[#allocation2 + $0x10] sm:$0x1]  ;;  %v785_v25 = vld [vmem:[#allocation2 + $0x24] sm:$0x1]  ;;  %775 = vst [vmem:[#allocation2 + $0xa4] sm:$0x8] %v774_v22 }
  0xb0   : > { %778 = vst [vmem:[#allocation2 + $0xb8] sm:$0x8] %v777_v23  ;;  %v783_v26 = vsel %vm6002_vm5, 0, %v782_v24  ;;  %v786_v27 = vsel %vm6002_vm5, 0, %v785_v25  ;;  %v788_v28 = vld [vmem:[#allocation2 + $0x38] sm:$0x1] }
  0xb1   : > { %v791_v29 = vld [vmem:[#allocation2 + $0x4c] sm:$0x1]  ;;  %784 = vst [vmem:[#allocation2 + $0x10] sm:$0x1] %v783_v26  ;;  %787 = vst [vmem:[#allocation2 + $0x24] sm:$0x1] %v786_v27 }
  0xb2   : > { %v789_v30 = vsel %vm6002_vm5, 0, %v788_v28  ;;  %v792_v31 = vsel %vm6002_vm5, 0, %v791_v29  ;;  %v794_v32 = vld [vmem:[#allocation2 + $0x60] sm:$0x1]  ;;  %v797_v33 = vld [vmem:[#allocation2 + $0x74] sm:$0x1] }
  0xb3   : > { %790 = vst [vmem:[#allocation2 + $0x38] sm:$0x1] %v789_v30  ;;  %793 = vst [vmem:[#allocation2 + $0x4c] sm:$0x1] %v792_v31  ;;  %v795_v34 = vsel %vm6002_vm5, 0, %v794_v32  ;;  %v798_v35 = vsel %vm6002_vm5, 0, %v797_v33 }
  0xb4   : > { %v800_v36 = vld [vmem:[#allocation2 + $0x88] sm:$0x1]  ;;  %v803_v37 = vld [vmem:[#allocation2 + $0x9c] sm:$0x1]  ;;  %796 = vst [vmem:[#allocation2 + $0x60] sm:$0x1] %v795_v34 }
  0xb5   : > { %799 = vst [vmem:[#allocation2 + $0x74] sm:$0x1] %v798_v35  ;;  %v801_v38 = vsel %vm6002_vm5, 0, %v800_v36  ;;  %v804_v39 = vsel %vm6002_vm5, 0, %v803_v37  ;;  %v806_v40 = vld [vmem:[#allocation2 + $0xb0] sm:$0x1] }
  0xb6   : > { %v809_v41 = vld [vmem:[#allocation2 + $0xc4] sm:$0x1]  ;;  %802 = vst [vmem:[#allocation2 + $0x88] sm:$0x1] %v801_v38  ;;  %805 = vst [vmem:[#allocation2 + $0x9c] sm:$0x1] %v804_v39 }
  0xb7   : > { %v807_v42 = vsel %vm6002_vm5, 0, %v806_v40  ;;  %v810_v43 = vsel %vm6002_vm5, 0, %v809_v41  ;;  %v5211_v44 = vld [vmem:[#allocation6 + $0x10] sm:$0xff]   ;;  %s4217_s15 = sshll.u32 %s5986_s14, 2  ;;  %v5212_v45 = vld [vmem:[#allocation6 + $0x18] sm:$0xff]   ;;  %v5213_v46 = vld [vmem:[#allocation6 + $0x20] sm:$0xff]  }
  0xb8   : > { %808 = vst [vmem:[#allocation2 + $0xb0] sm:$0x1] %v807_v42  ;;  %811 = vst [vmem:[#allocation2 + $0xc4] sm:$0x1] %v810_v43  ;;  %4811 = vmatprep.subr.bf16.mxu0 %v5211_v44  ;;  %4973 = vmatprep.subr.bf16.mxu1 %v5211_v44  ;;  %s6037_s4 = scalar_lea.vmem %s312_s23, %s4217_s15 [#allocation3]  ;;  %v5214_v48 = vld [vmem:[#allocation6 + $0x28] sm:$0xff]   ;;  %v5215_v49 = vld [vmem:[#allocation6 + $0x30] sm:$0xff]  }
  0xb9   : > { %4812 = vmatpush3.bf16.msra.mxu0 %v5211_v44  ;;  %4981 = vmatpush3.bf16.msra.mxu1 %v5211_v44  ;;  %v5217_v47 = vld [vmem:[%s6037_s4] sm:$0xff]   ;;  %v5218_v52 = vld [vmem:[%s6037_s4 + $0x8] sm:$0xff]   ;;  %v5219_v54 = vld [vmem:[%s6037_s4 + $0x10] sm:$0xff]   ;;  %s6733_s12 = sld [smem:[#allocation21_spill]]  ;;  %s6075_s21 = scalar_lea.vmem [#allocation11], %s5977_s16 }
  0xba   : > { %4813 = vmatprep.subr.bf16.mxu0 %v5212_v45  ;;  %4974 = vmatprep.subr.bf16.mxu1 %v5212_v45  ;;  %v5223_v50 = vld [vmem:[%s6037_s4 + $0x40] sm:$0xff]   ;;  %v5224_v53 = vld [vmem:[%s6037_s4 + $0x48] sm:$0xff]   ;;  %v5220_v55 = vld [vmem:[%s6037_s4 + $0x18] sm:$0xff]   ;;  %p4257_p10 = scmp.ne.s32.totalorder %s5632_s30, 0 }
  0xbb   : > { %4823 = vmatprep.mubr.bf16.mxu0 %v5217_v47  ;;  %4839 = vmatprep.mubr.bf16.mxu1 %v5223_v50  ;;  %v5216_v51 = vld [vmem:[#allocation6 + $0x38] sm:$0xff]   ;;  %v5222_v57 = vld [vmem:[%s6037_s4 + $0x28] sm:$0xff]   ;;  %v5225_v58 = vld [vmem:[%s6037_s4 + $0x30] sm:$0xff]  }
  0xbc   : > { %v5221_v56 = vld [vmem:[%s6037_s4 + $0x20] sm:$0xff]   ;;  %v5226_v59 = vld [vmem:[%s6037_s4 + $0x38] sm:$0xff]  }
  0xbd   : > { %4814 = vmatpush3.bf16.msra.mxu0 %v5212_v45  ;;  %4982 = vmatpush3.bf16.msra.mxu1 %v5212_v45 }
  0xbe   : > { %4815 = vmatprep.subr.bf16.mxu0 %v5213_v46  ;;  %4975 = vmatprep.subr.bf16.mxu1 %v5213_v46 }
  0xbf   : > { %v6052_v60 = vld [vmem:[%s6733_s12] ss:$0 sm:$0xff] }
  0xc1   : > { %4816 = vmatpush3.bf16.msra.mxu0 %v5213_v46  ;;  %4983 = vmatpush3.bf16.msra.mxu1 %v5213_v46 }
  0xc2   : > { %4817 = vmatprep.subr.bf16.mxu0 %v5214_v48  ;;  %4976 = vmatprep.subr.bf16.mxu1 %v5214_v48 }
  0xc5   : > { %4818 = vmatpush3.bf16.msra.mxu0 %v5214_v48  ;;  %4984 = vmatpush3.bf16.msra.mxu1 %v5214_v48 }
  0xc6   : > { %4819 = vmatprep.subr.bf16.mxu0 %v5215_v49  ;;  %4977 = vmatprep.subr.bf16.mxu1 %v5215_v49 }
  0xc9   : > { %4820 = vmatpush3.bf16.msra.mxu0 %v5215_v49  ;;  %4985 = vmatpush3.bf16.msra.mxu1 %v5215_v49 }
  0xca   : > { %4821 = vmatprep.subr.bf16.mxu0 %v5216_v51  ;;  %4978 = vmatprep.subr.bf16.mxu1 %v5216_v51 }
  0xcd   : > { %4822 = vmatpush3.bf16.msra.mxu0 %v5216_v51  ;;  %4986 = vmatpush3.bf16.msra.mxu1 %v5216_v51 }
  0xd0   : > { %4824 = vmatmul.mubr.bf16.vlgmr.msra.gmra.mrb[0].mxu0 %v5218_v52  ;;  %4840 = vmatmul.mubr.bf16.vlgmr.msra.gmra.mrb[0].mxu1 %v5224_v53 }
  0xd1   : > { %4827 = vmatprep.mubr.bf16.mxu0 %v5219_v54 }
  0xd8   : > { %4828 = vmatmul.mubr.bf16.gmra.mrb[4].mxu0 %v5220_v55 }
  0xd9   : > { %4831 = vmatprep.mubr.bf16.mxu0 %v5221_v56 }
  0xe0   : > { %4832 = vmatmul.mubr.bf16.gmra.mrb[8].mxu0 %v5222_v57 }
  0xe1   : > { %4835 = vmatprep.mubr.bf16.mxu0 %v5225_v58 }
  0xe8   : > { %4836 = vmatmul.mubr.bf16.gmra.mrb[12].mxu0 %v5226_v59 }
 0x1a3   : > { %v4825_v61 = vpop.f32.mrb[0].mxu0  ;;  %v4841_v62 = vpop.f32.mrb[0].mxu1 }
 0x1a4   : > { %v556_v63 = vadd.f32 %v4825_v61, %v6052_v60  ;;  %v547_v0 = vpop.f32.mrb[1].mxu0  ;;  %v620_v1 = vadd.f32 %v4841_v62, %v6052_v60  ;;  %v611_v2 = vpop.f32.mrb[1].mxu1 }
 0x1a5   : > { %v548_v3 = vadd.f32 %v6052_v60, %v547_v0  ;;  %v4826_v4 = vpop.f32.mrb[2].mxu0  ;;  %v612_v5 = vadd.f32 %v6052_v60, %v611_v2  ;;  %v4842_v6 = vpop.f32.mrb[2].mxu1 }
 0x1a6   : > { %v628_v7 = vmax.f32 %v556_v63, 0.0  ;;  %v559_v8 = vadd.f32 %v4826_v4, %v6052_v60  ;;  %v550_v9 = vpop.f32.mrb[3].mxu0  ;;  %v644_v10 = vmax.f32 %v620_v1, 0.0  ;;  %v623_v11 = vadd.f32 %v4842_v6, %v6052_v60  ;;  %v614_v12 = vpop.f32.mrb[3].mxu1 }
 0x1a7   : > { %v551_v13 = vadd.f32 %v6052_v60, %v550_v9  ;;  %v642_v14 = vmax.f32 %v612_v5, 0.0  ;;  %v615_v15 = vadd.f32 %v6052_v60, %v614_v12  ;;  %v626_v21 = vmax.f32 %v548_v3, 0.0 }
 0x1a8   : > { %v4446_v16 = vpack.c.bf16 %v628_v7, %v628_v7  ;;  %v629_v18 = vmax.f32 %v559_v8, 0.0  ;;  %v4462_v19 = vpack.c.bf16 %v644_v10, %v644_v10  ;;  %v645_v20 = vmax.f32 %v623_v11, 0.0  ;;  %v820_v10 = vld [vmem:[#allocation2 + $0x10] sm:$0x1] (!%p4257_p10) }
 0x1a9   : > { %v627_v22 = vmax.f32 %v551_v13, 0.0  ;;  %v643_v23 = vmax.f32 %v615_v15, 0.0  ;;  %v5656_v11 = vmov (!%p4257_p10), 0  }
 0x1aa   : > { %728 = vst [vmem:[#allocation2 + $0x1c] sm:$0xf] %v4446_v16  ;;  %v4447_v24 = vpack.c.bf16 %v629_v18, %v629_v18  ;;  %744 = vst [vmem:[#allocation2 + $0xbc] sm:$0xf] %v4462_v19  ;;  %v4463_v25 = vpack.c.bf16 %v645_v20, %v645_v20 }
 0x1ab   : > { %v4467_v26 = vpack.c.bf16 %v627_v22, %v626_v21  ;;  %v4829_v27 = vpop.f32.mrb[4].mxu0  ;;  %v4487_v28 = vpack.c.bf16 %v643_v23, %v642_v14  ;;  %817 = vst [vmem:[#allocation2 + $0x4] sm:$0xf] (!%p4257_p10), %v5656_v11 }
 0x1ac   : > { %729 = vst [vmem:[#allocation2 + $0x20] sm:$0xf] %v4447_v24  ;;  %v572_v29 = vadd.f32 %v4829_v27, %v6052_v60  ;;  %v563_v30 = vpop.f32.mrb[5].mxu0  ;;  %745 = vst [vmem:[#allocation2 + $0xc0] sm:$0xf] %v4463_v25 }
 0x1ad   : > { %4521 = vst [vmem:[#allocation2 + $0x8] sm:$0xff] %v4467_v26   ;;  %v564_v31 = vadd.f32 %v6052_v60, %v563_v30  ;;  %v4830_v32 = vpop.f32.mrb[6].mxu0  ;;  %4525 = vst [vmem:[#allocation2 + $0xa8] sm:$0xff] %v4487_v28  }
 0x1ae   : > { %v632_v33 = vmax.f32 %v572_v29, 0.0  ;;  %v575_v34 = vadd.f32 %v4830_v32, %v6052_v60  ;;  %v566_v35 = vpop.f32.mrb[7].mxu0  ;;  %818 = vst [vmem:[#allocation2 + $0x8] sm:$0xf] (!%p4257_p10), %v5656_v11  ;;  %819 = vst [vmem:[#allocation2 + $0xc] sm:$0xf] (!%p4257_p10), %v5656_v11 }
 0x1af   : > { %v567_v36 = vadd.f32 %v6052_v60, %v566_v35  ;;  %v630_v39 = vmax.f32 %v564_v31, 0.0 }
 0x1b0   : > { %v4450_v37 = vpack.c.bf16 %v632_v33, %v632_v33  ;;  %v633_v38 = vmax.f32 %v575_v34, 0.0 }
 0x1b1   : > { %v631_v40 = vmax.f32 %v567_v36, 0.0 }
 0x1b2   : > { %732 = vst [vmem:[#allocation2 + $0x44] sm:$0xf] %v4450_v37  ;;  %v4451_v41 = vpack.c.bf16 %v633_v38, %v633_v38 }
 0x1b3   : > { %v4472_v42 = vpack.c.bf16 %v631_v40, %v630_v39  ;;  %v4833_v43 = vpop.f32.mrb[8].mxu0 }
 0x1b4   : > { %733 = vst [vmem:[#allocation2 + $0x48] sm:$0xf] %v4451_v41  ;;  %v588_v44 = vadd.f32 %v4833_v43, %v6052_v60  ;;  %v579_v45 = vpop.f32.mrb[9].mxu0 }
 0x1b5   : > { %4522 = vst [vmem:[#allocation2 + $0x30] sm:$0xff] %v4472_v42   ;;  %v580_v46 = vadd.f32 %v6052_v60, %v579_v45  ;;  %v4834_v47 = vpop.f32.mrb[10].mxu0 }
 0x1b6   : > { %v636_v48 = vmax.f32 %v588_v44, 0.0  ;;  %v591_v49 = vadd.f32 %v4834_v47, %v6052_v60  ;;  %v582_v50 = vpop.f32.mrb[11].mxu0 }
 0x1b7   : > { %v583_v51 = vadd.f32 %v6052_v60, %v582_v50  ;;  %v634_v54 = vmax.f32 %v580_v46, 0.0 }
 0x1b8   : > { %v4454_v52 = vpack.c.bf16 %v636_v48, %v636_v48  ;;  %v637_v53 = vmax.f32 %v591_v49, 0.0 }
 0x1b9   : > { %v635_v55 = vmax.f32 %v583_v51, 0.0 }
 0x1ba   : > { %736 = vst [vmem:[#allocation2 + $0x6c] sm:$0xf] %v4454_v52  ;;  %v4455_v56 = vpack.c.bf16 %v637_v53, %v637_v53 }
 0x1bb   : > { %v4477_v57 = vpack.c.bf16 %v635_v55, %v634_v54  ;;  %v4837_v58 = vpop.f32.mrb[12].mxu0 }
 0x1bc   : > { %737 = vst [vmem:[#allocation2 + $0x70] sm:$0xf] %v4455_v56  ;;  %v604_v59 = vadd.f32 %v4837_v58, %v6052_v60  ;;  %v595_v61 = vpop.f32.mrb[13].mxu0 }
 0x1bd   : > { %4523 = vst [vmem:[#allocation2 + $0x58] sm:$0xff] %v4477_v57   ;;  %v596_v62 = vadd.f32 %v6052_v60, %v595_v61  ;;  %v4838_v63 = vpop.f32.mrb[14].mxu0 }
 0x1be   : > { %v640_v0 = vmax.f32 %v604_v59, 0.0  ;;  %v607_v1 = vadd.f32 %v4838_v63, %v6052_v60  ;;  %v598_v2 = vpop.f32.mrb[15].mxu0 }
 0x1bf   : > { %v599_v3 = vadd.f32 %v6052_v60, %v598_v2  ;;  %v638_v6 = vmax.f32 %v596_v62, 0.0  ;;  %815 = sbr.rel (%p4257_p10) target bundleno = 454 (0x1c6), region = 68  ;;  %v821_v60 = vsel (!%p4257_p10), %vm6002_vm5, 0, %v820_v10 }
 0x1c0   : > { %v4458_v4 = vpack.c.bf16 %v640_v0, %v640_v0  ;;  %v641_v5 = vmax.f32 %v607_v1, 0.0  ;;  %822 = vst [vmem:[#allocation2 + $0x10] sm:$0x1] (!%p4257_p10), %v821_v60 }
 0x1c1   : > { %v639_v7 = vmax.f32 %v599_v3, 0.0 }
 0x1c2   : > { %740 = vst [vmem:[#allocation2 + $0x94] sm:$0xf] %v4458_v4  ;;  %v4459_v8 = vpack.c.bf16 %v641_v5, %v641_v5 }
 0x1c3   : > { %v4482_v9 = vpack.c.bf16 %v639_v7, %v638_v6 }
 0x1c4   : > { %741 = vst [vmem:[#allocation2 + $0x98] sm:$0xf] %v4459_v8 }
 0x1c5   : > { %4524 = vst [vmem:[#allocation2 + $0x80] sm:$0xff] %v4482_v9  }
 0x1c6 PF: > { %p4258_p2 = scmp.ne.s32.totalorder %s5632_s30, 1 }
 0x1c7   : > { %v832_v12 = vld [vmem:[#allocation2 + $0xc4] sm:$0x1] (!%p4258_p2)  ;;  %v5657_v13 = vmov (!%p4258_p2), 0  }
 0x1c8   : > { %826 = sbr.rel (%p4258_p2) target bundleno = 463 (0x1cf), region = 72  ;;  %829 = vst [vmem:[#allocation2 + $0xb8] sm:$0xf] (!%p4258_p2), %v5657_v13  ;;  %830 = vst [vmem:[#allocation2 + $0xbc] sm:$0xf] (!%p4258_p2), %v5657_v13  ;;  %v833_v14 = vsel (!%p4258_p2), %vm6002_vm5, 0, %v832_v12 }
 0x1c9   : > { %831 = vst [vmem:[#allocation2 + $0xc0] sm:$0xf] (!%p4258_p2), %v5657_v13  ;;  %834 = vst [vmem:[#allocation2 + $0xc4] sm:$0x1] (!%p4258_p2), %v833_v14 }
 0x1cf PF: > { %v5227_v15 = vld [vmem:[#allocation8 + $0x100] sm:$0xff]   ;;  %v5230_v19 = vld [vmem:[#allocation8 + $0x108] sm:$0xff]   ;;  %v5233_v22 = vld [vmem:[#allocation8 + $0x110] sm:$0xff]   ;;  %vm1027_vm6 = vcmask 1042432   ;;  %vm1052_vm7 = vsmask.f32 4352 }
 0x1d0   : > { %v5228_v16 = vld [vmem:[#allocation8 + $0x140] sm:$0xff]   ;;  %4551 = vmatprep.subr.bf16.mxu1 %v5227_v15  ;;  %v5231_v20 = vld [vmem:[#allocation8 + $0x148] sm:$0xff]   ;;  %v5234_v23 = vld [vmem:[#allocation8 + $0x150] sm:$0xff]   ;;  %s6734_s1 = sld [smem:[#allocation23_spill]]  ;;  %s3830_s18 = sadd.s32 16, %s4216_s19 }
 0x1d1   : > { %v5229_v18 = vld [vmem:[#allocation8 + $0xc0] sm:$0xff]   ;;  %4843 = vmatprep.subr.bf16.mxu0 %v5228_v16  ;;  %v5232_v21 = vld [vmem:[#allocation8 + $0xc8] sm:$0xff]   ;;  %v5235_v17 = vld [vmem:[#allocation8 + $0xd0] sm:$0xff]   ;;  %s3831_s20 = sshra.s32 %s3830_s18, 3  ;;  %s6735_s6 = sld [smem:[#allocation24_spill]] }
 0x1d2   : > { %4552 = vmatpush3.bf16.msra.mxu1 %v5229_v18  ;;  %4844 = vmatpush3.bf16.msra.mxu0 %v5228_v16  ;;  %v5236_v24 = vld [vmem:[#allocation8 + $0x118] sm:$0xff]   ;;  %v5239_v27 = vld [vmem:[#allocation8 + $0x120] sm:$0xff]   ;;  %v5242_v30 = vld [vmem:[#allocation8 + $0x128] sm:$0xff]   ;;  %s4428_s16 = sshll.u32 %s3831_s20, 2  ;;  %s6736_s13 = sld [smem:[#allocation17_spill]] }
 0x1d3   : > { %4553 = vmatprep.subr.bf16.mxu1 %v5230_v19  ;;  %4845 = vmatprep.subr.bf16.mxu0 %v5231_v20  ;;  %v5237_v25 = vld [vmem:[#allocation8 + $0x158] sm:$0xff]   ;;  %v5240_v28 = vld [vmem:[#allocation8 + $0x160] sm:$0xff]   ;;  %v5243_v31 = vld [vmem:[#allocation8 + $0x168] sm:$0xff]   ;;  %s6562_s14 = scalar_lea.vmem %s312_s23, %s4428_s16 [#allocation3]  ;;  %s4439_s23 = sshll.u32 %s5632_s30, 4 }
 0x1d4   : > { %v5238_v26 = vld [vmem:[#allocation8 + $0xd8] sm:$0xff]   ;;  %v5241_v29 = vld [vmem:[#allocation8 + $0xe0] sm:$0xff]   ;;  %v5244_v32 = vld [vmem:[#allocation8 + $0xe8] sm:$0xff]   ;;  %s4083_s12 = sshll.u32 %s6075_s21, 4  ;;  %s6737_s2 = sld [smem:[#allocation18_spill]]  ;;  %s6614_s12 = int_to_ptr.vmem [resolvable:$true] %s4083_s12 }
 0x1d5   : > { %v5245_v33 = vld [vmem:[#allocation8 + $0x130] sm:$0xff]   ;;  %v5248_v36 = vld [vmem:[#allocation8 + $0x138] sm:$0xff]   ;;  %v6083_v44 = vld [vmem:[#allocation2 + $0x30] sm:$0xf]  ;;  %s6738_s18 = sld [smem:[#allocation25_spill]]  ;;  %s6621_s16 = scalar_lea.sflag [#allocation5], %s352_s3 }
 0x1d6   : > { %4554 = vmatpush3.bf16.msra.mxu1 %v5232_v21  ;;  %4846 = vmatpush3.bf16.msra.mxu0 %v5231_v20  ;;  %v5246_v34 = vld [vmem:[#allocation8 + $0x170] sm:$0xff]   ;;  %v1472_v38 = vld [vmem:[#allocation2 + $0x20] sm:$0xf]  ;;  %v5252_v41 = vld [vmem:[#allocation2 + $0x24] ss:$0 sps:$4 sm:$0x11]  }
 0x1d7   : > { %4555 = vmatprep.subr.bf16.mxu1 %v5233_v22  ;;  %4847 = vmatprep.subr.bf16.mxu0 %v5234_v23  ;;  %v5247_v35 = vld [vmem:[#allocation8 + $0xf0] sm:$0xff]   ;;  %v5249_v39 = vld [vmem:[#allocation8 + $0x178] sm:$0xff]   ;;  %v4292_v42 = vcombine.low %v1472_v38, %v1472_v38  ;;  %v6085_v45 = vld [vmem:[#allocation2 + $0x34] sm:$0xf]  ;;  %v1663_v49 = vrot.slane %v5252_v41, 5  ;;  %s5658_s15 = smov [#allocation11]  }
 0x1d8   : > { %v1471_v37 = vld [vmem:[#allocation2 + $0x1c] sm:$0xf]  ;;  %v1470_v43 = vld [vmem:[#allocation2 + $0x18] sm:$0x8]  ;;  %v5250_v50 = vld [vmem:[#allocation8 + $0xf8] sm:$0xff]   ;;  %v6089_v54 = vcombine.low %v6083_v44, %v6085_v45  ;;  %s4440_s19 = sshll.u32 %s6736_s13, 5 }
 0x1d9   : > { %v4307_v40 = vcombine.low %v1471_v37, %v1472_v38  ;;  %v4291_v51 = vcombine.low %v1470_v43, %v1471_v37  ;;  %v1695_v52 = vshrl.u32 %v4292_v42, 16  ;;  %v1698_v53 = vshll.u32 %v4292_v42, 16  ;;  %v5256_v55 = vld [vmem:[#allocation2 + $0x38] ss:$0 sps:$4 sm:$0x11]   ;;  %v6092_v61 = vld [vmem:[#allocation8 + $0x80] sm:$0xff]   ;;  %s4080_s8 = sadd.s32 %s4440_s19, %s4439_s23 }
 0x1da   : > { %4556 = vmatpush3.bf16.msra.mxu1 %v5235_v17  ;;  %4848 = vmatpush3.bf16.msra.mxu0 %v5234_v23  ;;  %v1665_v15 = vrot.slane %v6089_v54, 5  ;;  %v1666_v16 = vrot.slane %v5256_v55, 5  ;;  %v6096_v18 = vld [vmem:[#allocation2 + $0x44] sm:$0xf]  ;;  %v6098_v19 = vld [vmem:[#allocation2 + $0x48] sm:$0xf] }
 0x1db   : > { %4557 = vmatprep.subr.bf16.mxu1 %v5236_v24  ;;  %4849 = vmatprep.subr.bf16.mxu0 %v5237_v25  ;;  %v1575_v46 = vshrl.u32 %v4307_v40, 16  ;;  %v1578_v47 = vshll.u32 %v4307_v40, 16  ;;  %v1662_v48 = vrot.slane %v4307_v40, 5  ;;  %v1687_v1 = vshrl.u32 %v4291_v51, 16  ;;  %s4441_s30 = sshll.u32 %s4080_s8, 7  ;;  %p6739_p5 = scmp.ne.s32.totalorder %s6737_s2, 0 }
 0x1dc   : > { %v1690_v4 = vshll.u32 %v4291_v51, 16  ;;  %v1697_v5 = vrot.slane %v1695_v52, 3  ;;  %v1700_v12 = vrot.slane %v1698_v53, 4  ;;  %v5260_v17 = vld [vmem:[#allocation2 + $0x4c] ss:$0 sps:$4 sm:$0x11]   ;;  %v6111_v41 = vcombine.low %v6096_v18, %v6098_v19  ;;  %s6612_s20 = scalar_lea.hbm %s6738_s18, %s4441_s30 }
 0x1dd   : > { %v1577_v56 = vrot.slane %v1575_v46, 4  ;;  %v1580_v57 = vrot.slane %v1578_v47, 5  ;;  %v1664_v58 = vsel %vm1027_vm6, %v1662_v48, %v1663_v49  ;;  %v1713_v59 = vshrl.u32 %v1662_v48, 16  ;;  %v5264_v43 = vld [vmem:[#allocation2 + $0x60] ss:$0 sps:$4 sm:$0x11]  }
 0x1de   : > { %4558 = vmatpush3.bf16.msra.mxu1 %v5238_v26  ;;  %4850 = vmatpush3.bf16.msra.mxu0 %v5237_v25  ;;  %v1716_v62 = vshll.u32 %v1662_v48, 16  ;;  %v1721_v63 = vshrl.u32 %v1664_v58, 16  ;;  %v1724_v0 = vshll.u32 %v1664_v58, 16  ;;  %v1689_v9 = vrot.slane %v1687_v1, 3  ;;  %s5522_s4 = sshll.u32 %s5658_s15, 4  ;;  %s5523_s4 = int_to_ptr.vmem [resolvable:$false] %s5522_s4 }
 0x1df   : > { %4559 = vmatprep.subr.bf16.mxu1 %v5239_v27  ;;  %4851 = vmatprep.subr.bf16.mxu0 %v5240_v28  ;;  %v1581_v2 = vor.u32 %v1580_v57, %v1577_v56  ;;  %v1715_v3 = vrot.slane %v1713_v59, 3  ;;  %v1692_v60 = vrot.slane %v1690_v4, 4  ;;  %v1701_v23 = vor.u32 %v1700_v12, %v1697_v5  ;;  %v6123_v4 = vld [vmem:[#allocation2 + $0x6c] sm:$0xf]  ;;  %p5525_p8 = scmp.lt.s32.totalorder %s6614_s12, %s5523_s4 }
 0x1e0   : > { %v1718_v6 = vrot.slane %v1716_v62, 4  ;;  %v1723_v7 = vrot.slane %v1721_v63, 3  ;;  %v1726_v8 = vrot.slane %v1724_v0, 4  ;;  %v1667_v25 = vsel %vm1027_vm6, %v1665_v15, %v1666_v16 }
 0x1e1   : > { %v1704_v10 = vshrl.u32 %v1581_v2, 16  ;;  %v1707_v11 = vshll.u32 %v1581_v2, 16  ;;  %v1693_v22 = vor.u32 %v1692_v60, %v1689_v9  ;;  %v1756_v26 = vshrl.u32 %v1665_v15, 16  ;;  %v6126_v9 = vld [vmem:[#allocation2 + $0x70] sm:$0xf] }
 0x1e2   : > { %4560 = vmatpush3.bf16.msra.mxu1 %v5241_v29  ;;  %4852 = vmatpush3.bf16.msra.mxu0 %v5240_v28  ;;  %v1719_v13 = vor.u32 %v1718_v6, %v1715_v3  ;;  %v1727_v14 = vor.u32 %v1726_v8, %v1723_v7  ;;  %v1759_v27 = vshll.u32 %v1665_v15, 16  ;;  %v1473_v28 = vld [vmem:[#allocation2 + $0x2c] sm:$0x8]  ;;  %v6102_v29 = vld [vmem:[#allocation2 + $0x58] sm:$0xf]  ;;  %v1583_v37 = vshrl.u32 %v6089_v54, 16 }
 0x1e3   : > { %4561 = vmatprep.subr.bf16.mxu1 %v5242_v30  ;;  %4853 = vmatprep.subr.bf16.mxu0 %v5243_v31  ;;  %v1706_v20 = vrot.slane %v1704_v10, 3  ;;  %v1709_v21 = vrot.slane %v1707_v11, 4  ;;  %v1586_v38 = vshll.u32 %v6089_v54, 16  ;;  %v1669_v42 = vrot.slane %v5260_v17, 5  ;;  %v5258_v54 = vld [vmem:[#allocation8 + $0x88] sm:$0xff]   ;;  %v5265_v3 = vld [vmem:[#allocation8 + $0x90] sm:$0xff]  }
 0x1e4   : > { %v1728_v24 = vsel %vm1052_vm7, %v1719_v13, %v1727_v14  ;;  %v1585_v47 = vrot.slane %v1583_v37, 4  ;;  %v4293_v49 = vcombine.low %v1473_v28, %v6083_v44  ;;  %v1668_v51 = vrot.slane %v6111_v41, 5  ;;  %v5268_v17 = vld [vmem:[#allocation2 + $0x74] ss:$0 sps:$4 sm:$0x11]  }
 0x1e5   : > { %v1710_v30 = vor.u32 %v1709_v21, %v1706_v20  ;;  %4859 = vmatprep.mubr.bf16.mxu0 %v1728_v24  ;;  %v1588_v48 = vrot.slane %v1586_v38, 5  ;;  %v4294_v52 = vcombine.low %v6085_v45, %v6085_v45  ;;  %v1672_v58 = vrot.slane %v5264_v43, 5  ;;  %v5282_v20 = vld [vmem:[#allocation8 + $0x40] sm:$0xff]  }
 0x1e6   : > { %4562 = vmatpush3.bf16.msra.mxu1 %v5244_v32  ;;  %4854 = vmatpush3.bf16.msra.mxu0 %v5243_v31  ;;  %v1702_v31 = vsel %vm1052_vm7, %v1693_v22, %v1701_v23  ;;  %v1764_v32 = vshrl.u32 %v1667_v25, 16  ;;  %v1730_v56 = vshrl.u32 %v4293_v49, 16  ;;  %v1733_v57 = vshll.u32 %v4293_v49, 16  ;;  %v5283_v24 = vld [vmem:[#allocation8] sm:$0xff]  }
 0x1e7   : > { %4563 = vmatprep.subr.bf16.mxu1 %v5245_v33  ;;  %4855 = vmatprep.subr.bf16.mxu0 %v5246_v34  ;;  %v1767_v33 = vshll.u32 %v1667_v25, 16  ;;  %v1589_v55 = vor.u32 %v1588_v48, %v1585_v47  ;;  %v1670_v62 = vsel %vm1027_vm6, %v1668_v51, %v1669_v42  ;;  %v1799_v44 = vshrl.u32 %v1668_v51, 16 }
 0x1e8   : > { %2279 = vmatprep.mubr.bf16.mxu1 %v1710_v30  ;;  %v1802_v63 = vshll.u32 %v1668_v51, 16  ;;  %v1807_v2 = vshrl.u32 %v1670_v62, 16  ;;  %v1810_v45 = vshll.u32 %v1670_v62, 16  ;;  %v1732_v7 = vrot.slane %v1730_v56, 3  ;;  %v5273_v56 = vld [vmem:[#allocation8 + $0xa0] sm:$0xff]  }
 0x1e9   : > { %v1769_v40 = vrot.slane %v1767_v33, 4  ;;  %v1747_v0 = vshrl.u32 %v1589_v55, 16  ;;  %v1750_v1 = vshll.u32 %v1589_v55, 16  ;;  %v1801_v5 = vrot.slane %v1799_v44, 3  ;;  %v6143_v44 = vld [vmem:[#allocation2 + $0x80] sm:$0xf] }
 0x1ea   : > { %4564 = vmatpush3.bf16.msra.mxu1 %v5247_v35  ;;  %4856 = vmatpush3.bf16.msra.mxu0 %v5246_v34  ;;  %v6105_v34 = vld [vmem:[#allocation2 + $0x5c] sm:$0xf]  ;;  %v1758_v35 = vrot.slane %v1756_v26, 3  ;;  %v1804_v6 = vrot.slane %v1802_v63, 4  ;;  %v1735_v8 = vrot.slane %v1733_v57, 4  ;;  %v1809_v60 = vrot.slane %v1807_v2, 3 }
 0x1eb   : > { %4565 = vmatprep.subr.bf16.mxu1 %v5248_v36  ;;  %4857 = vmatprep.subr.bf16.mxu0 %v5249_v39  ;;  %v1761_v36 = vrot.slane %v1759_v27, 4  ;;  %v6119_v53 = vcombine.low %v6102_v29, %v6105_v34  ;;  %v1749_v10 = vrot.slane %v1747_v0, 3  ;;  %v1752_v11 = vrot.slane %v1750_v1, 4  ;;  %v5266_v27 = vld [vmem:[#allocation8 + $0x98] sm:$0xff]   ;;  %v5293_v0 = vld [vmem:[#allocation8 + $0x48] sm:$0xff]  }
 0x1ec   : > { %v1812_v12 = vrot.slane %v1810_v45, 4  ;;  %v1805_v13 = vor.u32 %v1804_v6, %v1801_v5  ;;  %v1736_v14 = vor.u32 %v1735_v8, %v1732_v7  ;;  %v1738_v15 = vshrl.u32 %v4294_v52, 16  ;;  %v5272_v63 = vld [vmem:[#allocation2 + $0x88] ss:$0 sps:$4 sm:$0x11]   ;;  %v5274_v6 = vld [vmem:[#allocation8 + $0xa8] sm:$0xff]  }
 0x1ed   : > { %v1762_v46 = vor.u32 %v1761_v36, %v1758_v35  ;;  %v1741_v16 = vshll.u32 %v4294_v52, 16  ;;  %v1753_v21 = vor.u32 %v1752_v11, %v1749_v10  ;;  %v1591_v23 = vshrl.u32 %v6111_v41, 16  ;;  %v6145_v5 = vld [vmem:[#allocation2 + $0x84] sm:$0xf]  ;;  %v5294_v11 = vld [vmem:[#allocation8 + $0x8] sm:$0xff]  }
 0x1ee   : > { %4566 = vmatpush3.bf16.msra.mxu1 %v5250_v50  ;;  %4858 = vmatpush3.bf16.msra.mxu0 %v5249_v39  ;;  %v1766_v39 = vrot.slane %v1764_v32, 3  ;;  %v1813_v22 = vor.u32 %v1812_v12, %v1809_v60  ;;  %v1740_v25 = vrot.slane %v1738_v15, 3  ;;  %v1594_v28 = vshll.u32 %v6111_v41, 16  ;;  %v6150_v15 = vld [vmem:[#allocation2 + $0x98] sm:$0xf] }
 0x1ef   : > { %4875 = vmatprep.subr.bf16.mxu0 %v6092_v61  ;;  %v1743_v26 = vrot.slane %v1741_v16, 4  ;;  %v6133_v30 = vcombine.low %v6123_v4, %v6126_v9  ;;  %4631 = vmatprep.subr.bf16.mxu1 %v5282_v20  ;;  %v4296_v62 = vcombine.low %v6098_v19, %v6098_v19  ;;  %v5276_v16 = vld [vmem:[#allocation2 + $0x9c] ss:$0 sps:$4 sm:$0x11]  }
 0x1f0   : > { %v1770_v50 = vor.u32 %v1769_v40, %v1766_v39  ;;  %v1593_v39 = vrot.slane %v1591_v23, 4  ;;  %v1596_v42 = vrot.slane %v1594_v28, 5  ;;  %v1678_v28 = vrot.slane %v5272_v63, 5 }
 0x1f1   : > { %2280 = vmatmul.mubr.bf16.vlgmr.msra.gmra.mrb[4].mxu1 %v1702_v31  ;;  %v1814_v31 = vsel %vm1052_vm7, %v1805_v13, %v1813_v22  ;;  %v1744_v36 = vor.u32 %v1743_v26, %v1740_v25  ;;  %v1674_v43 = vrot.slane %v6133_v30, 5  ;;  %v6154_v25 = vcombine.low %v6143_v44, %v6145_v5 }
 0x1f2   : > { %v1771_v59 = vsel %vm1052_vm7, %v1762_v46, %v1770_v50  ;;  %2287 = vmatprep.mubr.bf16.mxu1 %v1753_v21  ;;  %4632 = vmatpush3.bf16.msra.mxu1 %v5283_v24  ;;  %v1476_v46 = vld [vmem:[#allocation2 + $0x40] sm:$0x8]  ;;  %v1675_v50 = vrot.slane %v5268_v17, 5  ;;  %v1597_v52 = vor.u32 %v1596_v42, %v1593_v39  ;;  %v1784_v24 = vshll.u32 %v4296_v62, 16 }
 0x1f3   : > { %4860 = vmatmul.mubr.bf16.vlgmr.msra.gmra.mrb[16].mxu0 %v1771_v59  ;;  %v1745_v47 = vsel %vm1052_vm7, %v1736_v14, %v1744_v36  ;;  %v1888_v55 = vshll.u32 %v1674_v43, 16  ;;  %v4295_v59 = vcombine.low %v1476_v46, %v6096_v18  ;;  %4633 = vmatprep.subr.bf16.mxu1 %v5293_v0  ;;  %v6148_v14 = vld [vmem:[#allocation2 + $0x94] sm:$0xf]  ;;  %v1677_v36 = vrot.slane %v6154_v25, 5  ;;  %v5301_v0 = vld [vmem:[#allocation8 + $0x50] sm:$0xff]  }
 0x1f4   : > { %4876 = vmatpush3.bf16.msra.mxu0 %v6092_v61  ;;  %v1671_v61 = vrot.slane %v6119_v53, 5  ;;  %4863 = vmatprep.mubr.bf16.mxu0 %v1814_v31  ;;  %v1790_v1 = vshrl.u32 %v1597_v52, 16  ;;  %v1793_v2 = vshll.u32 %v1597_v52, 16  ;;  %v1599_v31 = vshrl.u32 %v6119_v53, 16 }
 0x1f5   : > { %4877 = vmatprep.subr.bf16.mxu0 %v5258_v54  ;;  %v1773_v18 = vshrl.u32 %v4295_v59, 16  ;;  %v1776_v13 = vshll.u32 %v4295_v59, 16  ;;  %v1681_v42 = vrot.slane %v5276_v16, 5  ;;  %v1679_v46 = vsel %vm1027_vm6, %v1677_v36, %v1678_v28 }
 0x1f6   : > { %v1673_v32 = vsel %vm1027_vm6, %v1671_v61, %v1672_v58  ;;  %v1842_v33 = vshrl.u32 %v1671_v61, 16  ;;  %v1845_v35 = vshll.u32 %v1671_v61, 16  ;;  %v1676_v58 = vsel %vm1027_vm6, %v1674_v43, %v1675_v50  ;;  %4634 = vmatpush3.bf16.msra.mxu1 %v5294_v11  ;;  %v6171_v11 = vld [vmem:[#allocation2 + $0xac] sm:$0xf] }
 0x1f7   : > { %v1850_v37 = vshrl.u32 %v1673_v32, 16  ;;  %v1853_v38 = vshll.u32 %v1673_v32, 16  ;;  %v1893_v8 = vshrl.u32 %v1676_v58, 16  ;;  %v1896_v10 = vshll.u32 %v1676_v58, 16  ;;  %v1479_v32 = vld [vmem:[#allocation2 + $0x54] sm:$0x8]  ;;  %4635 = vmatprep.subr.bf16.mxu1 %v5301_v0 }
 0x1f8   : > { %4878 = vmatpush3.bf16.msra.mxu0 %v5258_v54  ;;  %v1844_v40 = vrot.slane %v1842_v33, 3  ;;  %v1847_v41 = vrot.slane %v1845_v35, 4  ;;  %v1885_v54 = vshrl.u32 %v1674_v43, 16  ;;  %v1792_v19 = vrot.slane %v1790_v1, 3 }
 0x1f9   : > { %4879 = vmatprep.subr.bf16.mxu0 %v5265_v3  ;;  %v1852_v48 = vrot.slane %v1850_v37, 3  ;;  %v1855_v49 = vrot.slane %v1853_v38, 4  ;;  %2288 = vmatmul.mubr.bf16.gmra.mrb[8].mxu1 %v1745_v47  ;;  %v1795_v60 = vrot.slane %v1793_v2, 4  ;;  %v1895_v20 = vrot.slane %v1893_v8, 3  ;;  %v5281_v38 = vld [vmem:[#allocation8 + $0xb0] sm:$0xff]  }
 0x1fa   : > { %v1848_v51 = vor.u32 %v1847_v41, %v1844_v40  ;;  %v1887_v45 = vrot.slane %v1885_v54, 3  ;;  %v1898_v21 = vrot.slane %v1896_v10, 4  ;;  %v1775_v22 = vrot.slane %v1773_v18, 3 }
 0x1fb   : > { %v1856_v57 = vor.u32 %v1855_v49, %v1852_v48  ;;  %v1781_v61 = vshrl.u32 %v4296_v62, 16  ;;  %v1796_v23 = vor.u32 %v1795_v60, %v1792_v19  ;;  %v1778_v17 = vrot.slane %v1776_v13, 4  ;;  %v5305_v19 = vld [vmem:[#allocation8 + $0x10] sm:$0xff]  }
 0x1fc   : > { %4880 = vmatpush3.bf16.msra.mxu0 %v5265_v3  ;;  %v1890_v3 = vrot.slane %v1888_v55, 4  ;;  %v1899_v26 = vor.u32 %v1898_v21, %v1895_v20  ;;  %v1786_v35 = vrot.slane %v1784_v24, 4  ;;  %v1602_v37 = vshll.u32 %v6119_v53, 16  ;;  %v5291_v20 = vld [vmem:[#allocation8 + $0x1c0] sm:$0xff]   ;;  %4636 = vmatpush3.bf16.msra.mxu1 %v5305_v19 }
 0x1fd   : > { %4881 = vmatprep.subr.bf16.mxu0 %v5266_v27  ;;  %v1857_v7 = vsel %vm1052_vm7, %v1848_v51, %v1856_v57  ;;  %2295 = vmatprep.mubr.bf16.mxu1 %v1796_v23  ;;  %v1779_v33 = vor.u32 %v1778_v17, %v1775_v22  ;;  %v1601_v40 = vrot.slane %v1599_v31, 4  ;;  %v6162_v41 = vcombine.low %v6148_v14, %v6150_v15  ;;  %v5284_v57 = vld [vmem:[#allocation8 + $0xb8] sm:$0xff]   ;;  %v6176_v17 = vld [vmem:[#allocation2 + $0x8] sm:$0xf]  ;;  %v6178_v24 = vld [vmem:[#allocation2 + $0xc] sm:$0xf] }
 0x1fe   : > { %4864 = vmatmul.mubr.bf16.gmra.mrb[20].mxu0 %v1857_v7  ;;  %v1891_v12 = vor.u32 %v1890_v3, %v1887_v45  ;;  %v1928_v47 = vshrl.u32 %v1677_v36, 16  ;;  %v1931_v48 = vshll.u32 %v1677_v36, 16  ;;  %v1936_v49 = vshrl.u32 %v1679_v46, 16  ;;  %v5280_v7 = vld [vmem:[#allocation2 + $0xb0] ss:$0 sps:$4 sm:$0x11]  }
 0x1ff   : > { %v1939_v50 = vshll.u32 %v1679_v46, 16  ;;  %v1604_v51 = vrot.slane %v1602_v37, 5  ;;  %v1680_v53 = vrot.slane %v6162_v41, 5  ;;  %v4298_v16 = vcombine.low %v6105_v34, %v6105_v34 }
 0x200   : > { %4882 = vmatpush3.bf16.msra.mxu0 %v5266_v27  ;;  %v1783_v27 = vrot.slane %v1781_v61, 3  ;;  %v1900_v39 = vsel %vm1052_vm7, %v1891_v12, %v1899_v26  ;;  %v1930_v54 = vrot.slane %v1928_v47, 3  ;;  %v1933_v55 = vrot.slane %v1931_v48, 4  ;;  %v5286_v26 = vld [vmem:[#allocation2 + $0x10] ss:$0 sps:$4 sm:$0x11]  }
 0x201   : > { %4883 = vmatprep.subr.bf16.mxu0 %v5273_v56  ;;  %4867 = vmatprep.mubr.bf16.mxu0 %v1900_v39  ;;  %v1938_v58 = vrot.slane %v1936_v49, 3  ;;  %v1941_v59 = vrot.slane %v1939_v50, 4  ;;  %v1605_v62 = vor.u32 %v1604_v51, %v1601_v40  ;;  %v1682_v63 = vsel %vm1027_vm6, %v1680_v53, %v1681_v42  ;;  %v1482_v49 = vld [vmem:[#allocation2 + $0x68] sm:$0x8]  ;;  %v5309_v50 = vld [vmem:[#allocation8 + $0x18] sm:$0xff]  }
 0x202   : > { %v1787_v43 = vor.u32 %v1786_v35, %v1783_v27  ;;  %v1934_v1 = vor.u32 %v1933_v55, %v1930_v54  ;;  %v1971_v2 = vshrl.u32 %v1680_v53, 16  ;;  %v1974_v45 = vshll.u32 %v1680_v53, 16 }
 0x203   : > { %v1979_v3 = vshrl.u32 %v1682_v63, 16  ;;  %v1942_v8 = vor.u32 %v1941_v59, %v1938_v58  ;;  %v1833_v10 = vshrl.u32 %v1605_v62, 16  ;;  %v1836_v18 = vshll.u32 %v1605_v62, 16 }
 0x204   : > { %4884 = vmatpush3.bf16.msra.mxu0 %v5273_v56  ;;  %v1788_v52 = vsel %vm1052_vm7, %v1779_v33, %v1787_v43  ;;  %v4297_v56 = vcombine.low %v1479_v32, %v6102_v29  ;;  %v1982_v29 = vshll.u32 %v1682_v63, 16  ;;  %v1973_v60 = vrot.slane %v1971_v2, 3  ;;  %v5307_v33 = vld [vmem:[#allocation8 + $0x58] sm:$0xff]  }
 0x205   : > { %4885 = vmatprep.subr.bf16.mxu0 %v5274_v6  ;;  %2296 = vmatmul.mubr.bf16.gmra.mrb[12].mxu1 %v1788_v52  ;;  %v1976_v12 = vrot.slane %v1974_v45, 4  ;;  %v1981_v13 = vrot.slane %v1979_v3, 3  ;;  %v1943_v21 = vsel %vm1052_vm7, %v1934_v1, %v1942_v8  ;;  %v1835_v22 = vrot.slane %v1833_v10, 3 }
 0x206   : > { %v1838_v61 = vrot.slane %v1836_v18, 4  ;;  %v1984_v23 = vrot.slane %v1982_v29, 4  ;;  %4868 = vmatmul.mubr.bf16.gmra.mrb[24].mxu0 %v1943_v21  ;;  %v1816_v28 = vshrl.u32 %v4297_v56, 16  ;;  %v1819_v31 = vshll.u32 %v4297_v56, 16  ;;  %4637 = vmatprep.subr.bf16.mxu1 %v5307_v33 }
 0x207   : > { %v1977_v27 = vor.u32 %v1976_v12, %v1973_v60  ;;  %v1824_v32 = vshrl.u32 %v4298_v16, 16  ;;  %v1827_v36 = vshll.u32 %v4298_v16, 16  ;;  %v1684_v42 = vrot.slane %v5280_v7, 5  ;;  %4638 = vmatpush3.bf16.msra.mxu1 %v5309_v50  ;;  %v6197_v12 = vld [vmem:[#allocation2 + $0x1c] sm:$0xf] }
 0x208   : > { %4886 = vmatpush3.bf16.msra.mxu0 %v5274_v6  ;;  %v6169_v6 = vld [vmem:[#allocation2 + $0xa8] sm:$0xf]  ;;  %v1839_v34 = vor.u32 %v1838_v61, %v1835_v22  ;;  %v1985_v35 = vor.u32 %v1984_v23, %v1981_v13  ;;  %v1821_v39 = vrot.slane %v1819_v31, 4  ;;  %v1607_v48 = vshrl.u32 %v6133_v30, 16 }
 0x209   : > { %4887 = vmatprep.subr.bf16.mxu0 %v5281_v38  ;;  %v6182_v37 = vcombine.low %v6169_v6, %v6171_v11  ;;  %v1826_v40 = vrot.slane %v1824_v32, 3  ;;  %v1829_v46 = vrot.slane %v1827_v36, 4  ;;  %v1610_v53 = vshll.u32 %v6133_v30, 16  ;;  %v5290_v22 = vld [vmem:[#allocation2 + $0x24] ss:$0 sps:$4 sm:$0x11]  }
 0x20a   : > { %2303 = vmatprep.mubr.bf16.mxu1 %v1839_v34  ;;  %v1986_v43 = vsel %vm1052_vm7, %v1977_v27, %v1985_v35  ;;  %v6190_v52 = vcombine.low %v6176_v17, %v6178_v24  ;;  %v1029_v54 = vrot.slane %v5286_v26, 5  ;;  %v1609_v63 = vrot.slane %v1607_v48, 4  ;;  %v6210_v48 = vld [vmem:[#allocation2 + $0x34] sm:$0xf] }
 0x20b   : > { %v1683_v47 = vrot.slane %v6182_v37, 5  ;;  %4871 = vmatprep.mubr.bf16.mxu0 %v1986_v43  ;;  %v1830_v55 = vor.u32 %v1829_v46, %v1826_v40  ;;  %v1612_v0 = vrot.slane %v1610_v53, 5  ;;  %v4299_v10 = vcombine.low %v1482_v49, %v6123_v4  ;;  %v5315_v4 = vld [vmem:[#allocation8 + $0x60] sm:$0xff]  }
 0x20c   : > { %4888 = vmatpush3.bf16.msra.mxu0 %v5281_v38  ;;  %v1818_v38 = vrot.slane %v1816_v28, 3  ;;  %v1028_v30 = vrot.slane %v6190_v52, 5  ;;  %v4300_v27 = vcombine.low %v6126_v9, %v6126_v9  ;;  %v6201_v28 = vld [vmem:[#allocation2 + $0x20] sm:$0xf]  ;;  %4639 = vmatprep.subr.bf16.mxu1 %v5315_v4  ;;  %v5319_v40 = vld [vmem:[#allocation8 + $0x20] sm:$0xff]   ;;  %v1032_v53 = vrot.slane %v5290_v22, 5 }
 0x20d   : > { %4889 = vmatprep.subr.bf16.mxu0 %v5284_v57  ;;  %v1685_v56 = vsel %vm1027_vm6, %v1683_v47, %v1684_v42  ;;  %v2017_v58 = vshll.u32 %v1683_v47, 16  ;;  %v1613_v8 = vor.u32 %v1612_v0, %v1609_v63  ;;  %v6206_v9 = vcombine.low %v6197_v12, %v6201_v28  ;;  %4640 = vmatpush3.bf16.msra.mxu1 %v5319_v40 }
 0x20e   : > { %v1822_v51 = vor.u32 %v1821_v39, %v1818_v38  ;;  %v2022_v59 = vshrl.u32 %v1685_v56, 16  ;;  %v2025_v62 = vshll.u32 %v1685_v56, 16  ;;  %v1030_v29 = vsel %vm1027_vm6, %v1028_v30, %v1029_v54  ;;  %v5298_v54 = vld [vmem:[#allocation2 + $0x38] ss:$0 sps:$4 sm:$0x11]  }
 0x20f   : > { %v2019_v45 = vrot.slane %v2017_v58, 4  ;;  %v1080_v19 = vshrl.u32 %v1028_v30, 16  ;;  %v1083_v60 = vshll.u32 %v1028_v30, 16  ;;  %v1876_v16 = vshrl.u32 %v1613_v8, 16 }
 0x210   : > { %4890 = vmatpush3.bf16.msra.mxu0 %v5284_v57  ;;  %v2014_v57 = vshrl.u32 %v1683_v47, 16  ;;  %v1831_v1 = vsel %vm1052_vm7, %v1822_v51, %v1830_v55  ;;  %v2024_v3 = vrot.slane %v2022_v59, 3  ;;  %v2027_v7 = vrot.slane %v2025_v62, 4  ;;  %v6208_v47 = vld [vmem:[#allocation2 + $0x30] sm:$0xf] }
 0x211   : > { %4711 = vmatprep.subr.bf16.mxu0 %v5291_v20  ;;  %2304 = vmatmul.mubr.bf16.gmra.mrb[16].mxu1 %v1831_v1  ;;  %v1879_v20 = vshll.u32 %v1613_v8, 16  ;;  %v1088_v21 = vshrl.u32 %v1030_v29, 16  ;;  %v1082_v61 = vrot.slane %v1080_v19, 3  ;;  %v1085_v23 = vrot.slane %v1083_v60, 4  ;;  %v1485_v1 = vld [vmem:[#allocation2 + $0x7c] sm:$0x8] }
 0x212   : > { %v2016_v2 = vrot.slane %v2014_v57, 3  ;;  %v2028_v13 = vor.u32 %v2027_v7, %v2024_v3  ;;  %v1091_v26 = vshll.u32 %v1030_v29, 16  ;;  %v1878_v32 = vrot.slane %v1876_v16, 3 }
 0x213   : > { %v1881_v33 = vrot.slane %v1879_v20, 4  ;;  %v1090_v34 = vrot.slane %v1088_v21, 3  ;;  %v1086_v35 = vor.u32 %v1085_v23, %v1082_v61  ;;  %v1859_v38 = vshrl.u32 %v4299_v10, 16  ;;  %v5292_v21 = vld [vmem:[#allocation8 + $0x180] sm:$0xff]  }
 0x214   : > { %v2020_v18 = vor.u32 %v2019_v45, %v2016_v2  ;;  %v1093_v36 = vrot.slane %v1091_v26, 4  ;;  %v1862_v39 = vshll.u32 %v4299_v10, 16  ;;  %v1867_v43 = vshrl.u32 %v4300_v27, 16  ;;  %v5295_v26 = vld [vmem:[#allocation8 + $0x1c8] sm:$0xff]  }
 0x215   : > { %v1882_v42 = vor.u32 %v1881_v33, %v1878_v32  ;;  %v1870_v46 = vshll.u32 %v4300_v27, 16  ;;  %v1861_v50 = vrot.slane %v1859_v38, 3  ;;  %v1031_v57 = vrot.slane %v6206_v9, 5  ;;  %v5303_v32 = vld [vmem:[#allocation2 + $0x4c] ss:$0 sps:$4 sm:$0x11]  }
 0x216   : > { %v2029_v31 = vsel %vm1052_vm7, %v2020_v18, %v2028_v13  ;;  %v1094_v49 = vor.u32 %v1093_v36, %v1090_v34  ;;  %v1864_v51 = vrot.slane %v1862_v39, 4  ;;  %v1869_v55 = vrot.slane %v1867_v43, 3  ;;  %v5321_v13 = vld [vmem:[#allocation8 + $0x68] sm:$0xff]   ;;  %v6225_v38 = vld [vmem:[#allocation2 + $0x44] sm:$0xf] }
 0x217   : > { %4872 = vmatmul.mubr.bf16.gmra.mrb[28].mxu0 %v2029_v31  ;;  %2311 = vmatprep.mubr.bf16.mxu1 %v1882_v42  ;;  %v1872_v56 = vrot.slane %v1870_v46, 4  ;;  %v1615_v58 = vshrl.u32 %v6154_v25, 16  ;;  %v1618_v63 = vshll.u32 %v6154_v25, 16  ;;  %v6218_v0 = vcombine.low %v6208_v47, %v6210_v48  ;;  %v6227_v39 = vld [vmem:[#allocation2 + $0x48] sm:$0xf] }
 0x218   : > { %v1095_v59 = vsel %vm1052_vm7, %v1086_v35, %v1094_v49  ;;  %v1865_v62 = vor.u32 %v1864_v51, %v1861_v50  ;;  %v1033_v45 = vsel %vm1027_vm6, %v1031_v57, %v1032_v53  ;;  %v1123_v30 = vshrl.u32 %v1031_v57, 16  ;;  %4641 = vmatprep.subr.bf16.mxu1 %v5321_v13  ;;  %v5296_v50 = vld [vmem:[#allocation8 + $0x188] sm:$0xff]  }
 0x219   : > { %4891 = vmatprep.mubr.bf16.mxu0 %v1095_v59  ;;  %v1873_v2 = vor.u32 %v1872_v56, %v1869_v55  ;;  %v1126_v3 = vshll.u32 %v1031_v57, 16  ;;  %v1131_v7 = vshrl.u32 %v1033_v45, 16  ;;  %v1134_v8 = vshll.u32 %v1033_v45, 16  ;;  %v5323_v59 = vld [vmem:[#allocation8 + $0x28] sm:$0xff]   ;;  %v5304_v45 = vld [vmem:[#allocation8 + $0x1d0] sm:$0xff]  }
 0x21a   : > { %v1617_v10 = vrot.slane %v1615_v58, 4  ;;  %v1620_v18 = vrot.slane %v1618_v63, 5  ;;  %v1125_v19 = vrot.slane %v1123_v30, 3  ;;  %v1034_v25 = vrot.slane %v6218_v0, 5  ;;  %v6232_v58 = vld [vmem:[#allocation2 + $0x58] sm:$0xf]  ;;  %4642 = vmatpush3.bf16.msra.mxu1 %v5323_v59 }
 0x21b   : > { %v1874_v29 = vsel %vm1052_vm7, %v1865_v62, %v1873_v2  ;;  %v1128_v60 = vrot.slane %v1126_v3, 4  ;;  %v1133_v16 = vrot.slane %v1131_v7, 3  ;;  %v1136_v20 = vrot.slane %v1134_v8, 4  ;;  %v6234_v30 = vld [vmem:[#allocation2 + $0x5c] sm:$0xf] }
 0x21c   : > { %2312 = vmatmul.mubr.bf16.gmra.mrb[20].mxu1 %v1874_v29  ;;  %v1621_v22 = vor.u32 %v1620_v18, %v1617_v10  ;;  %v1035_v61 = vrot.slane %v5298_v54, 5  ;;  %v1166_v27 = vshrl.u32 %v1034_v25, 16  ;;  %v1169_v4 = vshll.u32 %v1034_v25, 16  ;;  %v1488_v10 = vld [vmem:[#allocation2 + $0x90] sm:$0x8] }
 0x21d   : > { %v1129_v23 = vor.u32 %v1128_v60, %v1125_v19  ;;  %v4301_v31 = vcombine.low %v1485_v1, %v6143_v44  ;;  %v1137_v33 = vor.u32 %v1136_v20, %v1133_v16  ;;  %v4302_v53 = vcombine.low %v6145_v5, %v6145_v5 }
 0x21e   : > { %v1919_v34 = vshrl.u32 %v1621_v22, 16  ;;  %v1922_v35 = vshll.u32 %v1621_v22, 16  ;;  %v1036_v36 = vsel %vm1027_vm6, %v1034_v25, %v1035_v61  ;;  %v1168_v40 = vrot.slane %v1166_v27, 3  ;;  %v5329_v22 = vld [vmem:[#allocation8 + $0x70] sm:$0xff]  }
 0x21f   : > { %v1171_v42 = vrot.slane %v1169_v4, 4  ;;  %v1174_v43 = vshrl.u32 %v1036_v36, 16  ;;  %v1177_v46 = vshll.u32 %v1036_v36, 16  ;;  %v1138_v49 = vsel %vm1052_vm7, %v1129_v23, %v1137_v33  ;;  %4643 = vmatprep.subr.bf16.mxu1 %v5329_v22 }
 0x220   : > { %v1921_v51 = vrot.slane %v1919_v34, 3  ;;  %v1924_v44 = vrot.slane %v1922_v35, 4  ;;  %4892 = vmatmul.mubr.bf16.vlgmr.msra.gmra.mrb[16].mxu0 %v1138_v49  ;;  %v1902_v57 = vshrl.u32 %v4301_v31, 16  ;;  %v1905_v63 = vshll.u32 %v4301_v31, 16  ;;  %v5333_v35 = vld [vmem:[#allocation8 + $0x30] sm:$0xff]  }
 0x221   : > { %v1172_v54 = vor.u32 %v1171_v42, %v1168_v40  ;;  %v1176_v55 = vrot.slane %v1174_v43, 3  ;;  %v1179_v56 = vrot.slane %v1177_v46, 4  ;;  %4712 = vmatpush3.bf16.msra.mxu0 %v5292_v21  ;;  %v1910_v1 = vshrl.u32 %v4302_v53, 16  ;;  %v5312_v21 = vld [vmem:[#allocation2 + $0x60] ss:$0 sps:$4 sm:$0x11]   ;;  %4644 = vmatpush3.bf16.msra.mxu1 %v5333_v35 }
 0x222   : > { %v1925_v62 = vor.u32 %v1924_v44, %v1921_v51  ;;  %v1913_v2 = vshll.u32 %v4302_v53, 16  ;;  %4713 = vmatprep.subr.bf16.mxu0 %v5295_v26  ;;  %v1904_v7 = vrot.slane %v1902_v57, 3  ;;  %v6238_v5 = vcombine.low %v6225_v38, %v6227_v39  ;;  %v5306_v26 = vld [vmem:[#allocation8 + $0x190] sm:$0xff]   ;;  %v5318_v44 = vld [vmem:[#allocation8 + $0x1e0] sm:$0xff]  }
 0x223   : > { %v1180_v3 = vor.u32 %v1179_v56, %v1176_v55  ;;  %v1038_v8 = vrot.slane %v5303_v32, 5  ;;  %v1907_v18 = vrot.slane %v1905_v63, 4  ;;  %v1912_v29 = vrot.slane %v1910_v1, 3  ;;  %v5317_v57 = vld [vmem:[#allocation2 + $0x74] ss:$0 sps:$4 sm:$0x11]  }
 0x224   : > { %2319 = vmatprep.mubr.bf16.mxu1 %v1925_v62  ;;  %v1915_v19 = vrot.slane %v1913_v2, 4  ;;  %v1623_v60 = vshrl.u32 %v6162_v41, 16  ;;  %v1037_v13 = vrot.slane %v6238_v5, 5  ;;  %v1626_v16 = vshll.u32 %v6162_v41, 16  ;;  %v5308_v41 = vld [vmem:[#allocation8 + $0x1d8] sm:$0xff]  }
 0x225   : > { %v1181_v25 = vsel %vm1052_vm7, %v1172_v54, %v1180_v3  ;;  %v6246_v20 = vcombine.low %v6232_v58, %v6234_v30  ;;  %4714 = vmatpush3.bf16.msra.mxu0 %v5296_v50  ;;  %v1908_v61 = vor.u32 %v1907_v18, %v1904_v7  ;;  %v6249_v4 = vcombine.low %v1488_v10, %v6148_v14  ;;  %v5310_v14 = vld [vmem:[#allocation8 + $0x198] sm:$0xff]   ;;  %v6255_v2 = vld [vmem:[#allocation2 + $0x6c] sm:$0xf] }
 0x226   : > { %4895 = vmatprep.mubr.bf16.mxu0 %v1181_v25  ;;  %v1916_v23 = vor.u32 %v1915_v19, %v1912_v29  ;;  %v1625_v27 = vrot.slane %v1623_v60, 4  ;;  %v1039_v31 = vsel %vm1027_vm6, %v1037_v13, %v1038_v8  ;;  %v1209_v32 = vshrl.u32 %v1037_v13, 16  ;;  %4715 = vmatprep.subr.bf16.mxu0 %v5304_v45  ;;  %v6257_v45 = vld [vmem:[#allocation2 + $0x70] sm:$0xf]  ;;  %v5320_v18 = vld [vmem:[#allocation8 + $0x1a0] sm:$0xff]   ;;  %v5335_v29 = vld [vmem:[#allocation8 + $0x78] sm:$0xff]  }
 0x227   : > { %v1212_v33 = vshll.u32 %v1037_v13, 16  ;;  %v1628_v34 = vrot.slane %v1626_v16, 5  ;;  %v1217_v40 = vshrl.u32 %v1039_v31, 16  ;;  %v1220_v42 = vshll.u32 %v1039_v31, 16  ;;  %v5322_v16 = vld [vmem:[#allocation8 + $0x1e8] sm:$0xff]   ;;  %4645 = vmatprep.subr.bf16.mxu1 %v5335_v29 }
 0x228   : > { %v1917_v36 = vsel %vm1052_vm7, %v1908_v61, %v1916_v23  ;;  %v1040_v43 = vrot.slane %v6246_v20, 5  ;;  %v1211_v46 = vrot.slane %v1209_v32, 3  ;;  %v1041_v51 = vrot.slane %v5312_v21, 5 }
 0x229   : > { %2320 = vmatmul.mubr.bf16.gmra.mrb[24].mxu1 %v1917_v36  ;;  %v1214_v49 = vrot.slane %v1212_v33, 4  ;;  %v1629_v50 = vor.u32 %v1628_v34, %v1625_v27  ;;  %v1219_v53 = vrot.slane %v1217_v40, 3  ;;  %v1222_v54 = vrot.slane %v1220_v42, 4  ;;  %4716 = vmatpush3.bf16.msra.mxu0 %v5306_v26  ;;  %v5337_v33 = vld [vmem:[#allocation8 + $0x38] sm:$0xff]   ;;  %v5324_v36 = vld [vmem:[#allocation8 + $0x1a8] sm:$0xff]  }
 0x22a   : > { %v1252_v55 = vshrl.u32 %v1040_v43, 16  ;;  %v1255_v56 = vshll.u32 %v1040_v43, 16  ;;  %4717 = vmatprep.subr.bf16.mxu0 %v5308_v41  ;;  %v1042_v1 = vsel %vm1027_vm6, %v1040_v43, %v1041_v51  ;;  %v4304_v13 = vcombine.low %v6150_v15, %v6150_v15  ;;  %4646 = vmatpush3.bf16.msra.mxu1 %v5337_v33 }
 0x22b   : > { %v1215_v59 = vor.u32 %v1214_v49, %v1211_v46  ;;  %v1962_v62 = vshrl.u32 %v1629_v50, 16  ;;  %v1965_v63 = vshll.u32 %v1629_v50, 16  ;;  %v1223_v3 = vor.u32 %v1222_v54, %v1219_v53  ;;  %v5332_v46 = vld [vmem:[#allocation8 + $0x1f0] sm:$0xff]  }
 0x22c   : > { %v1254_v7 = vrot.slane %v1252_v55, 3  ;;  %v1257_v8 = vrot.slane %v1255_v56, 4  ;;  %v1260_v10 = vshrl.u32 %v1042_v1, 16  ;;  %v1263_v25 = vshll.u32 %v1042_v1, 16  ;;  %v6280_v55 = vld [vmem:[#allocation2 + $0x80] sm:$0xf] }
 0x22d   : > { %v1964_v19 = vrot.slane %v1962_v62, 3  ;;  %v1967_v60 = vrot.slane %v1965_v63, 4  ;;  %v1224_v21 = vsel %vm1052_vm7, %v1215_v59, %v1223_v3  ;;  %4718 = vmatpush3.bf16.msra.mxu0 %v5310_v14  ;;  %v1945_v23 = vshrl.u32 %v6249_v4, 16  ;;  %v6283_v62 = vld [vmem:[#allocation2 + $0x84] sm:$0xf] }
 0x22e   : > { %v1258_v22 = vor.u32 %v1257_v8, %v1254_v7  ;;  %v1262_v61 = vrot.slane %v1260_v10, 3  ;;  %4896 = vmatmul.mubr.bf16.gmra.mrb[20].mxu0 %v1224_v21  ;;  %v1265_v27 = vrot.slane %v1263_v25, 4  ;;  %v1948_v31 = vshll.u32 %v6249_v4, 16  ;;  %4719 = vmatprep.subr.bf16.mxu0 %v5318_v44  ;;  %v1491_v8 = vld [vmem:[#allocation2 + $0xa4] sm:$0x8] }
 0x22f   : > { %v1968_v26 = vor.u32 %v1967_v60, %v1964_v19  ;;  %v1953_v32 = vshrl.u32 %v4304_v13, 16  ;;  %v1947_v41 = vrot.slane %v1945_v23, 3  ;;  %v1956_v34 = vshll.u32 %v4304_v13, 16  ;;  %v5326_v19 = vld [vmem:[#allocation2 + $0x88] ss:$0 sps:$4 sm:$0x11]  }
 0x230   : > { %v6266_v15 = vcombine.low %v6255_v2, %v6257_v45  ;;  %v1044_v35 = vrot.slane %v5317_v57, 5  ;;  %v1266_v40 = vor.u32 %v1265_v27, %v1262_v61  ;;  %v1950_v42 = vrot.slane %v1948_v31, 4  ;;  %v5336_v60 = vld [vmem:[#allocation8 + $0x1f8] sm:$0xff]  }
 0x231   : > { %2327 = vmatprep.mubr.bf16.mxu1 %v1968_v26  ;;  %v1955_v43 = vrot.slane %v1953_v32, 3  ;;  %v1958_v49 = vrot.slane %v1956_v34, 4  ;;  %4720 = vmatpush3.bf16.msra.mxu0 %v5320_v18  ;;  %v6271_v14 = vcombine.low %v6171_v11, %v6171_v11  ;;  %v6275_v50 = vcombine.low %v6178_v24, %v6178_v24  ;;  %v5334_v24 = vld [vmem:[#allocation8 + $0x1b0] sm:$0xff]  }
 0x232   : > { %v1043_v4 = vrot.slane %v6266_v15, 5  ;;  %v1267_v51 = vsel %vm1052_vm7, %v1258_v22, %v1266_v40  ;;  %v1951_v44 = vor.u32 %v1950_v42, %v1947_v41  ;;  %4721 = vmatprep.subr.bf16.mxu0 %v5322_v16  ;;  %v1631_v53 = vshrl.u32 %v6182_v37, 16  ;;  %v857_v41 = vld [vmem:[#allocation2 + $0x94] sm:$0xf]  ;;  %v858_v34 = vld [vmem:[#allocation2 + $0x98] sm:$0xf] }
 0x233   : > { %v1634_v54 = vshll.u32 %v6182_v37, 16  ;;  %4899 = vmatprep.mubr.bf16.mxu0 %v1267_v51  ;;  %v1959_v56 = vor.u32 %v1958_v49, %v1955_v43  ;;  %v6288_v29 = vcombine.low %v6280_v55, %v6283_v62  ;;  %v4305_v21 = vcombine.low %v1491_v8, %v6169_v6  ;;  %v6294_v6 = vld [vmem:[#allocation8 + $0x200] sm:$0xff]  }
 0x234   : > { %v1045_v57 = vsel %vm1027_vm6, %v1043_v4, %v1044_v35  ;;  %v1295_v11 = vshrl.u32 %v1043_v4, 16  ;;  %v1298_v59 = vshll.u32 %v1043_v4, 16  ;;  %v1633_v3 = vrot.slane %v1631_v53, 4  ;;  %v5338_v35 = vld [vmem:[#allocation8 + $0x1b8] sm:$0xff]  }
 0x235   : > { %v1303_v63 = vshrl.u32 %v1045_v57, 16  ;;  %v1306_v1 = vshll.u32 %v1045_v57, 16  ;;  %v1636_v7 = vrot.slane %v1634_v54, 5  ;;  %v1960_v10 = vsel %vm1052_vm7, %v1951_v44, %v1959_v56  ;;  %4722 = vmatpush3.bf16.msra.mxu0 %v5324_v36  ;;  %v5331_v44 = vld [vmem:[#allocation2 + $0x9c] ss:$0 sps:$4 sm:$0x11]  }
 0x236   : > { %v1297_v18 = vrot.slane %v1295_v11, 3  ;;  %v1300_v37 = vrot.slane %v1298_v59, 4  ;;  %2328 = vmatmul.mubr.bf16.gmra.mrb[28].mxu1 %v1960_v10  ;;  %4723 = vmatprep.subr.bf16.mxu0 %v5332_v46  ;;  %v1046_v61 = vrot.slane %v6288_v29, 5  ;;  %v1047_v23 = vrot.slane %v5326_v19, 5 }
 0x237   : > { %v1305_v25 = vrot.slane %v1303_v63, 3  ;;  %v1308_v13 = vrot.slane %v1306_v1, 4  ;;  %v1637_v16 = vor.u32 %v1636_v7, %v1633_v3  ;;  %v1996_v26 = vshrl.u32 %v6271_v14, 16 }
 0x238   : > { %v1301_v22 = vor.u32 %v1300_v37, %v1297_v18  ;;  %v1988_v33 = vshrl.u32 %v4305_v21, 16  ;;  %v1048_v36 = vsel %vm1027_vm6, %v1046_v61, %v1047_v23  ;;  %v1338_v40 = vshrl.u32 %v1046_v61, 16 }
 0x239   : > { %v1309_v27 = vor.u32 %v1308_v13, %v1305_v25  ;;  %v2005_v31 = vshrl.u32 %v1637_v16, 16  ;;  %v2008_v32 = vshll.u32 %v1637_v16, 16  ;;  %v1341_v42 = vshll.u32 %v1046_v61, 16  ;;  %4724 = vmatpush3.bf16.msra.mxu0 %v5334_v24 }
 0x23a   : > { %v1991_v43 = vshll.u32 %v4305_v21, 16  ;;  %v1346_v51 = vshrl.u32 %v1048_v36, 16  ;;  %4725 = vmatprep.subr.bf16.mxu0 %v5336_v60  ;;  %v1340_v53 = vrot.slane %v1338_v40, 3  ;;  %v1349_v56 = vshll.u32 %v1048_v36, 16 }
 0x23b   : > { %v1310_v46 = vsel %vm1052_vm7, %v1301_v22, %v1309_v27  ;;  %v2007_v49 = vrot.slane %v2005_v31, 3  ;;  %v2010_v4 = vrot.slane %v2008_v32, 4  ;;  %v1343_v54 = vrot.slane %v1341_v42, 4 }
 0x23c   : > { %4900 = vmatmul.mubr.bf16.gmra.mrb[24].mxu0 %v1310_v46  ;;  %v1990_v57 = vrot.slane %v1988_v33, 3  ;;  %v1348_v59 = vrot.slane %v1346_v51, 3  ;;  %v1993_v63 = vrot.slane %v1991_v43, 4  ;;  %v1998_v1 = vrot.slane %v1996_v26, 3  ;;  %v835_v46 = vld [vmem:[#allocation2 + $0x4] sm:$0x8] }
 0x23d   : > { %v2011_v11 = vor.u32 %v2010_v4, %v2007_v49  ;;  %v1344_v3 = vor.u32 %v1343_v54, %v1340_v53  ;;  %v1351_v24 = vrot.slane %v1349_v56, 4  ;;  %v1999_v7 = vshll.u32 %v6271_v14, 16  ;;  %4726 = vmatpush3.bf16.msra.mxu0 %v5338_v35  ;;  %v2782_v35 = vld [vmem:[#allocation2 + $0x34] sm:$0xf] }
 0x23e   : > { %v6298_v8 = vcombine.low %v857_v41, %v858_v34  ;;  %v1994_v10 = vor.u32 %v1993_v63, %v1990_v57  ;;  %v1050_v18 = vrot.slane %v5331_v44, 5  ;;  %v940_v37 = vshrl.u32 %v6190_v52, 16  ;;  %4907 = vmatprep.subr.bf16.mxu0 %v6294_v6  ;;  %v2781_v41 = vld [vmem:[#allocation2 + $0x30] sm:$0xf]  ;;  %v2780_v63 = vld [vmem:[#allocation2 + $0x2c] sm:$0x8] }
 0x23f   : > { %2335 = vmatprep.mubr.bf16.mxu1 %v2011_v11  ;;  %v6304_v19 = vcombine.low %v6201_v28, %v6201_v28  ;;  %v1352_v60 = vor.u32 %v1351_v24, %v1348_v59  ;;  %v2001_v25 = vrot.slane %v1999_v7, 4  ;;  %v6309_v14 = vcombine.low %v6210_v48, %v6210_v48 }
 0x240   : > { %v1049_v13 = vrot.slane %v6298_v8, 5  ;;  %v6313_v16 = vcombine.low %v6227_v39, %v6227_v39  ;;  %v6317_v21 = vcombine.low %v6234_v30, %v6234_v30  ;;  %v6321_v28 = vcombine.low %v6257_v45, %v6257_v45 }
 0x241   : > { %v6325_v22 = vcombine.low %v6283_v62, %v6283_v62  ;;  %v1353_v61 = vsel %vm1052_vm7, %v1344_v3, %v1352_v60  ;;  %v2002_v48 = vor.u32 %v2001_v25, %v1998_v1  ;;  %v942_v30 = vrot.slane %v940_v37, 4 }
 0x242   : > { %v1051_v23 = vsel %vm1027_vm6, %v1049_v13, %v1050_v18  ;;  %v1381_v26 = vshrl.u32 %v1049_v13, 16  ;;  %4903 = vmatprep.mubr.bf16.mxu0 %v1353_v61  ;;  %v1384_v39 = vshll.u32 %v1049_v13, 16  ;;  %v943_v45 = vshll.u32 %v6190_v52, 16 }
 0x243   : > { %v1389_v27 = vshrl.u32 %v1051_v23, 16  ;;  %v1392_v31 = vshll.u32 %v1051_v23, 16  ;;  %v2003_v32 = vsel %vm1052_vm7, %v1994_v10, %v2002_v48  ;;  %v6331_v62 = vcombine.low %v858_v34, %v858_v34 }
 0x244   : > { %v1383_v33 = vrot.slane %v1381_v26, 3  ;;  %2336 = vmatmul.mubr.bf16.gmra.mrb[32].mxu1 %v2003_v32  ;;  %v1386_v36 = vrot.slane %v1384_v39, 4  ;;  %v6333_v43 = vcombine.low %v2781_v41, %v2782_v35  ;;  %v945_v49 = vrot.slane %v943_v45, 5  ;;  %v2784_v32 = vld [vmem:[#allocation2 + $0x44] sm:$0xf] }
 0x245   : > { %v1391_v40 = vrot.slane %v1389_v27, 3  ;;  %v1394_v42 = vrot.slane %v1392_v31, 4  ;;  %v4259_v4 = vcombine.low %v835_v46, %v6176_v17  ;;  %v1062_v51 = vshrl.u32 %v6275_v50, 16  ;;  %v838_v46 = vld [vmem:[#allocation2 + $0x18] sm:$0x8] }
 0x246   : > { %v1065_v44 = vshll.u32 %v6275_v50, 16  ;;  %v1387_v53 = vor.u32 %v1386_v36, %v1383_v33  ;;  %v2885_v54 = vshrl.u32 %v6333_v43, 16  ;;  %v2888_v34 = vshll.u32 %v6333_v43, 16 }
 0x247   : > { %v1395_v52 = vor.u32 %v1394_v42, %v1391_v40  ;;  %v946_v56 = vor.u32 %v945_v49, %v942_v30  ;;  %v1054_v57 = vshrl.u32 %v4259_v4, 16  ;;  %v1057_v11 = vshll.u32 %v4259_v4, 16  ;;  %v2785_v42 = vld [vmem:[#allocation2 + $0x48] sm:$0xf] }
 0x248   : > { %v1064_v59 = vrot.slane %v1062_v51, 3  ;;  %v2887_v3 = vrot.slane %v2885_v54, 4  ;;  %v2890_v24 = vrot.slane %v2888_v34, 5  ;;  %v1067_v17 = vrot.slane %v1065_v44, 4 }
 0x249   : > { %v1396_v1 = vsel %vm1052_vm7, %v1387_v53, %v1395_v52  ;;  %v1071_v7 = vshrl.u32 %v946_v56, 16  ;;  %v1074_v10 = vshll.u32 %v946_v56, 16  ;;  %v1056_v50 = vrot.slane %v1054_v57, 3 }
 0x24a   : > { %4904 = vmatmul.mubr.bf16.gmra.mrb[28].mxu0 %v1396_v1  ;;  %v1059_v18 = vrot.slane %v1057_v11, 4  ;;  %v2891_v37 = vor.u32 %v2890_v24, %v2887_v3  ;;  %v1068_v60 = vor.u32 %v1067_v17, %v1064_v59  ;;  %v4371_v25 = vcombine.low %v2780_v63, %v2781_v41  ;;  %v2783_v3 = vld [vmem:[#allocation2 + $0x40] sm:$0x8]  ;;  %v5350_v24 = vld [vmem:[#allocation8 + $0x208] sm:$0xff]  }
 0x24b   : > { %v4372_v13 = vcombine.low %v2782_v35, %v2782_v35  ;;  %v1073_v61 = vrot.slane %v1071_v7, 3  ;;  %v1076_v48 = vrot.slane %v1074_v10, 4  ;;  %v948_v26 = vshrl.u32 %v6206_v9, 16 }
 0x24c   : > { %v1060_v23 = vor.u32 %v1059_v18, %v1056_v50  ;;  %v3014_v39 = vshrl.u32 %v2891_v37, 16  ;;  %v3017_v27 = vshll.u32 %v2891_v37, 16  ;;  %v2997_v31 = vshrl.u32 %v4371_v25, 16 }
 0x24d   : > { %v3000_v30 = vshll.u32 %v4371_v25, 16  ;;  %v1077_v33 = vor.u32 %v1076_v48, %v1073_v61  ;;  %v3005_v36 = vshrl.u32 %v4372_v13, 16  ;;  %v3008_v40 = vshll.u32 %v4372_v13, 16 }
 0x24e   : > { %v1069_v45 = vsel %vm1052_vm7, %v1060_v23, %v1068_v60  ;;  %v3016_v49 = vrot.slane %v3014_v39, 3  ;;  %v3019_v41 = vrot.slane %v3017_v27, 4  ;;  %v2999_v35 = vrot.slane %v2997_v31, 3 }
 0x24f   : > { %v3002_v4 = vrot.slane %v3000_v30, 4  ;;  %2617 = vmatprep.mubr.bf16.mxu1 %v1077_v33  ;;  %v3007_v51 = vrot.slane %v3005_v36, 3  ;;  %v3010_v44 = vrot.slane %v3008_v40, 4  ;;  %v950_v53 = vrot.slane %v948_v26, 4  ;;  %v5356_v33 = vld [vmem:[#allocation8 + $0x210] sm:$0xff]  }
 0x250   : > { %v951_v52 = vshll.u32 %v6206_v9, 16  ;;  %v3020_v54 = vor.u32 %v3019_v41, %v3016_v49  ;;  %2618 = vmatmul.mubr.bf16.vlgmr.msra.gmra.mrb[36].mxu1 %v1069_v45  ;;  %v6344_v56 = vcombine.low %v2784_v32, %v2785_v42  ;;  %v4261_v57 = vcombine.low %v838_v46, %v6197_v12  ;;  %v2787_v49 = vld [vmem:[#allocation2 + $0x58] sm:$0xf] }
 0x251   : > { %v3003_v34 = vor.u32 %v3002_v4, %v2999_v35  ;;  %v3011_v11 = vor.u32 %v3010_v44, %v3007_v51  ;;  %v1105_v63 = vshrl.u32 %v6304_v19, 16  ;;  %v1108_v1 = vshll.u32 %v6304_v19, 16  ;;  %v2788_v51 = vld [vmem:[#allocation2 + $0x5c] sm:$0xf] }
 0x252   : > { %v953_v59 = vrot.slane %v951_v52, 5  ;;  %3589 = vmatprep.mubr.bf16.mxu0 %v3020_v54  ;;  %v2893_v17 = vshrl.u32 %v6344_v56, 16  ;;  %v2896_v9 = vshll.u32 %v6344_v56, 16  ;;  %v1097_v7 = vshrl.u32 %v4261_v57, 16 }
 0x253   : > { %v1100_v10 = vshll.u32 %v4261_v57, 16  ;;  %v3012_v50 = vsel %vm1052_vm7, %v3003_v34, %v3011_v11  ;;  %v1107_v37 = vrot.slane %v1105_v63, 3  ;;  %v1110_v12 = vrot.slane %v1108_v1, 4 }
 0x254   : > { %v954_v18 = vor.u32 %v953_v59, %v950_v53  ;;  %3590 = vmatmul.mubr.bf16.vlgmr.msra.gmra.mrb[32].mxu0 %v3012_v50  ;;  %v2895_v60 = vrot.slane %v2893_v17, 4  ;;  %v2898_v25 = vrot.slane %v2896_v9, 5  ;;  %v1099_v13 = vrot.slane %v1097_v7, 3  ;;  %v5362_v59 = vld [vmem:[#allocation8 + $0x218] sm:$0xff]  }
 0x255   : > { %v1102_v61 = vrot.slane %v1100_v10, 4  ;;  %4908 = vmatpush3.bf16.msra.mxu0 %v6294_v6  ;;  %v1111_v23 = vor.u32 %v1110_v12, %v1107_v37  ;;  %v4373_v26 = vcombine.low %v2783_v3, %v2784_v32  ;;  %v4374_v31 = vcombine.low %v2785_v42, %v2785_v42  ;;  %v841_v42 = vld [vmem:[#allocation2 + $0x2c] sm:$0x8] }
 0x256   : > { %v1114_v19 = vshrl.u32 %v954_v18, 16  ;;  %v1117_v48 = vshll.u32 %v954_v18, 16  ;;  %v2899_v39 = vor.u32 %v2898_v25, %v2895_v60  ;;  %4909 = vmatprep.subr.bf16.mxu0 %v5350_v24  ;;  %v956_v30 = vshrl.u32 %v6218_v0, 16  ;;  %v2786_v60 = vld [vmem:[#allocation2 + $0x54] sm:$0x8] }
 0x257   : > { %v1103_v27 = vor.u32 %v1102_v61, %v1099_v13  ;;  %v3040_v40 = vshrl.u32 %v4373_v26, 16  ;;  %v3043_v46 = vshll.u32 %v4373_v26, 16  ;;  %v3048_v4 = vshrl.u32 %v4374_v31, 16 }
 0x258   : > { %v1116_v45 = vrot.slane %v1114_v19, 3  ;;  %v1119_v36 = vrot.slane %v1117_v48, 4  ;;  %v3057_v41 = vshrl.u32 %v2899_v39, 16  ;;  %v3060_v35 = vshll.u32 %v2899_v39, 16  ;;  %v5368_v19 = vld [vmem:[#allocation8 + $0x220] sm:$0xff]  }
 0x259   : > { %v1112_v6 = vsel %vm1052_vm7, %v1103_v27, %v1111_v23  ;;  %v3042_v32 = vrot.slane %v3040_v40, 3  ;;  %v3045_v53 = vrot.slane %v3043_v46, 4  ;;  %v3051_v52 = vshll.u32 %v4374_v31, 16  ;;  %4910 = vmatpush3.bf16.msra.mxu0 %v5350_v24 }
 0x25a   : > { %v1120_v44 = vor.u32 %v1119_v36, %v1116_v45  ;;  %v3059_v54 = vrot.slane %v3057_v41, 3  ;;  %v3062_v34 = vrot.slane %v3060_v35, 4  ;;  %v3050_v57 = vrot.slane %v3048_v4, 3  ;;  %4911 = vmatprep.subr.bf16.mxu0 %v5356_v33  ;;  %v2791_v4 = vld [vmem:[#allocation2 + $0x70] sm:$0xf] }
 0x25b   : > { %v958_v11 = vrot.slane %v956_v30, 4  ;;  %v3046_v63 = vor.u32 %v3045_v53, %v3042_v32  ;;  %v3053_v1 = vrot.slane %v3051_v52, 4  ;;  %v959_v3 = vshll.u32 %v6218_v0, 16  ;;  %v5374_v32 = vld [vmem:[#allocation8 + $0x228] sm:$0xff]  }
 0x25c   : > { %2625 = vmatprep.mubr.bf16.mxu1 %v1120_v44  ;;  %v6356_v17 = vcombine.low %v2787_v49, %v2788_v51  ;;  %v3063_v9 = vor.u32 %v3062_v34, %v3059_v54  ;;  %v4263_v7 = vcombine.low %v841_v42, %v6208_v47  ;;  %v1148_v24 = vshrl.u32 %v6309_v14, 16  ;;  %v844_v44 = vld [vmem:[#allocation2 + $0x40] sm:$0x8] }
 0x25d   : > { %2626 = vmatmul.mubr.bf16.gmra.mrb[40].mxu1 %v1112_v6  ;;  %v1151_v10 = vshll.u32 %v6309_v14, 16  ;;  %v3054_v50 = vor.u32 %v3053_v1, %v3050_v57  ;;  %v961_v18 = vrot.slane %v959_v3, 5  ;;  %4912 = vmatpush3.bf16.msra.mxu0 %v5356_v33  ;;  %v4375_v31 = vcombine.low %v2786_v60, %v2787_v49  ;;  %v2790_v6 = vld [vmem:[#allocation2 + $0x6c] sm:$0xf]  ;;  %v2789_v3 = vld [vmem:[#allocation2 + $0x68] sm:$0x8] }
 0x25e   : > { %v2901_v37 = vshrl.u32 %v6356_v17, 16  ;;  %v2904_v12 = vshll.u32 %v6356_v17, 16  ;;  %3597 = vmatprep.mubr.bf16.mxu0 %v3063_v9  ;;  %v1140_v0 = vshrl.u32 %v4263_v7, 16  ;;  %v1143_v25 = vshll.u32 %v4263_v7, 16  ;;  %4913 = vmatprep.subr.bf16.mxu0 %v5362_v59 }
 0x25f   : > { %v1150_v13 = vrot.slane %v1148_v24, 3  ;;  %v1153_v61 = vrot.slane %v1151_v10, 4  ;;  %v3055_v47 = vsel %vm1052_vm7, %v3046_v63, %v3054_v50  ;;  %v962_v48 = vor.u32 %v961_v18, %v958_v11  ;;  %v5380_v50 = vld [vmem:[#allocation8 + $0x230] sm:$0xff]  }
 0x260   : > { %v2903_v23 = vrot.slane %v2901_v37, 4  ;;  %v2906_v14 = vrot.slane %v2904_v12, 5  ;;  %3598 = vmatmul.mubr.bf16.gmra.mrb[36].mxu0 %v3055_v47  ;;  %v1142_v26 = vrot.slane %v1140_v0, 3  ;;  %v1145_v39 = vrot.slane %v1143_v25, 4 }
 0x261   : > { %v1154_v27 = vor.u32 %v1153_v61, %v1150_v13  ;;  %v1157_v30 = vshrl.u32 %v962_v48, 16  ;;  %v1160_v45 = vshll.u32 %v962_v48, 16  ;;  %v4376_v36 = vcombine.low %v2788_v51, %v2788_v51  ;;  %4914 = vmatpush3.bf16.msra.mxu0 %v5362_v59 }
 0x262   : > { %v2907_v33 = vor.u32 %v2906_v14, %v2903_v23  ;;  %v1146_v40 = vor.u32 %v1145_v39, %v1142_v26  ;;  %v3083_v46 = vshrl.u32 %v4375_v31, 16  ;;  %v3086_v41 = vshll.u32 %v4375_v31, 16  ;;  %4915 = vmatprep.subr.bf16.mxu0 %v5368_v19 }
 0x263   : > { %v964_v35 = vshrl.u32 %v6238_v5, 16  ;;  %v1159_v53 = vrot.slane %v1157_v30, 3  ;;  %v1162_v52 = vrot.slane %v1160_v45, 4  ;;  %v3091_v51 = vshrl.u32 %v4376_v36, 16 }
 0x264   : > { %v3100_v42 = vshrl.u32 %v2907_v33, 16  ;;  %v3103_v54 = vshll.u32 %v2907_v33, 16  ;;  %v1155_v49 = vsel %vm1052_vm7, %v1146_v40, %v1154_v27  ;;  %v3085_v34 = vrot.slane %v3083_v46, 3 }
 0x265   : > { %v3088_v57 = vrot.slane %v3086_v41, 4  ;;  %v1163_v11 = vor.u32 %v1162_v52, %v1159_v53  ;;  %v3094_v1 = vshll.u32 %v4376_v36, 16  ;;  %4916 = vmatpush3.bf16.msra.mxu0 %v5368_v19  ;;  %v3093_v7 = vrot.slane %v3091_v51, 3 }
 0x266   : > { %v3102_v59 = vrot.slane %v3100_v42, 3  ;;  %v3105_v63 = vrot.slane %v3103_v54, 4  ;;  %v966_v24 = vrot.slane %v964_v35, 4  ;;  %v967_v10 = vshll.u32 %v6238_v5, 16  ;;  %4917 = vmatprep.subr.bf16.mxu0 %v5374_v32  ;;  %v2794_v54 = vld [vmem:[#allocation2 + $0x84] sm:$0xf] }
 0x267   : > { %v3089_v9 = vor.u32 %v3088_v57, %v3085_v34  ;;  %2633 = vmatprep.mubr.bf16.mxu1 %v1163_v11  ;;  %v3096_v37 = vrot.slane %v3094_v1, 4  ;;  %v6367_v12 = vcombine.low %v2790_v6, %v2791_v4  ;;  %v4265_v60 = vcombine.low %v844_v44, %v6225_v38  ;;  %v5386_v38 = vld [vmem:[#allocation8 + $0x238] sm:$0xff]   ;;  %v847_v1 = vld [vmem:[#allocation2 + $0x54] sm:$0x8] }
 0x268   : > { %v3106_v18 = vor.u32 %v3105_v63, %v3102_v59  ;;  %2634 = vmatmul.mubr.bf16.gmra.mrb[44].mxu1 %v1155_v49  ;;  %v969_v0 = vrot.slane %v967_v10, 5  ;;  %v1191_v25 = vshrl.u32 %v6313_v16, 16  ;;  %v1194_v13 = vshll.u32 %v6313_v16, 16  ;;  %v2793_v44 = vld [vmem:[#allocation2 + $0x80] sm:$0xf] }
 0x269   : > { %v4377_v61 = vcombine.low %v2789_v3, %v2790_v6  ;;  %v3097_v19 = vor.u32 %v3096_v37, %v3093_v7  ;;  %v2909_v5 = vshrl.u32 %v6367_v12, 16  ;;  %v2912_v47 = vshll.u32 %v6367_v12, 16  ;;  %4918 = vmatpush3.bf16.msra.mxu0 %v5374_v32 }
 0x26a   : > { %3605 = vmatprep.mubr.bf16.mxu0 %v3106_v18  ;;  %v1183_v48 = vshrl.u32 %v4265_v60, 16  ;;  %v970_v23 = vor.u32 %v969_v0, %v966_v24  ;;  %v1186_v14 = vshll.u32 %v4265_v60, 16  ;;  %v1193_v26 = vrot.slane %v1191_v25, 3  ;;  %4919 = vmatprep.subr.bf16.mxu0 %v5380_v50  ;;  %v2792_v60 = vld [vmem:[#allocation2 + $0x7c] sm:$0x8] }
 0x26b   : > { %v1196_v39 = vrot.slane %v1194_v13, 4  ;;  %v3098_v27 = vsel %vm1052_vm7, %v3089_v9, %v3097_v19  ;;  %v2911_v31 = vrot.slane %v2909_v5, 4  ;;  %v2914_v30 = vrot.slane %v2912_v47, 5 }
 0x26c   : > { %v1185_v16 = vrot.slane %v1183_v48, 3  ;;  %3606 = vmatmul.mubr.bf16.gmra.mrb[40].mxu0 %v3098_v27  ;;  %v1200_v45 = vshrl.u32 %v970_v23, 16  ;;  %v1203_v33 = vshll.u32 %v970_v23, 16  ;;  %v1188_v36 = vrot.slane %v1186_v14, 4 }
 0x26d   : > { %v1197_v40 = vor.u32 %v1196_v39, %v1193_v26  ;;  %v2915_v46 = vor.u32 %v2914_v30, %v2911_v31  ;;  %v4378_v41 = vcombine.low %v2791_v4, %v2791_v4  ;;  %v3126_v35 = vshrl.u32 %v4377_v61, 16  ;;  %4920 = vmatpush3.bf16.msra.mxu0 %v5380_v50 }
 0x26e   : > { %v3129_v6 = vshll.u32 %v4377_v61, 16  ;;  %v1202_v32 = vrot.slane %v1200_v45, 3  ;;  %v1205_v53 = vrot.slane %v1203_v33, 4  ;;  %v1189_v52 = vor.u32 %v1188_v36, %v1185_v16  ;;  %4921 = vmatprep.subr.bf16.mxu0 %v5386_v38 }
 0x26f   : > { %v972_v42 = vshrl.u32 %v6246_v20, 16  ;;  %v3143_v49 = vshrl.u32 %v2915_v46, 16  ;;  %v3146_v34 = vshll.u32 %v2915_v46, 16  ;;  %v3128_v57 = vrot.slane %v3126_v35, 3 }
 0x270   : > { %v3131_v51 = vrot.slane %v3129_v6, 4  ;;  %v1206_v11 = vor.u32 %v1205_v53, %v1202_v32  ;;  %v1198_v59 = vsel %vm1052_vm7, %v1189_v52, %v1197_v40  ;;  %v3134_v63 = vshrl.u32 %v4378_v41, 16  ;;  %v2796_v32 = vld [vmem:[#allocation2 + $0x94] sm:$0xf]  ;;  %v2797_v53 = vld [vmem:[#allocation2 + $0x98] sm:$0xf] }
 0x271   : > { %v3137_v4 = vshll.u32 %v4378_v41, 16  ;;  %v3145_v3 = vrot.slane %v3143_v49, 3  ;;  %v3148_v9 = vrot.slane %v3146_v34, 4  ;;  %v974_v24 = vrot.slane %v972_v42, 4  ;;  %4922 = vmatpush3.bf16.msra.mxu0 %v5386_v38  ;;  %v850_v52 = vld [vmem:[#allocation2 + $0x68] sm:$0x8] }
 0x272   : > { %v3132_v7 = vor.u32 %v3131_v51, %v3128_v57  ;;  %2641 = vmatprep.mubr.bf16.mxu1 %v1206_v11  ;;  %v3136_v10 = vrot.slane %v3134_v63, 3  ;;  %v975_v18 = vshll.u32 %v6246_v20, 16  ;;  %v6378_v37 = vcombine.low %v2793_v44, %v2794_v54  ;;  %v2795_v51 = vld [vmem:[#allocation2 + $0x90] sm:$0x8] }
 0x273   : > { %v3139_v50 = vrot.slane %v3137_v4, 4  ;;  %v3149_v0 = vor.u32 %v3148_v9, %v3145_v3  ;;  %2642 = vmatmul.mubr.bf16.gmra.mrb[48].mxu1 %v1198_v59  ;;  %v4267_v25 = vcombine.low %v847_v1, %v6232_v58  ;;  %v1234_v13 = vshrl.u32 %v6317_v21, 16 }
 0x274   : > { %v1237_v61 = vshll.u32 %v6317_v21, 16  ;;  %v977_v5 = vrot.slane %v975_v18, 5  ;;  %v2917_v47 = vshrl.u32 %v6378_v37, 16  ;;  %v2920_v48 = vshll.u32 %v6378_v37, 16 }
 0x275   : > { %v3140_v19 = vor.u32 %v3139_v50, %v3136_v10  ;;  %3613 = vmatprep.mubr.bf16.mxu0 %v3149_v0  ;;  %v1226_v23 = vshrl.u32 %v4267_v25, 16  ;;  %v1229_v20 = vshll.u32 %v4267_v25, 16  ;;  %v1236_v14 = vrot.slane %v1234_v13, 3 }
 0x276   : > { %v1239_v26 = vrot.slane %v1237_v61, 4  ;;  %v978_v38 = vor.u32 %v977_v5, %v974_v24  ;;  %v2919_v27 = vrot.slane %v2917_v47, 4  ;;  %v2922_v58 = vrot.slane %v2920_v48, 5 }
 0x277   : > { %v3141_v39 = vsel %vm1052_vm7, %v3132_v7, %v3140_v19  ;;  %v1228_v31 = vrot.slane %v1226_v23, 3  ;;  %v1231_v30 = vrot.slane %v1229_v20, 4  ;;  %v4379_v16 = vcombine.low %v2792_v60, %v2793_v44 }
 0x278   : > { %3614 = vmatmul.mubr.bf16.gmra.mrb[44].mxu0 %v3141_v39  ;;  %v1240_v21 = vor.u32 %v1239_v26, %v1236_v14  ;;  %v1243_v45 = vshrl.u32 %v978_v38, 16  ;;  %v1246_v33 = vshll.u32 %v978_v38, 16  ;;  %v2923_v36 = vor.u32 %v2922_v58, %v2919_v27 }
 0x279   : > { %v4380_v40 = vcombine.low %v2794_v54, %v2794_v54  ;;  %v1232_v46 = vor.u32 %v1231_v30, %v1228_v31  ;;  %v3169_v41 = vshrl.u32 %v4379_v16, 16  ;;  %v3172_v35 = vshll.u32 %v4379_v16, 16 }
 0x27a   : > { %v980_v6 = vshrl.u32 %v6266_v15, 16  ;;  %v1245_v42 = vrot.slane %v1243_v45, 3  ;;  %v1248_v49 = vrot.slane %v1246_v33, 4  ;;  %v3186_v34 = vshrl.u32 %v2923_v36, 16 }
 0x27b   : > { %v3189_v57 = vshll.u32 %v2923_v36, 16  ;;  %v1241_v11 = vsel %vm1052_vm7, %v1232_v46, %v1240_v21  ;;  %v3171_v44 = vrot.slane %v3169_v41, 3  ;;  %v3174_v59 = vrot.slane %v3172_v35, 4  ;;  %v2799_v35 = vld [vmem:[#allocation2 + $0xa8] sm:$0xf] }
 0x27c   : > { %v3177_v63 = vshrl.u32 %v4380_v40, 16  ;;  %v1249_v4 = vor.u32 %v1248_v49, %v1245_v42  ;;  %v3188_v54 = vrot.slane %v3186_v34, 3  ;;  %v3180_v3 = vshll.u32 %v4380_v40, 16  ;;  %v2800_v49 = vld [vmem:[#allocation2 + $0xac] sm:$0xf] }
 0x27d   : > { %v3191_v1 = vrot.slane %v3189_v57, 4  ;;  %v3175_v9 = vor.u32 %v3174_v59, %v3171_v44  ;;  %v982_v24 = vrot.slane %v980_v6, 4  ;;  %v983_v10 = vshll.u32 %v6266_v15, 16  ;;  %v853_v44 = vld [vmem:[#allocation2 + $0x7c] sm:$0x8] }
 0x27e   : > { %v3179_v7 = vrot.slane %v3177_v63, 3  ;;  %2649 = vmatprep.mubr.bf16.mxu1 %v1249_v4  ;;  %v3182_v18 = vrot.slane %v3180_v3, 4  ;;  %v6389_v60 = vcombine.low %v2796_v32, %v2797_v53  ;;  %v4269_v0 = vcombine.low %v850_v52, %v6255_v2 }
 0x27f   : > { %v3192_v50 = vor.u32 %v3191_v1, %v3188_v54  ;;  %2650 = vmatmul.mubr.bf16.gmra.mrb[52].mxu1 %v1241_v11  ;;  %v985_v25 = vrot.slane %v983_v10, 5  ;;  %v1277_v13 = vshrl.u32 %v6321_v28, 16  ;;  %v1280_v61 = vshll.u32 %v6321_v28, 16 }
 0x280   : > { %v4381_v19 = vcombine.low %v2795_v51, %v2796_v32  ;;  %v3183_v5 = vor.u32 %v3182_v18, %v3179_v7  ;;  %v2925_v47 = vshrl.u32 %v6389_v60, 16  ;;  %v2928_v15 = vshll.u32 %v6389_v60, 16 }
 0x281   : > { %3621 = vmatprep.mubr.bf16.mxu0 %v3192_v50  ;;  %v1269_v48 = vshrl.u32 %v4269_v0, 16  ;;  %v986_v23 = vor.u32 %v985_v25, %v982_v24  ;;  %v1272_v20 = vshll.u32 %v4269_v0, 16  ;;  %v1279_v14 = vrot.slane %v1277_v13, 3 }
 0x282   : > { %v1282_v26 = vrot.slane %v1280_v61, 4  ;;  %v3184_v2 = vsel %vm1052_vm7, %v3175_v9, %v3183_v5  ;;  %v2927_v39 = vrot.slane %v2925_v47, 4  ;;  %v2930_v38 = vrot.slane %v2928_v15, 5  ;;  %v2798_v61 = vld [vmem:[#allocation2 + $0xa4] sm:$0x8] }
 0x283   : > { %v1271_v27 = vrot.slane %v1269_v48, 3  ;;  %3622 = vmatmul.mubr.bf16.gmra.mrb[48].mxu0 %v3184_v2  ;;  %v1286_v58 = vshrl.u32 %v986_v23, 16  ;;  %v1289_v28 = vshll.u32 %v986_v23, 16  ;;  %v1274_v31 = vrot.slane %v1272_v20, 4 }
 0x284   : > { %v1283_v30 = vor.u32 %v1282_v26, %v1279_v14  ;;  %v2931_v21 = vor.u32 %v2930_v38, %v2927_v39  ;;  %v4382_v16 = vcombine.low %v2797_v53, %v2797_v53  ;;  %v3212_v45 = vshrl.u32 %v4381_v19, 16 }
 0x285   : > { %v3215_v33 = vshll.u32 %v4381_v19, 16  ;;  %v1288_v36 = vrot.slane %v1286_v58, 3  ;;  %v1291_v40 = vrot.slane %v1289_v28, 4  ;;  %v1275_v46 = vor.u32 %v1274_v31, %v1271_v27 }
 0x286   : > { %v988_v41 = vshrl.u32 %v6288_v29, 16  ;;  %v3229_v6 = vshrl.u32 %v2931_v21, 16  ;;  %v3232_v32 = vshll.u32 %v2931_v21, 16  ;;  %v3214_v52 = vrot.slane %v3212_v45, 3  ;;  %v2802_v21 = vld [vmem:[#allocation2 + $0xbc] sm:$0xf] }
 0x287   : > { %v3217_v42 = vrot.slane %v3215_v33, 4  ;;  %v1292_v34 = vor.u32 %v1291_v40, %v1288_v36  ;;  %v1284_v57 = vsel %vm1052_vm7, %v1275_v46, %v1283_v30  ;;  %v3220_v51 = vshrl.u32 %v4382_v16, 16  ;;  %v2803_v40 = vld [vmem:[#allocation2 + $0xc0] sm:$0xf] }
 0x288   : > { %v3223_v11 = vshll.u32 %v4382_v16, 16  ;;  %v3231_v53 = vrot.slane %v3229_v6, 3  ;;  %v3234_v59 = vrot.slane %v3232_v32, 4  ;;  %v990_v4 = vrot.slane %v988_v41, 4  ;;  %v856_v32 = vld [vmem:[#allocation2 + $0x90] sm:$0x8] }
 0x289   : > { %v3218_v63 = vor.u32 %v3217_v42, %v3214_v52  ;;  %2657 = vmatprep.mubr.bf16.mxu1 %v1292_v34  ;;  %v3222_v54 = vrot.slane %v3220_v51, 3  ;;  %v991_v3 = vshll.u32 %v6288_v29, 16  ;;  %v6400_v9 = vcombine.low %v2799_v35, %v2800_v49 }
 0x28a   : > { %v3225_v1 = vrot.slane %v3223_v11, 4  ;;  %v3235_v7 = vor.u32 %v3234_v59, %v3231_v53  ;;  %2658 = vmatmul.mubr.bf16.gmra.mrb[56].mxu1 %v1284_v57  ;;  %v4271_v24 = vcombine.low %v853_v44, %v6280_v55  ;;  %v1320_v10 = vshrl.u32 %v6325_v22, 16  ;;  %v2801_v57 = vld [vmem:[#allocation2 + $0xb8] sm:$0x8] }
 0x28b   : > { %v1323_v50 = vshll.u32 %v6325_v22, 16  ;;  %v993_v0 = vrot.slane %v991_v3, 5  ;;  %v2933_v25 = vshrl.u32 %v6400_v9, 16  ;;  %v2936_v13 = vshll.u32 %v6400_v9, 16 }
 0x28c   : > { %v3226_v18 = vor.u32 %v3225_v1, %v3222_v54  ;;  %3629 = vmatprep.mubr.bf16.mxu0 %v3235_v7  ;;  %v1312_v19 = vshrl.u32 %v4271_v24, 16  ;;  %v1315_v29 = vshll.u32 %v4271_v24, 16  ;;  %v1322_v5 = vrot.slane %v1320_v10, 3  ;;  %v5403_v54 = vld [vmem:[#allocation2 + $0x94] sm:$0xf] }
 0x28d   : > { %v1325_v47 = vrot.slane %v1323_v50, 4  ;;  %v994_v48 = vor.u32 %v993_v0, %v990_v4  ;;  %v2935_v55 = vrot.slane %v2933_v25, 4  ;;  %v2938_v23 = vrot.slane %v2936_v13, 5 }
 0x28e   : > { %v3227_v15 = vsel %vm1052_vm7, %v3218_v63, %v3226_v18  ;;  %v1314_v20 = vrot.slane %v1312_v19, 3  ;;  %v1317_v22 = vrot.slane %v1315_v29, 4  ;;  %v4383_v26 = vcombine.low %v2798_v61, %v2799_v35 }
 0x28f   : > { %3630 = vmatmul.mubr.bf16.gmra.mrb[52].mxu0 %v3227_v15  ;;  %v1326_v14 = vor.u32 %v1325_v47, %v1322_v5  ;;  %v1329_v2 = vshrl.u32 %v994_v48, 16  ;;  %v1332_v39 = vshll.u32 %v994_v48, 16  ;;  %v2939_v38 = vor.u32 %v2938_v23, %v2935_v55 }
 0x290   : > { %v4384_v27 = vcombine.low %v2800_v49, %v2800_v49  ;;  %v1318_v58 = vor.u32 %v1317_v22, %v1314_v20  ;;  %v3255_v28 = vshrl.u32 %v4383_v26, 16  ;;  %v3258_v31 = vshll.u32 %v4383_v26, 16 }
 0x291   : > { %v996_v30 = vshrl.u32 %v6298_v8, 16  ;;  %v1331_v16 = vrot.slane %v1329_v2, 3  ;;  %v1334_v45 = vrot.slane %v1332_v39, 4  ;;  %v3272_v33 = vshrl.u32 %v2939_v38, 16 }
 0x292   : > { %v3275_v36 = vshll.u32 %v2939_v38, 16  ;;  %v1327_v46 = vsel %vm1052_vm7, %v1318_v58, %v1326_v14  ;;  %v3257_v41 = vrot.slane %v3255_v28, 3  ;;  %v3260_v6 = vrot.slane %v3258_v31, 4  ;;  %v5387_v2 = vld [vmem:[#allocation2 + $0x38] ss:$0 sps:$4 sm:$0x11]  }
 0x293   : > { %v3263_v35 = vshrl.u32 %v4384_v27, 16  ;;  %v1335_v52 = vor.u32 %v1334_v45, %v1331_v16  ;;  %v3274_v42 = vrot.slane %v3272_v33, 3  ;;  %v3266_v34 = vshll.u32 %v4384_v27, 16  ;;  %v5388_v28 = vld [vmem:[#allocation2 + $0x4c] ss:$0 sps:$4 sm:$0x11]  }
 0x294   : > { %v3277_v49 = vrot.slane %v3275_v36, 4  ;;  %v3261_v51 = vor.u32 %v3260_v6, %v3257_v41  ;;  %v998_v44 = vrot.slane %v996_v30, 4  ;;  %v999_v53 = vshll.u32 %v6298_v8, 16 }
 0x295   : > { %v3265_v11 = vrot.slane %v3263_v35, 3  ;;  %2665 = vmatprep.mubr.bf16.mxu1 %v1335_v52  ;;  %v3268_v63 = vrot.slane %v3266_v34, 4  ;;  %v6411_v4 = vcombine.low %v2802_v21, %v2803_v40  ;;  %v4273_v1 = vcombine.low %v856_v32, %v5403_v54 }
 0x296   : > { %v3278_v59 = vor.u32 %v3277_v49, %v3274_v42  ;;  %2666 = vmatmul.mubr.bf16.gmra.mrb[60].mxu1 %v1327_v46  ;;  %v1001_v3 = vrot.slane %v999_v53, 5  ;;  %v1363_v7 = vshrl.u32 %v6331_v62, 16  ;;  %v1366_v24 = vshll.u32 %v6331_v62, 16 }
 0x297   : > { %v4385_v10 = vcombine.low %v2801_v57, %v2802_v21  ;;  %v3269_v50 = vor.u32 %v3268_v63, %v3265_v11  ;;  %v2941_v18 = vshrl.u32 %v6411_v4, 16  ;;  %v2944_v8 = vshll.u32 %v6411_v4, 16  ;;  %v5389_v63 = vld [vmem:[#allocation2 + $0x60] ss:$0 sps:$4 sm:$0x11]  }
 0x298   : > { %3637 = vmatprep.mubr.bf16.mxu0 %v3278_v59  ;;  %v1355_v0 = vshrl.u32 %v4273_v1, 16  ;;  %v1002_v25 = vor.u32 %v1001_v3, %v998_v44  ;;  %v1358_v13 = vshll.u32 %v4273_v1, 16  ;;  %v1365_v61 = vrot.slane %v1363_v7, 3 }
 0x299   : > { %v1368_v19 = vrot.slane %v1366_v24, 4  ;;  %v3270_v29 = vsel %vm1052_vm7, %v3261_v51, %v3269_v50  ;;  %v2943_v5 = vrot.slane %v2941_v18, 4  ;;  %v2946_v47 = vrot.slane %v2944_v8, 5  ;;  %v5390_v24 = vld [vmem:[#allocation2 + $0x74] ss:$0 sps:$4 sm:$0x11]  }
 0x29a   : > { %v1357_v15 = vrot.slane %v1355_v0, 3  ;;  %3638 = vmatmul.mubr.bf16.gmra.mrb[56].mxu0 %v3270_v29  ;;  %v1372_v48 = vshrl.u32 %v1002_v25, 16  ;;  %v1375_v62 = vshll.u32 %v1002_v25, 16  ;;  %v1360_v55 = vrot.slane %v1358_v13, 4 }
 0x29b   : > { %v1369_v23 = vor.u32 %v1368_v19, %v1365_v61  ;;  %v2947_v20 = vor.u32 %v2946_v47, %v2943_v5  ;;  %v4386_v22 = vcombine.low %v2803_v40, %v2803_v40  ;;  %v3298_v14 = vshrl.u32 %v4385_v10, 16 }
 0x29c   : > { %v3301_v26 = vshll.u32 %v4385_v10, 16  ;;  %v1374_v39 = vrot.slane %v1372_v48, 3  ;;  %v1377_v38 = vrot.slane %v1375_v62, 4  ;;  %v1361_v27 = vor.u32 %v1360_v55, %v1357_v15 }
 0x29d   : > { %v2972_v58 = vrot.slane %v6333_v43, 5  ;;  %v3315_v31 = vshrl.u32 %v2947_v20, 16  ;;  %v3318_v30 = vshll.u32 %v2947_v20, 16  ;;  %v3300_v21 = vrot.slane %v3298_v14, 3 }
 0x29e   : > { %v3303_v16 = vrot.slane %v3301_v26, 4  ;;  %v1378_v45 = vor.u32 %v1377_v38, %v1374_v39  ;;  %v1370_v33 = vsel %vm1052_vm7, %v1361_v27, %v1369_v23  ;;  %v3306_v36 = vshrl.u32 %v4386_v22, 16  ;;  %v5391_v38 = vld [vmem:[#allocation2 + $0x88] ss:$0 sps:$4 sm:$0x11]  }
 0x29f   : > { %v3309_v46 = vshll.u32 %v4386_v22, 16  ;;  %v3317_v41 = vrot.slane %v3315_v31, 3  ;;  %v3320_v40 = vrot.slane %v3318_v30, 4  ;;  %v2973_v35 = vrot.slane %v5387_v2, 5 }
 0x2a0   : > { %v3304_v6 = vor.u32 %v3303_v16, %v3300_v21  ;;  %2673 = vmatprep.mubr.bf16.mxu1 %v1378_v45  ;;  %v3308_v32 = vrot.slane %v3306_v36, 3  ;;  %v3023_v42 = vshrl.u32 %v2972_v58, 16  ;;  %v3026_v49 = vshll.u32 %v2972_v58, 16  ;;  %v5392_v16 = vld [vmem:[#allocation2 + $0x9c] ss:$0 sps:$4 sm:$0x11]  }
 0x2a1   : > { %v3311_v52 = vrot.slane %v3309_v46, 4  ;;  %v3321_v43 = vor.u32 %v3320_v40, %v3317_v41  ;;  %2674 = vmatmul.mubr.bf16.gmra.mrb[64].mxu1 %v1370_v33  ;;  %v2974_v34 = vsel %vm1027_vm6, %v2972_v58, %v2973_v35  ;;  %v2975_v57 = vrot.slane %v6344_v56, 5 }
 0x2a2   : > { %v2976_v51 = vrot.slane %v5388_v28, 5  ;;  %v3025_v44 = vrot.slane %v3023_v42, 3  ;;  %v3028_v53 = vrot.slane %v3026_v49, 4  ;;  %v3031_v59 = vshrl.u32 %v2974_v34, 16 }
 0x2a3   : > { %v3312_v11 = vor.u32 %v3311_v52, %v3308_v32  ;;  %3645 = vmatprep.mubr.bf16.mxu0 %v3321_v43  ;;  %v3034_v54 = vshll.u32 %v2974_v34, 16  ;;  %v3066_v3 = vshrl.u32 %v2975_v57, 16  ;;  %v3069_v7 = vshll.u32 %v2975_v57, 16 }
 0x2a4   : > { %v2977_v1 = vsel %vm1027_vm6, %v2975_v57, %v2976_v51  ;;  %v3029_v50 = vor.u32 %v3028_v53, %v3025_v44  ;;  %v3033_v18 = vrot.slane %v3031_v59, 3  ;;  %v2978_v19 = vrot.slane %v6356_v17, 5  ;;  %v5393_v59 = vld [vmem:[#allocation2 + $0xb0] ss:$0 sps:$4 sm:$0x11]  }
 0x2a5   : > { %v3313_v10 = vsel %vm1052_vm7, %v3304_v6, %v3312_v11  ;;  %v3074_v8 = vshrl.u32 %v2977_v1, 16  ;;  %v3036_v56 = vrot.slane %v3034_v54, 4  ;;  %v3068_v0 = vrot.slane %v3066_v3, 3  ;;  %v5394_v3 = vld [vmem:[#allocation2 + $0xc4] ss:$0 sps:$4 sm:$0x11]  }
 0x2a6   : > { %3646 = vmatmul.mubr.bf16.gmra.mrb[60].mxu0 %v3313_v10  ;;  %v3071_v25 = vrot.slane %v3069_v7, 4  ;;  %v3077_v13 = vshll.u32 %v2977_v1, 16  ;;  %v2979_v29 = vrot.slane %v5389_v63, 5  ;;  %v2981_v5 = vrot.slane %v6367_v12, 5 }
 0x2a7   : > { %v3076_v61 = vrot.slane %v3074_v8, 3  ;;  %v3037_v47 = vor.u32 %v3036_v56, %v3033_v18  ;;  %v2982_v62 = vrot.slane %v5390_v24, 5  ;;  %v3109_v23 = vshrl.u32 %v2978_v19, 16 }
 0x2a8   : > { %v3072_v15 = vor.u32 %v3071_v25, %v3068_v0  ;;  %v3079_v48 = vrot.slane %v3077_v13, 4  ;;  %v2980_v55 = vsel %vm1027_vm6, %v2978_v19, %v2979_v29  ;;  %v3112_v20 = vshll.u32 %v2978_v19, 16 }
 0x2a9   : > { %v3152_v22 = vshrl.u32 %v2981_v5, 16  ;;  %v3038_v14 = vsel %vm1052_vm7, %v3029_v50, %v3037_v47  ;;  %v3117_v2 = vshrl.u32 %v2980_v55, 16  ;;  %v3120_v39 = vshll.u32 %v2980_v55, 16 }
 0x2aa   : > { %v3080_v26 = vor.u32 %v3079_v48, %v3076_v61  ;;  %4923 = vmatprep.mubr.bf16.mxu0 %v3038_v14  ;;  %v3111_v17 = vrot.slane %v3109_v23, 3  ;;  %v3114_v27 = vrot.slane %v3112_v20, 4  ;;  %v2983_v12 = vsel %vm1027_vm6, %v2981_v5, %v2982_v62 }
 0x2ab   : > { %v3154_v58 = vrot.slane %v3152_v22, 3  ;;  %v3119_v31 = vrot.slane %v3117_v2, 3  ;;  %v3122_v30 = vrot.slane %v3120_v39, 4  ;;  %v3155_v21 = vshll.u32 %v2981_v5, 16  ;;  %v5395_v2 = vld [vmem:[#allocation9] sm:$0xff]  }
 0x2ac   : > { %v3081_v28 = vsel %vm1052_vm7, %v3072_v15, %v3080_v26  ;;  %v3115_v45 = vor.u32 %v3114_v27, %v3111_v17  ;;  %v3160_v33 = vshrl.u32 %v2983_v12, 16  ;;  %v3163_v36 = vshll.u32 %v2983_v12, 16  ;;  %4939 = vmatprep.subr.bf16.mxu1 %v5395_v2 }
 0x2ad   : > { %v2984_v46 = vrot.slane %v6378_v37, 5  ;;  %v3123_v41 = vor.u32 %v3122_v30, %v3119_v31  ;;  %v3157_v40 = vrot.slane %v3155_v21, 4  ;;  %v2985_v6 = vrot.slane %v5391_v38, 5  ;;  %4940 = vmatpush3.bf16.msra.mxu1 %v5395_v2 }
 0x2ae   : > { %4924 = vmatmul.mubr.bf16.vlgmr.msra.gmra.mrb[16].mxu0 %v3081_v28  ;;  %v2987_v35 = vrot.slane %v6389_v60, 5  ;;  %v3162_v32 = vrot.slane %v3160_v33, 3  ;;  %v3165_v52 = vrot.slane %v3163_v36, 4  ;;  %v2988_v51 = vrot.slane %v5392_v16, 5 }
 0x2af   : > { %v3195_v42 = vshrl.u32 %v2984_v46, 16  ;;  %v3198_v49 = vshll.u32 %v2984_v46, 16  ;;  %v3124_v43 = vsel %vm1052_vm7, %v3115_v45, %v3123_v41  ;;  %v3158_v34 = vor.u32 %v3157_v40, %v3154_v58 }
 0x2b0   : > { %v2986_v57 = vsel %vm1027_vm6, %v2984_v46, %v2985_v6  ;;  %4927 = vmatprep.mubr.bf16.mxu0 %v3124_v43  ;;  %v3166_v11 = vor.u32 %v3165_v52, %v3162_v32  ;;  %v2989_v54 = vsel %vm1027_vm6, %v2987_v35, %v2988_v51  ;;  %v3238_v60 = vshrl.u32 %v2987_v35, 16  ;;  %v5396_v43 = vld [vmem:[#allocation9 + $0x8] sm:$0xff]  }
 0x2b1   : > { %v3197_v44 = vrot.slane %v3195_v42, 3  ;;  %v3200_v37 = vrot.slane %v3198_v49, 4  ;;  %v3203_v53 = vshrl.u32 %v2986_v57, 16  ;;  %v3206_v63 = vshll.u32 %v2986_v57, 16  ;;  %4941 = vmatprep.subr.bf16.mxu1 %v5396_v43 }
 0x2b2   : > { %v3241_v1 = vshll.u32 %v2987_v35, 16  ;;  %v3167_v7 = vsel %vm1052_vm7, %v3158_v34, %v3166_v11  ;;  %v3246_v50 = vshrl.u32 %v2989_v54, 16  ;;  %v3240_v8 = vrot.slane %v3238_v60, 3  ;;  %4942 = vmatpush3.bf16.msra.mxu1 %v5396_v43 }
 0x2b3   : > { %v3201_v24 = vor.u32 %v3200_v37, %v3197_v44  ;;  %v3205_v10 = vrot.slane %v3203_v53, 3  ;;  %v3208_v18 = vrot.slane %v3206_v63, 4  ;;  %v3249_v0 = vshll.u32 %v2989_v54, 16  ;;  %v5397_v53 = vld [vmem:[#allocation9 + $0x10] sm:$0xff]  }
 0x2b4   : > { %v3243_v56 = vrot.slane %v3241_v1, 4  ;;  %v3248_v25 = vrot.slane %v3246_v50, 3  ;;  %v2990_v13 = vrot.slane %v6400_v9, 5  ;;  %v2991_v61 = vrot.slane %v5393_v59, 5  ;;  %4943 = vmatprep.subr.bf16.mxu1 %v5397_v53 }
 0x2b5   : > { %v2993_v19 = vrot.slane %v6411_v4, 5  ;;  %v3209_v29 = vor.u32 %v3208_v18, %v3205_v10  ;;  %v3251_v47 = vrot.slane %v3249_v0, 4  ;;  %v2994_v15 = vrot.slane %v5394_v3, 5  ;;  %v5399_v0 = vld [vmem:[#allocation9 + $0x20] sm:$0xff]  }
 0x2b6   : > { %4928 = vmatmul.mubr.bf16.gmra.mrb[20].mxu0 %v3167_v7  ;;  %v3244_v5 = vor.u32 %v3243_v56, %v3240_v8  ;;  %v2992_v48 = vsel %vm1027_vm6, %v2990_v13, %v2991_v61  ;;  %v3281_v62 = vshrl.u32 %v2990_v13, 16  ;;  %v3284_v55 = vshll.u32 %v2990_v13, 16  ;;  %4944 = vmatpush3.bf16.msra.mxu1 %v5397_v53  ;;  %v5398_v7 = vld [vmem:[#allocation9 + $0x18] sm:$0xff]  }
 0x2b7   : > { %v3324_v23 = vshrl.u32 %v2993_v19, 16  ;;  %v3210_v20 = vsel %vm1052_vm7, %v3201_v24, %v3209_v29  ;;  %v3252_v22 = vor.u32 %v3251_v47, %v3248_v25  ;;  %v3289_v14 = vshrl.u32 %v2992_v48, 16  ;;  %4945 = vmatprep.subr.bf16.mxu1 %v5398_v7 }
 0x2b8   : > { %v3292_v26 = vshll.u32 %v2992_v48, 16  ;;  %4931 = vmatprep.mubr.bf16.mxu0 %v3210_v20  ;;  %v3283_v9 = vrot.slane %v3281_v62, 3  ;;  %v3286_v39 = vrot.slane %v3284_v55, 4  ;;  %v2995_v4 = vsel %vm1027_vm6, %v2993_v19, %v2994_v15  ;;  %v5401_v62 = vld [vmem:[#allocation9 + $0x30] sm:$0xff]  }
 0x2b9   : > { %v3291_v38 = vrot.slane %v3289_v14, 3  ;;  %v3326_v27 = vrot.slane %v3324_v23, 3  ;;  %v3327_v12 = vshll.u32 %v2993_v19, 16  ;;  %v3253_v28 = vsel %vm1052_vm7, %v3244_v5, %v3252_v22  ;;  %v5400_v5 = vld [vmem:[#allocation9 + $0x28] sm:$0xff]   ;;  %v5402_v14 = vld [vmem:[#allocation9 + $0x38] sm:$0xff]  }
 0x2ba   : > { %v3294_v17 = vrot.slane %v3292_v26, 4  ;;  %v3287_v31 = vor.u32 %v3286_v39, %v3283_v9  ;;  %v3332_v30 = vshrl.u32 %v2995_v4, 16  ;;  %v3335_v21 = vshll.u32 %v2995_v4, 16  ;;  %4946 = vmatpush3.bf16.msra.mxu1 %v5398_v7 }
 0x2bb   : > { %v3329_v33 = vrot.slane %v3327_v12, 4  ;;  %4947 = vmatprep.subr.bf16.mxu1 %v5399_v0 }
 0x2bc   : > { %v3295_v45 = vor.u32 %v3294_v17, %v3291_v38  ;;  %v3334_v41 = vrot.slane %v3332_v30, 3  ;;  %v3337_v40 = vrot.slane %v3335_v21, 4 }
 0x2bd   : > { %v3330_v52 = vor.u32 %v3329_v33, %v3326_v27 }
 0x2be   : > { %4932 = vmatmul.mubr.bf16.gmra.mrb[24].mxu0 %v3253_v28  ;;  %v3296_v35 = vsel %vm1052_vm7, %v3287_v31, %v3295_v45  ;;  %v3338_v42 = vor.u32 %v3337_v40, %v3334_v41  ;;  %4948 = vmatpush3.bf16.msra.mxu1 %v5399_v0 }
 0x2bf   : > { %4935 = vmatprep.mubr.bf16.mxu0 %v3296_v35  ;;  %4949 = vmatprep.subr.bf16.mxu1 %v5400_v5 }
 0x2c0   : > { %v3339_v49 = vsel %vm1052_vm7, %v3330_v52, %v3338_v42 }
 0x2c2   : > { %4950 = vmatpush3.bf16.msra.mxu1 %v5400_v5 }
 0x2c3   : > { %4951 = vmatprep.subr.bf16.mxu1 %v5401_v62 }
 0x2c4   : > { %v4567_v58 = vpop.f32.mrb[4].mxu1 }
 0x2c5   : > { %v4568_v16 = vpop.f32.mrb[5].mxu1 }
 0x2c6   : > { %v6442_v36 = vadd.f32 %v4568_v16, %v4567_v58  ;;  %v4570_v46 = vpop.f32.mrb[6].mxu1  ;;  %4936 = vmatmul.mubr.bf16.gmra.mrb[28].mxu0 %v3339_v49  ;;  %4952 = vmatpush3.bf16.msra.mxu1 %v5401_v62 }
 0x2c7   : > { %v4571_v6 = vpop.f32.mrb[7].mxu1  ;;  %4953 = vmatprep.subr.bf16.mxu1 %v5402_v14 }
 0x2c8   : > { %v6445_v32 = vadd.f32 %v4571_v6, %v4570_v46 }
 0x2ca   : > { %4954 = vmatpush3.bf16.msra.mxu1 %v5402_v14 }
 0x2cc   : > { %v4573_v34 = vpop.f32.mrb[8].mxu1 }
 0x2cd   : > { %v4574_v57 = vpop.f32.mrb[9].mxu1 }
 0x2ce   : > { %v6448_v51 = vadd.f32 %v4574_v57, %v4573_v34  ;;  %v4576_v11 = vpop.f32.mrb[10].mxu1 }
 0x2cf   : > { %v4577_v44 = vpop.f32.mrb[11].mxu1 }
 0x2d0   : > { %v6450_v37 = vadd.f32 %v4577_v44, %v4576_v11 }
 0x2d8   : > { %v4579_v59 = vpop.f32.mrb[12].mxu1 }
 0x2d9   : > { %v4580_v63 = vpop.f32.mrb[13].mxu1 }
 0x2da   : > { %v6452_v54 = vadd.f32 %v4580_v63, %v4579_v59  ;;  %v4582_v60 = vpop.f32.mrb[14].mxu1 }
 0x2db   : > { %v4583_v1 = vpop.f32.mrb[15].mxu1 }
 0x2dc   : > { %v6454_v3 = vadd.f32 %v4583_v1, %v4582_v60 }
 0x2e4   : > { %v4585_v24 = vpop.f32.mrb[16].mxu1 }
 0x2e5   : > { %v4586_v10 = vpop.f32.mrb[17].mxu1 }
 0x2e6   : > { %v6456_v50 = vadd.f32 %v4586_v10, %v4585_v24  ;;  %v4588_v18 = vpop.f32.mrb[18].mxu1 }
 0x2e7   : > { %v4589_v8 = vpop.f32.mrb[19].mxu1 }
 0x2e8   : > { %v6458_v56 = vadd.f32 %v4589_v8, %v4588_v18 }
 0x2ef   : > { %v4591_v25 = vpop.f32.mrb[20].mxu1 }
 0x2f0   : > { %v4592_v13 = vpop.f32.mrb[21].mxu1 }
 0x2f1   : > { %v6460_v61 = vadd.f32 %v4592_v13, %v4591_v25  ;;  %v4594_v19 = vpop.f32.mrb[22].mxu1 }
 0x2f2   : > { %v4595_v29 = vpop.f32.mrb[23].mxu1 }
 0x2f3   : > { %v6462_v47 = vadd.f32 %v4595_v29, %v4594_v19 }
 0x2fc   : > { %v4597_v15 = vpop.f32.mrb[24].mxu1 }
 0x2fd   : > { %v4598_v48 = vpop.f32.mrb[25].mxu1 }
 0x2fe   : > { %v6464_v55 = vadd.f32 %v4598_v48, %v4597_v15  ;;  %v4600_v23 = vpop.f32.mrb[26].mxu1 }
 0x2ff   : > { %v4601_v20 = vpop.f32.mrb[27].mxu1 }
 0x300   : > { %v6466_v22 = vadd.f32 %v4601_v20, %v4600_v23 }
 0x309   : > { %v4603_v26 = vpop.f32.mrb[28].mxu1 }
 0x30a   : > { %v4604_v2 = vpop.f32.mrb[29].mxu1 }
 0x30b   : > { %v6468_v9 = vadd.f32 %v4604_v2, %v4603_v26  ;;  %v4606_v39 = vpop.f32.mrb[30].mxu1 }
 0x30c   : > { %v4607_v4 = vpop.f32.mrb[31].mxu1 }
 0x30d   : > { %v6470_v38 = vadd.f32 %v4607_v4, %v4606_v39 }
 0x317   : > { %v4609_v17 = vpop.f32.mrb[32].mxu1 }
 0x318   : > { %v4610_v27 = vpop.f32.mrb[33].mxu1 }
 0x319   : > { %v6472_v12 = vadd.f32 %v4610_v27, %v4609_v17  ;;  %v4612_v58 = vpop.f32.mrb[34].mxu1 }
 0x31a   : > { %v4613_v28 = vpop.f32.mrb[35].mxu1 }
 0x31b   : > { %v6474_v31 = vadd.f32 %v4613_v28, %v4612_v58 }
 0x323   : > { %v4647_v30 = vpop.f32.mrb[36].mxu1 }
 0x324   : > { %v4648_v21 = vpop.f32.mrb[37].mxu1 }
 0x325   : > { %v4649_v16 = vadd.f32 %v4648_v21, %v4647_v30  ;;  %v4650_v45 = vpop.f32.mrb[38].mxu1 }
 0x326   : > { %v4651_v33 = vpop.f32.mrb[39].mxu1 }
 0x327   : > { %v4727_v46 = vpop.f32.mrb[32].mxu0  ;;  %v4990_v41 = vadd.f32 %v4649_v16, %v6442_v36  ;;  %v4652_v40 = vadd.f32 %v4651_v33, %v4650_v45 }
 0x328   : > { %v4728_v6 = vpop.f32.mrb[33].mxu0 }
 0x329   : > { %v4729_v35 = vadd.f32 %v4728_v6, %v4727_v46  ;;  %v4730_v52 = vpop.f32.mrb[34].mxu0  ;;  %v4996_v42 = vadd.f32 %v4652_v40, %v6445_v32 }
 0x32a   : > { %v4731_v49 = vpop.f32.mrb[35].mxu0 }
 0x32b   : > { %v4732_v43 = vadd.f32 %v4731_v49, %v4730_v52  ;;  %v6478_v34 = vadd.f32 %v4990_v41, %v4729_v35 }
 0x32d   : > { %v6480_v57 = vadd.f32 %v4996_v42, %v4732_v43 }
 0x330   : > { %v4653_v11 = vpop.f32.mrb[40].mxu1 }
 0x331   : > { %v4654_v44 = vpop.f32.mrb[41].mxu1 }
 0x332   : > { %v4655_v53 = vadd.f32 %v4654_v44, %v4653_v11  ;;  %v4656_v59 = vpop.f32.mrb[42].mxu1 }
 0x333   : > { %v4657_v63 = vpop.f32.mrb[43].mxu1  ;;  %v4733_v60 = vpop.f32.mrb[36].mxu0 }
 0x334   : > { %v4987_v36 = vadd.f32 %v4655_v53, %v6448_v51  ;;  %v4658_v1 = vadd.f32 %v4657_v63, %v4656_v59  ;;  %v4734_v7 = vpop.f32.mrb[37].mxu0 }
 0x335   : > { %v4735_v24 = vadd.f32 %v4734_v7, %v4733_v60  ;;  %v4736_v10 = vpop.f32.mrb[38].mxu0 }
 0x336   : > { %v4993_v32 = vadd.f32 %v4658_v1, %v6450_v37  ;;  %v4737_v18 = vpop.f32.mrb[39].mxu0 }
 0x337   : > { %v4738_v8 = vadd.f32 %v4737_v18, %v4736_v10  ;;  %v6484_v0 = vadd.f32 %v4987_v36, %v4735_v24 }
 0x339   : > { %v6486_v25 = vadd.f32 %v4993_v32, %v4738_v8 }
 0x33b   : > { %v4659_v13 = vpop.f32.mrb[44].mxu1 }
 0x33c   : > { %v4660_v19 = vpop.f32.mrb[45].mxu1 }
 0x33d   : > { %v4661_v29 = vadd.f32 %v4660_v19, %v4659_v13  ;;  %v4662_v5 = vpop.f32.mrb[46].mxu1 }
 0x33e   : > { %v4663_v15 = vpop.f32.mrb[47].mxu1 }
 0x33f   : > { %v4739_v48 = vpop.f32.mrb[40].mxu0  ;;  %v5002_v51 = vadd.f32 %v4661_v29, %v6452_v54  ;;  %v4664_v62 = vadd.f32 %v4663_v15, %v4662_v5 }
 0x340   : > { %v4740_v23 = vpop.f32.mrb[41].mxu0 }
 0x341   : > { %v4741_v20 = vadd.f32 %v4740_v23, %v4739_v48  ;;  %v4742_v14 = vpop.f32.mrb[42].mxu0  ;;  %v5008_v37 = vadd.f32 %v4664_v62, %v6454_v3 }
 0x342   : > { %v4743_v26 = vpop.f32.mrb[43].mxu0 }
 0x343   : > { %v4744_v2 = vadd.f32 %v4743_v26, %v4742_v14  ;;  %v6490_v39 = vadd.f32 %v5002_v51, %v4741_v20 }
 0x345   : > { %v6492_v4 = vadd.f32 %v5008_v37, %v4744_v2 }
 0x346   : > { %v4665_v17 = vpop.f32.mrb[48].mxu1 }
 0x347   : > { %v4666_v27 = vpop.f32.mrb[49].mxu1 }
 0x348   : > { %v4667_v58 = vadd.f32 %v4666_v27, %v4665_v17  ;;  %v4668_v28 = vpop.f32.mrb[50].mxu1 }
 0x349   : > { %v4669_v30 = vpop.f32.mrb[51].mxu1 }
 0x34a   : > { %v4999_v54 = vadd.f32 %v4667_v58, %v6456_v50  ;;  %v4670_v16 = vadd.f32 %v4669_v30, %v4668_v28 }
 0x34b   : > { %v4745_v21 = vpop.f32.mrb[44].mxu0 }
 0x34c   : > { %v4746_v45 = vpop.f32.mrb[45].mxu0  ;;  %v5005_v3 = vadd.f32 %v4670_v16, %v6458_v56 }
 0x34d   : > { %v4747_v33 = vadd.f32 %v4746_v45, %v4745_v21  ;;  %v4748_v46 = vpop.f32.mrb[46].mxu0 }
 0x34e   : > { %v4749_v41 = vpop.f32.mrb[47].mxu0 }
 0x34f   : > { %v4750_v40 = vadd.f32 %v4749_v41, %v4748_v46  ;;  %v6496_v6 = vadd.f32 %v4999_v54, %v4747_v33 }
 0x351   : > { %v6498_v35 = vadd.f32 %v5005_v3, %v4750_v40 }
 0x352   : > { %v4671_v52 = vpop.f32.mrb[52].mxu1 }
 0x353   : > { %v4672_v42 = vpop.f32.mrb[53].mxu1 }
 0x354   : > { %v4673_v49 = vadd.f32 %v4672_v42, %v4671_v52  ;;  %v4674_v43 = vpop.f32.mrb[54].mxu1 }
 0x355   : > { %v4675_v11 = vpop.f32.mrb[55].mxu1 }
 0x356   : > { %v4751_v44 = vpop.f32.mrb[48].mxu0  ;;  %v5014_v50 = vadd.f32 %v4673_v49, %v6460_v61  ;;  %v4676_v53 = vadd.f32 %v4675_v11, %v4674_v43 }
 0x357   : > { %v4752_v59 = vpop.f32.mrb[49].mxu0 }
 0x358   : > { %v4753_v63 = vadd.f32 %v4752_v59, %v4751_v44  ;;  %v4754_v60 = vpop.f32.mrb[50].mxu0  ;;  %v5020_v56 = vadd.f32 %v4676_v53, %v6462_v47 }
 0x359   : > { %v4755_v36 = vpop.f32.mrb[51].mxu0 }
 0x35a   : > { %v4756_v1 = vadd.f32 %v4755_v36, %v4754_v60  ;;  %v6502_v7 = vadd.f32 %v5014_v50, %v4753_v63 }
 0x35c   : > { %v6504_v24 = vadd.f32 %v5020_v56, %v4756_v1  ;;  %v6525_v56 = vld [vmem:[%s6734_s1] ss:$0 sm:$0xff] }
 0x35d   : > { %v4677_v10 = vpop.f32.mrb[56].mxu1 }
 0x35e   : > { %v4678_v32 = vpop.f32.mrb[57].mxu1 }
 0x35f   : > { %v4679_v18 = vadd.f32 %v4678_v32, %v4677_v10  ;;  %v4680_v8 = vpop.f32.mrb[58].mxu1 }
 0x360   : > { %v4681_v13 = vpop.f32.mrb[59].mxu1 }
 0x361   : > { %v5011_v61 = vadd.f32 %v4679_v18, %v6464_v55  ;;  %v4682_v29 = vadd.f32 %v4681_v13, %v4680_v8 }
 0x362   : > { %v4757_v19 = vpop.f32.mrb[52].mxu0 }
 0x363   : > { %v4758_v5 = vpop.f32.mrb[53].mxu0  ;;  %v5017_v47 = vadd.f32 %v4682_v29, %v6466_v22 }
 0x364   : > { %v4759_v15 = vadd.f32 %v4758_v5, %v4757_v19  ;;  %v4760_v48 = vpop.f32.mrb[54].mxu0 }
 0x365   : > { %v4761_v51 = vpop.f32.mrb[55].mxu0 }
 0x366   : > { %v4762_v62 = vadd.f32 %v4761_v51, %v4760_v48  ;;  %v6508_v23 = vadd.f32 %v5011_v61, %v4759_v15 }
 0x368   : > { %v6510_v20 = vadd.f32 %v5017_v47, %v4762_v62 }
 0x369   : > { %v4683_v14 = vpop.f32.mrb[60].mxu1 }
 0x36a   : > { %v4684_v37 = vpop.f32.mrb[61].mxu1 }
 0x36b   : > { %v4685_v26 = vadd.f32 %v4684_v37, %v4683_v14  ;;  %v4686_v2 = vpop.f32.mrb[62].mxu1 }
 0x36c   : > { %v4687_v17 = vpop.f32.mrb[63].mxu1 }
 0x36d   : > { %v4763_v27 = vpop.f32.mrb[56].mxu0  ;;  %v5026_v55 = vadd.f32 %v4685_v26, %v6468_v9  ;;  %v4688_v58 = vadd.f32 %v4687_v17, %v4686_v2 }
 0x36e   : > { %v4764_v28 = vpop.f32.mrb[57].mxu0 }
 0x36f   : > { %v4765_v30 = vadd.f32 %v4764_v28, %v4763_v27  ;;  %v4766_v21 = vpop.f32.mrb[58].mxu0  ;;  %v5032_v22 = vadd.f32 %v4688_v58, %v6470_v38 }
 0x370   : > { %v4767_v54 = vpop.f32.mrb[59].mxu0 }
 0x371   : > { %v4768_v16 = vadd.f32 %v4767_v54, %v4766_v21  ;;  %v6514_v45 = vadd.f32 %v5026_v55, %v4765_v30 }
 0x373   : > { %v6516_v33 = vadd.f32 %v5032_v22, %v4768_v16 }
 0x374   : > { %v4689_v46 = vpop.f32.mrb[64].mxu1 }
 0x375   : > { %v4690_v3 = vpop.f32.mrb[65].mxu1 }
 0x376   : > { %v4691_v41 = vadd.f32 %v4690_v3, %v4689_v46  ;;  %v4692_v40 = vpop.f32.mrb[66].mxu1 }
 0x377   : > { %v4693_v52 = vpop.f32.mrb[67].mxu1 }
 0x378   : > { %v5023_v9 = vadd.f32 %v4691_v41, %v6472_v12  ;;  %v4694_v49 = vadd.f32 %v4693_v52, %v4692_v40 }
 0x379   : > { %v4769_v42 = vpop.f32.mrb[60].mxu0 }
 0x37a   : > { %v4770_v43 = vpop.f32.mrb[61].mxu0  ;;  %v5029_v38 = vadd.f32 %v4694_v49, %v6474_v31 }
 0x37b   : > { %v4771_v11 = vadd.f32 %v4770_v43, %v4769_v42  ;;  %v4772_v44 = vpop.f32.mrb[62].mxu0 }
 0x37c   : > { %v4773_v50 = vpop.f32.mrb[63].mxu0 }
 0x37d   : > { %v4774_v53 = vadd.f32 %v4773_v50, %v4772_v44  ;;  %v5024_v59 = vadd.f32 %v5023_v9, %v4771_v11 }
 0x37f   : > { %v6520_v63 = vadd.f32 %v5029_v38, %v4774_v53 }
 0x381   : > { %v4925_v60 = vpop.f32.mrb[16].mxu0 }
 0x382   : > { %v4989_v36 = vadd.f32 %v6484_v0, %v4925_v60  ;;  %v3688_v12 = vpop.f32.mrb[17].mxu0 }
 0x383   : > { %v4992_v1 = vadd.f32 %v6478_v34, %v3688_v12  ;;  %v4926_v10 = vpop.f32.mrb[18].mxu0 }
 0x384   : > { %v3776_v32 = vadd.f32 %v4989_v36, %v6525_v56  ;;  %v4995_v31 = vadd.f32 %v6486_v25, %v4926_v10  ;;  %v3691_v18 = vpop.f32.mrb[19].mxu0 }
 0x385   : > { %v3774_v8 = vadd.f32 %v4992_v1, %v6525_v56  ;;  %v4998_v13 = vadd.f32 %v6480_v57, %v3691_v18 }
 0x386   : > { %v3777_v19 = vadd.f32 %v4995_v31, %v6525_v56  ;;  %v3792_v29 = vmax.f32 %v3776_v32, 0.0 }
 0x387   : > { %v3775_v61 = vadd.f32 %v4998_v13, %v6525_v56  ;;  %v3790_v0 = vmax.f32 %v3774_v8, 0.0 }
 0x388   : > { %v3793_v5 = vmax.f32 %v3777_v19, 0.0 }
 0x389   : > { %v3791_v15 = vmax.f32 %v3775_v61, 0.0  ;;  %v4929_v48 = vpop.f32.mrb[20].mxu0 }
 0x38a   : > { %v3807_v34 = vpack.c.bf16 %v3793_v5, %v3792_v29  ;;  %v5001_v47 = vadd.f32 %v6496_v6, %v4929_v48  ;;  %v3704_v51 = vpop.f32.mrb[21].mxu0 }
 0x38b   : > { %v5004_v25 = vadd.f32 %v6490_v39, %v3704_v51  ;;  %v4930_v62 = vpop.f32.mrb[22].mxu0  ;;  %v3806_v14 = vpack.c.bf16 %v3791_v15, %v3790_v0 }
 0x38c   : > { %v3780_v37 = vadd.f32 %v5001_v47, %v6525_v56  ;;  %v5007_v57 = vadd.f32 %v6498_v35, %v4930_v62  ;;  %v3707_v26 = vpop.f32.mrb[23].mxu0 }
 0x38d   : > { %v3778_v2 = vadd.f32 %v5004_v25, %v6525_v56  ;;  %v5010_v17 = vadd.f32 %v6492_v4, %v3707_v26  ;;  %4955 = vmatprep.mubr.bf16.mxu1 %v3806_v14  ;;  %v4528_v26 = vld [vmem:[%s6562_s14 + $0x18] sm:$0xff]  }
 0x38e   : > { %v3781_v27 = vadd.f32 %v5007_v57, %v6525_v56  ;;  %4956 = vmatmul.mubr.bf16.vlgmr.msra.gmra.mrb[68].mxu1 %v3807_v34  ;;  %v3796_v55 = vmax.f32 %v3780_v37, 0.0 }
 0x38f   : > { %v3779_v6 = vadd.f32 %v5010_v17, %v6525_v56  ;;  %v3794_v39 = vmax.f32 %v3778_v2, 0.0 }
 0x390   : > { %v3797_v58 = vmax.f32 %v3781_v27, 0.0  ;;  %v4527_v27 = vld [vmem:[%s6562_s14 + $0x10] sm:$0xff]  }
 0x391   : > { %v3795_v28 = vmax.f32 %v3779_v6, 0.0  ;;  %v4933_v30 = vpop.f32.mrb[24].mxu0 }
 0x392   : > { %v5013_v21 = vadd.f32 %v6508_v23, %v4933_v30  ;;  %v3720_v22 = vpop.f32.mrb[25].mxu0  ;;  %v3809_v35 = vpack.c.bf16 %v3797_v58, %v3796_v55 }
 0x393   : > { %v5016_v54 = vadd.f32 %v6502_v7, %v3720_v22  ;;  %v4934_v16 = vpop.f32.mrb[26].mxu0  ;;  %v3808_v46 = vpack.c.bf16 %v3795_v28, %v3794_v39  ;;  %v4503_v39 = vunpack.c.l.bf16 %v4528_v26 }
 0x394   : > { %v3784_v4 = vadd.f32 %v5013_v21, %v6525_v56  ;;  %v5019_v3 = vadd.f32 %v6510_v20, %v4934_v16  ;;  %v3723_v41 = vpop.f32.mrb[27].mxu0  ;;  %v4499_v21 = vunpack.c.l.bf16 %v4527_v27 }
 0x395   : > { %v3782_v40 = vadd.f32 %v5016_v54, %v6525_v56  ;;  %v5022_v52 = vadd.f32 %v6504_v24, %v3723_v41  ;;  %4959 = vmatprep.mubr.bf16.mxu1 %v3808_v46  ;;  %v4504_v54 = vunpack.c.h.bf16 %v4528_v26 }
 0x396   : > { %v3785_v42 = vadd.f32 %v5019_v3, %v6525_v56  ;;  %4960 = vmatmul.mubr.bf16.gmra.mrb[72].mxu1 %v3809_v35  ;;  %v3800_v9 = vmax.f32 %v3784_v4, 0.0  ;;  %v4500_v4 = vunpack.c.h.bf16 %v4527_v27 }
 0x397   : > { %v3783_v23 = vadd.f32 %v5022_v52, %v6525_v56  ;;  %v3798_v7 = vmax.f32 %v3782_v40, 0.0 }
 0x398   : > { %v3801_v49 = vmax.f32 %v3785_v42, 0.0 }
 0x399   : > { %v3799_v43 = vmax.f32 %v3783_v23, 0.0  ;;  %v4937_v11 = vpop.f32.mrb[28].mxu0  ;;  %v4530_v23 = vld [vmem:[%s6562_s14 + $0x28] sm:$0xff]  }
 0x39a   : > { %v5025_v44 = vadd.f32 %v5024_v59, %v4937_v11  ;;  %v3736_v38 = vpop.f32.mrb[29].mxu0  ;;  %v3811_v50 = vpack.c.bf16 %v3801_v49, %v3800_v9 }
 0x39b   : > { %v5028_v20 = vadd.f32 %v6514_v45, %v3736_v38  ;;  %v4938_v53 = vpop.f32.mrb[30].mxu0  ;;  %v3810_v60 = vpack.c.bf16 %v3799_v43, %v3798_v7  ;;  %v4529_v7 = vld [vmem:[%s6562_s14 + $0x20] sm:$0xff]   ;;  %v4511_v38 = vunpack.c.l.bf16 %v4530_v23 }
 0x39c   : > { %v3788_v24 = vadd.f32 %v5025_v44, %v6525_v56  ;;  %v5031_v36 = vadd.f32 %v6520_v63, %v4938_v53  ;;  %v3739_v12 = vpop.f32.mrb[31].mxu0  ;;  %v4490_v63 = vld [vmem:[%s6562_s14] sm:$0xff]   ;;  %v4507_v53 = vunpack.c.l.bf16 %v4529_v7 }
 0x39d   : > { %v3786_v1 = vadd.f32 %v5028_v20, %v6525_v56  ;;  %v5034_v10 = vadd.f32 %v6516_v33, %v3739_v12  ;;  %4963 = vmatprep.mubr.bf16.mxu1 %v3810_v60  ;;  %v4526_v33 = vld [vmem:[%s6562_s14 + $0x8] sm:$0xff]   ;;  %v4491_v5 = vunpack.c.l.bf16 %v4490_v63  ;;  %v4492_v51 = vunpack.c.h.bf16 %v4490_v63 }
 0x39e   : > { %v3789_v59 = vadd.f32 %v5031_v36, %v6525_v56  ;;  %4964 = vmatmul.mubr.bf16.gmra.mrb[76].mxu1 %v3811_v50  ;;  %v3804_v45 = vmax.f32 %v3788_v24, 0.0  ;;  %v4495_v61 = vunpack.c.l.bf16 %v4526_v33  ;;  %v4496_v48 = vunpack.c.h.bf16 %v4526_v33  ;;  %v4531_v33 = vld [vmem:[%s6562_s14 + $0x30] sm:$0xff]  }
 0x39f   : > { %v3787_v32 = vadd.f32 %v5034_v10, %v6525_v56  ;;  %v3802_v18 = vmax.f32 %v3786_v1, 0.0  ;;  %v6569_v56 = vld [vmem:[%s6735_s6] ss:$0 sm:$0xff]  ;;  %v4512_v36 = vunpack.c.h.bf16 %v4530_v23  ;;  %v4508_v10 = vunpack.c.h.bf16 %v4529_v7  ;;  %s5524_s6 = scalar_lea.vmem %s5523_s4, 4096 }
 0x3a0   : > { %v3805_v31 = vmax.f32 %v3789_v59, 0.0 }
 0x3a1   : > { %v3803_v8 = vmax.f32 %v3787_v32, 0.0 }
 0x3a2   : > { %v3813_v13 = vpack.c.bf16 %v3805_v31, %v3804_v45 }
 0x3a3   : > { %v3812_v19 = vpack.c.bf16 %v3803_v8, %v3802_v18  ;;  %v4532_v8 = vld [vmem:[%s6562_s14 + $0x38] sm:$0xff]   ;;  %s5518_s14 = scalar_lea.vmem %s6614_s12, 2048 }
 0x3a4   : > { %p5519_p9 = scmp.ne.s32.totalorder %s6614_s12, %s5518_s14  ;;  %p5526_p12 = scmp.lt.s32.totalorder %s5524_s6, %s5518_s14 }
 0x3a5   : > { %4967 = vmatprep.mubr.bf16.mxu1 %v3812_v19 }
 0x3a6   : > { %4968 = vmatmul.mubr.bf16.gmra.mrb[80].mxu1 %v3813_v13  ;;  %p5520_p13 = pnand %p5519_p9, %p6739_p5  ;;  %p5527_p4 = por %p5526_p12, %p5525_p8 }
 0x3a8   : > { %p5521_p6 = pneg %p5520_p13 }
 0x3aa   : > { %p5528_p7 = pnand %p5527_p4, %p5521_p6 }
 0x461   : > { %v4957_v29 = vpop.f32.mrb[68].mxu1 }
 0x462   : > { %v3949_v0 = vadd.f32 %v4957_v29, %v6569_v56  ;;  %v3940_v15 = vpop.f32.mrb[69].mxu1 }
 0x463   : > { %v3941_v34 = vadd.f32 %v6569_v56, %v3940_v15  ;;  %v4958_v47 = vpop.f32.mrb[70].mxu1 }
 0x464   : > { %v4021_v25 = vadd.f32 %v4495_v61, %v3949_v0  ;;  %v3952_v62 = vadd.f32 %v4958_v47, %v6569_v56  ;;  %v3943_v14 = vpop.f32.mrb[71].mxu1 }
 0x465   : > { %v4019_v37 = vadd.f32 %v4491_v5, %v3941_v34  ;;  %v3944_v57 = vadd.f32 %v6569_v56, %v3943_v14  ;;  %v4519_v5 = vunpack.c.l.bf16 %v4532_v8  ;;  %v4516_v14 = vunpack.c.h.bf16 %v4531_v33 }
 0x466   : > { %v4037_v2 = vmax.f32 %v4021_v25, 0.0  ;;  %v4022_v17 = vadd.f32 %v4496_v48, %v3952_v62  ;;  %v4515_v48 = vunpack.c.l.bf16 %v4531_v33 }
 0x467   : > { %v4035_v6 = vmax.f32 %v4019_v37, 0.0  ;;  %v4020_v55 = vadd.f32 %v4492_v51, %v3944_v57  ;;  %v4520_v51 = vunpack.c.h.bf16 %v4532_v8 }
 0x468   : > { %4053 = vst [vmem:[%s6075_s21 + $0x10] sm:$0xff] %v4037_v2  ;;  %v4038_v58 = vmax.f32 %v4022_v17, 0.0 }
 0x469   : > { %4051 = vst [vmem:[%s6075_s21] sm:$0xff] %v4035_v6  ;;  %v4036_v28 = vmax.f32 %v4020_v55, 0.0  ;;  %v4961_v30 = vpop.f32.mrb[72].mxu1 }
 0x46a   : > { %4054 = vst [vmem:[%s6075_s21 + $0x18] sm:$0xff] %v4038_v58  ;;  %v3965_v22 = vadd.f32 %v4961_v30, %v6569_v56  ;;  %v3956_v35 = vpop.f32.mrb[73].mxu1 }
 0x46b   : > { %4052 = vst [vmem:[%s6075_s21 + $0x8] sm:$0xff] %v4036_v28  ;;  %v3957_v16 = vadd.f32 %v6569_v56, %v3956_v35  ;;  %v4962_v46 = vpop.f32.mrb[74].mxu1 }
 0x46c   : > { %v4025_v3 = vadd.f32 %v4503_v39, %v3965_v22  ;;  %v3968_v41 = vadd.f32 %v4962_v46, %v6569_v56  ;;  %v3959_v40 = vpop.f32.mrb[75].mxu1 }
 0x46d   : > { %v4023_v52 = vadd.f32 %v4499_v21, %v3957_v16  ;;  %v3960_v42 = vadd.f32 %v6569_v56, %v3959_v40 }
 0x46e   : > { %v4041_v9 = vmax.f32 %v4025_v3, 0.0  ;;  %v4026_v49 = vadd.f32 %v4504_v54, %v3968_v41 }
 0x46f   : > { %v4039_v43 = vmax.f32 %v4023_v52, 0.0  ;;  %v4024_v11 = vadd.f32 %v4500_v4, %v3960_v42 }
 0x470   : > { %4057 = vst [vmem:[%s6075_s21 + $0x30] sm:$0xff] %v4041_v9  ;;  %v4042_v44 = vmax.f32 %v4026_v49, 0.0 }
 0x471   : > { %4055 = vst [vmem:[%s6075_s21 + $0x20] sm:$0xff] %v4039_v43  ;;  %v4040_v50 = vmax.f32 %v4024_v11, 0.0  ;;  %v4965_v20 = vpop.f32.mrb[76].mxu1 }
 0x472   : > { %4058 = vst [vmem:[%s6075_s21 + $0x38] sm:$0xff] %v4042_v44  ;;  %v3981_v60 = vadd.f32 %v4965_v20, %v6569_v56  ;;  %v3972_v24 = vpop.f32.mrb[77].mxu1 }
 0x473   : > { %4056 = vst [vmem:[%s6075_s21 + $0x28] sm:$0xff] %v4040_v50  ;;  %v3973_v12 = vadd.f32 %v6569_v56, %v3972_v24  ;;  %v4966_v1 = vpop.f32.mrb[78].mxu1 }
 0x474   : > { %v4029_v59 = vadd.f32 %v4511_v38, %v3981_v60  ;;  %v3984_v32 = vadd.f32 %v4966_v1, %v6569_v56  ;;  %v3975_v45 = vpop.f32.mrb[79].mxu1 }
 0x475   : > { %v4027_v31 = vadd.f32 %v4507_v53, %v3973_v12  ;;  %v3976_v18 = vadd.f32 %v6569_v56, %v3975_v45 }
 0x476   : > { %v4045_v13 = vmax.f32 %v4029_v59, 0.0  ;;  %v4030_v19 = vadd.f32 %v4512_v36, %v3984_v32 }
 0x477   : > { %v4043_v63 = vmax.f32 %v4027_v31, 0.0  ;;  %v4028_v61 = vadd.f32 %v4508_v10, %v3976_v18 }
 0x478   : > { %4061 = vst [vmem:[%s6075_s21 + $0x50] sm:$0xff] %v4045_v13  ;;  %v4046_v29 = vmax.f32 %v4030_v19, 0.0 }
 0x479   : > { %4059 = vst [vmem:[%s6075_s21 + $0x40] sm:$0xff] %v4043_v63  ;;  %v4044_v0 = vmax.f32 %v4028_v61, 0.0  ;;  %v4969_v15 = vpop.f32.mrb[80].mxu1 }
 0x47a   : > { %4062 = vst [vmem:[%s6075_s21 + $0x58] sm:$0xff] %v4046_v29  ;;  %v3997_v34 = vadd.f32 %v4969_v15, %v6569_v56  ;;  %v3988_v47 = vpop.f32.mrb[81].mxu1 }
 0x47b   : > { %4060 = vst [vmem:[%s6075_s21 + $0x48] sm:$0xff] %v4044_v0  ;;  %v3989_v25 = vadd.f32 %v6569_v56, %v3988_v47  ;;  %v4970_v62 = vpop.f32.mrb[82].mxu1 }
 0x47c   : > { %v4033_v37 = vadd.f32 %v4519_v5, %v3997_v34  ;;  %v4000_v57 = vadd.f32 %v4970_v62, %v6569_v56  ;;  %v3991_v26 = vpop.f32.mrb[83].mxu1 }
 0x47d   : > { %v4031_v2 = vadd.f32 %v4515_v48, %v3989_v25  ;;  %v3992_v17 = vadd.f32 %v6569_v56, %v3991_v26 }
 0x47e   : > { %v4049_v27 = vmax.f32 %v4033_v37, 0.0  ;;  %v4034_v6 = vadd.f32 %v4520_v51, %v4000_v57 }
 0x47f   : > { %v4047_v55 = vmax.f32 %v4031_v2, 0.0  ;;  %v4032_v58 = vadd.f32 %v4516_v14, %v3992_v17 }
 0x480   : > { %4065 = vst [vmem:[%s6075_s21 + $0x70] sm:$0xff] %v4049_v27  ;;  %v4050_v39 = vmax.f32 %v4034_v6, 0.0 }
 0x481   : > { %4063 = vst [vmem:[%s6075_s21 + $0x60] sm:$0xff] %v4047_v55  ;;  %v4048_v56 = vmax.f32 %v4032_v58, 0.0 }
 0x482   : > { %4066 = vst [vmem:[%s6075_s21 + $0x78] sm:$0xff] %v4050_v39 }
 0x483   : > { %4064 = vst [vmem:[%s6075_s21 + $0x68] sm:$0xff] %v4048_v56 }
 0x484   : > { %5531 = shalt.err (!%p5528_p7)
}
 0x485   : > { %s5532_s3 = scalar_lea.hbm %s6612_s20, 2048  ;;  %s5536_s23 = scalar_lea.hbm %s6738_s18, 8192 }
 0x486   : > { %p5533_p3 = scmp.ne.s32.totalorder %s6612_s20, %s5532_s3  ;;  %p5537_p11 = scmp.lt.u32.totalorder %s6612_s20, %s6738_s18 }
 0x487   : > { %p5538_p10 = scmp.lt.u32.totalorder %s5536_s23, %s5532_s3  ;;  %p5540_p9 = scmp.lt.u32.totalorder %s5532_s3, %s6612_s20 }
 0x488   : > { %p5534_p0 = pnand %p5533_p3, %p6739_p5 }
 0x489   : > { %p5539_p2 = por %p5538_p10, %p5537_p11 }
 0x48a   : > { %p5535_p1 = pneg %p5534_p0 }
 0x48b   : > { %p5541_p13 = por %p5540_p9, %p5539_p2 }
 0x48d   : > { %p5542_p6 = pnand %p5541_p13, %p5535_p1 }
 0x48f   : > { %5545 = shalt.err (!%p5542_p6)
}
 0x490   : > { %s5659_s30 = smov 128   ;;  %s5660_s24 = smov 8  }
 0x491   : > { %5084 = dma.vmem_to_hbm [thread:$0]  (%p6739_p5), %s6614_s12, 2048, %s6612_s20, %s6621_s16, %s5659_s30, %s5659_s30, %s5660_s24  }
 0x492 PF: > { %s6740_s1 = sld [smem:[#allocation16_spill]]  ;;  %s6741_s14 = sld [smem:[#allocation19_spill]] }
 0x493   : > { %p5111_p8 = scmp.ge.s32.totalorder %s5648_s11, 2 }
 0x498   : > { %s4098_s15 = sand.u32 1, %s6740_s1   ;;  %p6742_p12 = scmp.ne.s32.totalorder %s6741_s14, 0 }
 0x499   : > { %s4099_s4 = scalar_lea.sflag [#allocation5], %s4098_s15 }
 0x49a   : > { %p5101_p4 = pnand %p5111_p8, %p6742_p12 }
 0x49c   : > { %5603 = dma.done.wait (!%p5101_p4), %s4099_s4, 2048  }
 0x49d   : > { %5605 = vsyncadd (!%p5101_p4), %s4099_s4, 4294965248  ;;  %s25_s11 = sadd.s32 1, %s5648_s11   ;;  %s6743_s24 = smov %s5612_s25 }
 0x49e   : > { %p22_p7 = scmp.ge.s32.totalorder %s25_s11, 6   ;;  %s6744_s25 = smov %s5616_s26 }
 0x49f   : > { %s6745_s26 = smov %s5908_s27  ;;  %s6746_s27 = smov %s5624_s28 }
 0x4a0   : > { %s6747_s28 = smov %s5628_s29  ;;  %s6748_s29 = smov %s5903_s7 }
 0x4a1   : > { %s6749_s30 = smov %s5640_s9  ;;  %s6750_s8 = smov %s5644_s10 }
 0x4a2   : > { %s6751_s9 = smov %s6754_s17  ;;  %s6752_s10 = smov %s6758_s22 }
 0x4a3   :  { %24 = sbr.rel (!%p22_p7) target bundleno = 18 (0x12), region = 120 }
 0x4aa   :  { %4104 = vsyncpa [#allocation4], 1 }
 0x4ab   :  { %4106 = vsyncpa [#allocation4 + $0x1], 1 }
 0x4ac   :  { %4107 = vsyncpa [#allocation7], 1 }
 0x4ad   :  { %4108 = vsyncpa [#allocation10], 1 }
 0x4ae   :  { %4109 = vsyncpa [#allocation5], 1 }
 0x4af   :  { %4111 = vsyncpa [#allocation5 + $0x1], 1 }

</bundles_post_ra>
